<compile_context>
chip_gen: v6e
topology: v6e:2x2x1
jax: 0.10.0
libtpu: 0.0.40
codegen_flags: <defaults>
</compile_context>

<pallas_src>
import jax
import jax.numpy as jnp
from jax.experimental import pallas as pl
from jax.experimental.pallas import tpu as pltpu

HID_DIMS = [256, 128, 64, 32]
EPS = 1e-5
# Per-tower refs inside the kernel (after first-layer fusion):
#   (W, b) for layers 2..4  +  (wf_row, bf) for the final Linear.
N_TAIL_REFS = 2 * (len(HID_DIMS) - 1) + 2


# ---------------------------------------------------------------------------
# Pallas kernel: fused first layer, per-tower tails, CTCVR product.
# ---------------------------------------------------------------------------
def _tower_tail(h, refs):
    """Layers 2..4 (Linear + folded BN -> ReLU) and the final Linear -> Sigmoid."""
    for i in range(len(HID_DIMS) - 1):
        W = refs[2 * i][...]            # (d_in, d_out), bf16 (folded BN scale)
        b = refs[2 * i + 1][...]        # (1, d_out), f32 (bias + BN shift)
        h = jnp.dot(h.astype(W.dtype), W, preferred_element_type=jnp.float32) + b
        h = jnp.maximum(h, 0.0)         # ReLU; Dropout is identity at inference.
    wf = refs[2 * (len(HID_DIMS) - 1)][...]       # (1, 32) f32
    bf = refs[2 * (len(HID_DIMS) - 1) + 1][...]   # (1, 1)  f32
    # N=1 output: VPU multiply + lane reduction instead of an N=1 MXU matmul.
    logit = jnp.sum(h * wf, axis=-1, keepdims=True) + bf
    return jax.nn.sigmoid(logit)


def esmm_kernel(x_ref, w1_ref, b1_ref, *refs):
    ctr_refs = refs[:N_TAIL_REFS]
    cvr_refs = refs[N_TAIL_REFS:2 * N_TAIL_REFS]
    out_ref = refs[2 * N_TAIL_REFS]

    # Fused first layer of both towers: one (TB, D) @ (D, 2*256) matmul.
    x = x_ref[...]
    w1 = w1_ref[...]
    h1 = jnp.dot(x.astype(w1.dtype), w1, preferred_element_type=jnp.float32)
    h1 = jnp.maximum(h1 + b1_ref[...], 0.0)

    n0 = HID_DIMS[0]
    p_ctr = _tower_tail(h1[:, :n0], ctr_refs)
    p_cvr = _tower_tail(h1[:, n0:], cvr_refs)

    # Single combined store: column 0 = p_ctr, column 1 = p_ctcvr.
    out_ref[...] = jnp.concatenate([p_ctr, p_ctr * p_cvr], axis=1)


# ---------------------------------------------------------------------------
# Wrapper: BN folding, first-layer fusion, batch padding, pallas_call.
# ---------------------------------------------------------------------------
def _fold_tower(params, matmul_dtype):
    """Fold BN scale/shift into each Linear; return (W1', b1', tail params)."""
    Ws, bs = [], []
    for i in range(len(HID_DIMS)):
        W, b, s, t = params[4 * i: 4 * i + 4]
        Ws.append(W * s)                # column scale (folds BN into the matmul)
        bs.append(b * s + t)            # merged bias + BN shift
    Wf, bf = params[-2], params[-1]
    tail = []
    for i in range(1, len(HID_DIMS)):
        tail += [Ws[i].astype(matmul_dtype), bs[i]]
    tail += [Wf.T, bf]                  # (1, 32) row for the VPU reduce, (1, 1)
    return Ws[0], bs[0], tail


def esmm_pallas(x_emb, ctr_params, cvr_params, *, tb=256,
                matmul_dtype=jnp.bfloat16):
    B, D = x_emb.shape
    nb = (B + tb - 1) // tb
    B_pad = nb * tb
    if B_pad != B:
        x_emb = jnp.pad(x_emb, ((0, B_pad - B), (0, 0)))
    x_emb = x_emb.astype(jnp.float32)

    W1c, b1c, ctr_tail = _fold_tower(ctr_params, matmul_dtype)
    W1v, b1v, cvr_tail = _fold_tower(cvr_params, matmul_dtype)
    W1f = jnp.concatenate([W1c, W1v], axis=1).astype(matmul_dtype)   # (D, 512)
    b1f = jnp.concatenate([b1c, b1v], axis=1)                        # (1, 512)

    weights = [W1f, b1f] + ctr_tail + cvr_tail

    x_spec = pl.BlockSpec((tb, D), lambda i: (i, 0))
    w_specs = [pl.BlockSpec(w.shape, lambda i: (0, 0)) for w in weights]
    out_spec = pl.BlockSpec((tb, 2), lambda i: (i, 0))

    out = pl.pallas_call(
        esmm_kernel,
        grid=(nb,),
        in_specs=[x_spec] + w_specs,
        out_specs=out_spec,
        out_shape=jax.ShapeDtypeStruct((B_pad, 2), jnp.float32),
        compiler_params=pltpu.CompilerParams(
            dimension_semantics=("parallel",)),
    )(x_emb, *weights)

    p_ctr = out[:B, 0:1]
    p_ctcvr = out[:B, 1:2]
    return p_ctr, p_ctcvr


# ---------------------------------------------------------------------------
# Pure-JAX reference (unfolded, f32) for a correctness sanity check.
# ---------------------------------------------------------------------------
def _tower_reference(x, params):
    h = x
    for i in range(len(HID_DIMS)):
        W, b, s, t = params[4 * i: 4 * i + 4]
        h = h @ W + b
        h = h * s + t
        h = jnp.maximum(h, 0.0)
    Wf, bf = params[-2], params[-1]
    return jax.nn.sigmoid(h @ Wf + bf)


def esmm_reference(x_emb, ctr_params, cvr_params):
    p_ctr = _tower_reference(x_emb, ctr_params)
    p_cvr = _tower_reference(x_emb, cvr_params)
    return p_ctr, p_ctr * p_cvr


# ---------------------------------------------------------------------------
# Deterministic parameter initialization (synthetic, no checkpoint).
# ---------------------------------------------------------------------------
def init_linear(key, in_dim, out_dim):
    k1, k2 = jax.random.split(key)
    bound = 1.0 / jnp.sqrt(jnp.float32(in_dim))
    W = jax.random.uniform(k1, (in_dim, out_dim), jnp.float32, -bound, bound)
    b = jax.random.uniform(k2, (1, out_dim), jnp.float32, -bound, bound)
    return W, b


def init_bn(key, dim):
    # BatchNorm1d in eval mode: y = (x - mean)/sqrt(var+eps)*gamma + beta,
    # pre-expressed as an affine scale/shift.
    k1, k2, k3, k4 = jax.random.split(key, 4)
    gamma = 1.0 + 0.1 * jax.random.normal(k1, (1, dim), jnp.float32)
    beta = 0.1 * jax.random.normal(k2, (1, dim), jnp.float32)
    mean = 0.1 * jax.random.normal(k3, (1, dim), jnp.float32)
    var = jnp.abs(jax.random.normal(k4, (1, dim), jnp.float32)) + 0.5
    scale = gamma / jnp.sqrt(var + EPS)
    shift = beta - mean * scale
    return scale, shift


def init_tower(key, input_dims):
    dims = [input_dims] + HID_DIMS
    keys = jax.random.split(key, len(HID_DIMS) + 1)
    params = []
    for i in range(len(HID_DIMS)):
        W, b = init_linear(keys[i], dims[i], dims[i + 1])
        s, t = init_bn(jax.random.fold_in(keys[i], 1), dims[i + 1])
        params += [W, b, s, t]
    Wf, bf = init_linear(keys[-1], HID_DIMS[-1], 1)
    params += [Wf, bf]
    return params


def feature_extractor(emb_tables, x_sparse, x_dense):
    # Glue: embedding gathers + concat (matches FeatureExtractor.forward).
    embs = [tab[x_sparse[:, i]] for i, tab in enumerate(emb_tables)]
    return jnp.concatenate(embs + [x_dense], axis=1)


# ---------------------------------------------------------------------------
if __name__ == "__main__":
    key = jax.random.PRNGKey(0)

    # Small, forward-consistent shapes.
    cate_fea_nuniqs = [10, 20, 30]   # 3 sparse features
    input_dim = 16                   # dense feature dim
    emb_size = 8
    B = 8
    input_dims = input_dim + len(cate_fea_nuniqs) * emb_size  # 40

    k_emb, k_ctr, k_cvr, k_sp, k_dn = jax.random.split(key, 5)

    # Embedding tables (nn.Embedding: normal(0, 1) init).
    emb_keys = jax.random.split(k_emb, len(cate_fea_nuniqs))
    emb_tables = [
        jax.random.normal(emb_keys[i], (n, emb_size), jnp.float32)
        for i, n in enumerate(cate_fea_nuniqs)
    ]

    ctr_params = init_tower(k_ctr, input_dims)
    cvr_params = init_tower(k_cvr, input_dims)

    # Inputs.
    sp_keys = jax.random.split(k_sp, len(cate_fea_nuniqs))
    x_sparse = jnp.stack(
        [
            jax.random.randint(sp_keys[i], (B,), 0, n, jnp.int32)
            for i, n in enumerate(cate_fea_nuniqs)
        ],
        axis=1,
    )  # (B, 3) int32
    x_dense = jax.random.normal(k_dn, (B, input_dim), jnp.float32)  # (B, 16)

    # Forward: feature extractor (glue) -> Pallas kernel (both towers + mul).
    x_emb = feature_extractor(emb_tables, x_sparse, x_dense)  # (B, 40)
    p_ctr, p_ctcvr = esmm_pallas(x_emb, ctr_params, cvr_params)
    jax.block_until_ready((p_ctr, p_ctcvr))

    assert p_ctr.shape == (B, 1) and p_ctcvr.shape == (B, 1)
    assert bool(jnp.all(jnp.isfinite(p_ctr))) and bool(jnp.all(jnp.isfinite(p_ctcvr)))

    # Sanity check against the unfolded f32 reference (bf16 matmuls -> loose tol).
    r_ctr, r_ctcvr = esmm_reference(x_emb, ctr_params, cvr_params)
    assert float(jnp.max(jnp.abs(p_ctr - r_ctr))) < 5e-2
    assert float(jnp.max(jnp.abs(p_ctcvr - r_ctcvr))) < 5e-2

    print("KERNEL_OK")
</pallas_src>

<mosaic_0001>
module attributes {stable_mosaic.version = 11 : i64} {
  func.func @esmm_kernel(%arg0: i32, %arg1: memref<256x40xf32, #tpu.memory_space<vmem>>, %arg2: memref<40x512xbf16, #tpu.memory_space<vmem>>, %arg3: memref<1x512xf32, #tpu.memory_space<vmem>>, %arg4: memref<256x128xbf16, #tpu.memory_space<vmem>>, %arg5: memref<1x128xf32, #tpu.memory_space<vmem>>, %arg6: memref<128x64xbf16, #tpu.memory_space<vmem>>, %arg7: memref<1x64xf32, #tpu.memory_space<vmem>>, %arg8: memref<64x32xbf16, #tpu.memory_space<vmem>>, %arg9: memref<1x32xf32, #tpu.memory_space<vmem>>, %arg10: memref<1x32xf32, #tpu.memory_space<vmem>>, %arg11: memref<1x1xf32, #tpu.memory_space<vmem>>, %arg12: memref<256x128xbf16, #tpu.memory_space<vmem>>, %arg13: memref<1x128xf32, #tpu.memory_space<vmem>>, %arg14: memref<128x64xbf16, #tpu.memory_space<vmem>>, %arg15: memref<1x64xf32, #tpu.memory_space<vmem>>, %arg16: memref<64x32xbf16, #tpu.memory_space<vmem>>, %arg17: memref<1x32xf32, #tpu.memory_space<vmem>>, %arg18: memref<1x32xf32, #tpu.memory_space<vmem>>, %arg19: memref<1x1xf32, #tpu.memory_space<vmem>>, %arg20: memref<256x2xf32, #tpu.memory_space<vmem>>) attributes {dimension_semantics = [#tpu.dimension_semantics<parallel>], iteration_bounds = array<i64: 1>, scalar_prefetch = 0 : i64, scratch_operands = 0 : i64, tpu.core_type = #tpu.core_type<tc>, window_params = [{transform_indices = @transform_0, window_bounds = array<i64: 256, 40>}, {pipeline_mode = #tpu.pipeline_mode<synchronous>, transform_indices = @transform_1, window_bounds = array<i64: 40, 512>}, {pipeline_mode = #tpu.pipeline_mode<synchronous>, transform_indices = @transform_2, window_bounds = array<i64: 1, 512>}, {pipeline_mode = #tpu.pipeline_mode<synchronous>, transform_indices = @transform_3, window_bounds = array<i64: 256, 128>}, {pipeline_mode = #tpu.pipeline_mode<synchronous>, transform_indices = @transform_4, window_bounds = array<i64: 1, 128>}, {pipeline_mode = #tpu.pipeline_mode<synchronous>, transform_indices = @transform_5, window_bounds = array<i64: 128, 64>}, {pipeline_mode = #tpu.pipeline_mode<synchronous>, transform_indices = @transform_6, window_bounds = array<i64: 1, 64>}, {pipeline_mode = #tpu.pipeline_mode<synchronous>, transform_indices = @transform_7, window_bounds = array<i64: 64, 32>}, {pipeline_mode = #tpu.pipeline_mode<synchronous>, transform_indices = @transform_8, window_bounds = array<i64: 1, 32>}, {pipeline_mode = #tpu.pipeline_mode<synchronous>, transform_indices = @transform_9, window_bounds = array<i64: 1, 32>}, {pipeline_mode = #tpu.pipeline_mode<synchronous>, transform_indices = @transform_10, window_bounds = array<i64: 1, 1>}, {pipeline_mode = #tpu.pipeline_mode<synchronous>, transform_indices = @transform_11, window_bounds = array<i64: 256, 128>}, {pipeline_mode = #tpu.pipeline_mode<synchronous>, transform_indices = @transform_12, window_bounds = array<i64: 1, 128>}, {pipeline_mode = #tpu.pipeline_mode<synchronous>, transform_indices = @transform_13, window_bounds = array<i64: 128, 64>}, {pipeline_mode = #tpu.pipeline_mode<synchronous>, transform_indices = @transform_14, window_bounds = array<i64: 1, 64>}, {pipeline_mode = #tpu.pipeline_mode<synchronous>, transform_indices = @transform_15, window_bounds = array<i64: 64, 32>}, {pipeline_mode = #tpu.pipeline_mode<synchronous>, transform_indices = @transform_16, window_bounds = array<i64: 1, 32>}, {pipeline_mode = #tpu.pipeline_mode<synchronous>, transform_indices = @transform_17, window_bounds = array<i64: 1, 32>}, {pipeline_mode = #tpu.pipeline_mode<synchronous>, transform_indices = @transform_18, window_bounds = array<i64: 1, 1>}, {transform_indices = @transform_19, window_bounds = array<i64: 256, 2>}]} {
    %c0 = arith.constant 0 : index
    %c0_0 = arith.constant 0 : index
    %0 = vector.load %arg1[%c0, %c0_0] : memref<256x40xf32, #tpu.memory_space<vmem>>, vector<256x40xf32>
    %c0_1 = arith.constant 0 : index
    %c0_2 = arith.constant 0 : index
    %1 = vector.load %arg2[%c0_1, %c0_2] : memref<40x512xbf16, #tpu.memory_space<vmem>>, vector<40x512xbf16>
    %2 = arith.truncf %0 : vector<256x40xf32> to vector<256x40xbf16>
    %cst = arith.constant dense<0.000000e+00> : vector<256x512xf32>
    %3 = tpu.matmul %2, %1, %cst {dimension_numbers = #tpu.dot_dimension_numbers<[1], [0], [0], [1], [0, 0, 1, 1], [], []>} : vector<256x40xbf16>, vector<40x512xbf16>, vector<256x512xf32> -> vector<256x512xf32>
    %c0_3 = arith.constant 0 : index
    %c0_4 = arith.constant 0 : index
    %4 = vector.load %arg3[%c0_3, %c0_4] : memref<1x512xf32, #tpu.memory_space<vmem>>, vector<1x512xf32>
    %5 = vector.broadcast %4 : vector<1x512xf32> to vector<256x512xf32>
    %6 = arith.addf %3, %5 : vector<256x512xf32>
    %cst_5 = arith.constant 0.000000e+00 : f32
    %7 = vector.broadcast %cst_5 : f32 to vector<256x512xf32>
    %8 = arith.maximumf %6, %7 : vector<256x512xf32>
    %9 = vector.extract_strided_slice %8 {offsets = [0, 0], sizes = [256, 256], strides = [1, 1]} : vector<256x512xf32> to vector<256x256xf32>
    %c0_6 = arith.constant 0 : index
    %c0_7 = arith.constant 0 : index
    %10 = vector.load %arg4[%c0_6, %c0_7] : memref<256x128xbf16, #tpu.memory_space<vmem>>, vector<256x128xbf16>
    %c0_8 = arith.constant 0 : index
    %c0_9 = arith.constant 0 : index
    %11 = vector.load %arg5[%c0_8, %c0_9] : memref<1x128xf32, #tpu.memory_space<vmem>>, vector<1x128xf32>
    %12 = arith.truncf %9 : vector<256x256xf32> to vector<256x256xbf16>
    %cst_10 = arith.constant dense<0.000000e+00> : vector<256x128xf32>
    %13 = tpu.matmul %12, %10, %cst_10 {dimension_numbers = #tpu.dot_dimension_numbers<[1], [0], [0], [1], [0, 0, 1, 1], [], []>} : vector<256x256xbf16>, vector<256x128xbf16>, vector<256x128xf32> -> vector<256x128xf32>
    %14 = vector.broadcast %11 : vector<1x128xf32> to vector<256x128xf32>
    %15 = arith.addf %13, %14 : vector<256x128xf32>
    %cst_11 = arith.constant 0.000000e+00 : f32
    %16 = vector.broadcast %cst_11 : f32 to vector<256x128xf32>
    %17 = arith.maximumf %15, %16 : vector<256x128xf32>
    %c0_12 = arith.constant 0 : index
    %c0_13 = arith.constant 0 : index
    %18 = vector.load %arg6[%c0_12, %c0_13] : memref<128x64xbf16, #tpu.memory_space<vmem>>, vector<128x64xbf16>
    %c0_14 = arith.constant 0 : index
    %c0_15 = arith.constant 0 : index
    %19 = vector.load %arg7[%c0_14, %c0_15] : memref<1x64xf32, #tpu.memory_space<vmem>>, vector<1x64xf32>
    %20 = arith.truncf %17 : vector<256x128xf32> to vector<256x128xbf16>
    %cst_16 = arith.constant dense<0.000000e+00> : vector<256x64xf32>
    %21 = tpu.matmul %20, %18, %cst_16 {dimension_numbers = #tpu.dot_dimension_numbers<[1], [0], [0], [1], [0, 0, 1, 1], [], []>} : vector<256x128xbf16>, vector<128x64xbf16>, vector<256x64xf32> -> vector<256x64xf32>
    %22 = vector.broadcast %19 : vector<1x64xf32> to vector<256x64xf32>
    %23 = arith.addf %21, %22 : vector<256x64xf32>
    %cst_17 = arith.constant 0.000000e+00 : f32
    %24 = vector.broadcast %cst_17 : f32 to vector<256x64xf32>
    %25 = arith.maximumf %23, %24 : vector<256x64xf32>
    %c0_18 = arith.constant 0 : index
    %c0_19 = arith.constant 0 : index
    %26 = vector.load %arg8[%c0_18, %c0_19] : memref<64x32xbf16, #tpu.memory_space<vmem>>, vector<64x32xbf16>
    %c0_20 = arith.constant 0 : index
    %c0_21 = arith.constant 0 : index
    %27 = vector.load %arg9[%c0_20, %c0_21] : memref<1x32xf32, #tpu.memory_space<vmem>>, vector<1x32xf32>
    %28 = arith.truncf %25 : vector<256x64xf32> to vector<256x64xbf16>
    %cst_22 = arith.constant dense<0.000000e+00> : vector<256x32xf32>
    %29 = tpu.matmul %28, %26, %cst_22 {dimension_numbers = #tpu.dot_dimension_numbers<[1], [0], [0], [1], [0, 0, 1, 1], [], []>} : vector<256x64xbf16>, vector<64x32xbf16>, vector<256x32xf32> -> vector<256x32xf32>
    %30 = vector.broadcast %27 : vector<1x32xf32> to vector<256x32xf32>
    %31 = arith.addf %29, %30 : vector<256x32xf32>
    %cst_23 = arith.constant 0.000000e+00 : f32
    %32 = vector.broadcast %cst_23 : f32 to vector<256x32xf32>
    %33 = arith.maximumf %31, %32 : vector<256x32xf32>
    %c0_24 = arith.constant 0 : index
    %c0_25 = arith.constant 0 : index
    %34 = vector.load %arg10[%c0_24, %c0_25] : memref<1x32xf32, #tpu.memory_space<vmem>>, vector<1x32xf32>
    %c0_26 = arith.constant 0 : index
    %c0_27 = arith.constant 0 : index
    %35 = vector.load %arg11[%c0_26, %c0_27] : memref<1x1xf32, #tpu.memory_space<vmem>>, vector<1x1xf32>
    %36 = vector.broadcast %34 : vector<1x32xf32> to vector<256x32xf32>
    %37 = arith.mulf %33, %36 : vector<256x32xf32>
    %cst_28 = arith.constant dense<0.000000e+00> : vector<256xf32>
    %38 = vector.multi_reduction <add>, %37, %cst_28 [1] : vector<256x32xf32> to vector<256xf32>
    %39 = vector.shape_cast %38 : vector<256xf32> to vector<256x1xf32>
    %40 = vector.broadcast %35 : vector<1x1xf32> to vector<256x1xf32>
    %41 = arith.addf %39, %40 : vector<256x1xf32>
    %42 = arith.negf %41 : vector<256x1xf32>
    %43 = math.exp %42 : vector<256x1xf32>
    %cst_29 = arith.constant 1.000000e+00 : f32
    %44 = vector.broadcast %cst_29 : f32 to vector<256x1xf32>
    %45 = arith.addf %44, %43 : vector<256x1xf32>
    %46 = arith.divf %44, %45 : vector<256x1xf32>
    %47 = vector.extract_strided_slice %8 {offsets = [0, 256], sizes = [256, 256], strides = [1, 1]} : vector<256x512xf32> to vector<256x256xf32>
    %c0_30 = arith.constant 0 : index
    %c0_31 = arith.constant 0 : index
    %48 = vector.load %arg12[%c0_30, %c0_31] : memref<256x128xbf16, #tpu.memory_space<vmem>>, vector<256x128xbf16>
    %c0_32 = arith.constant 0 : index
    %c0_33 = arith.constant 0 : index
    %49 = vector.load %arg13[%c0_32, %c0_33] : memref<1x128xf32, #tpu.memory_space<vmem>>, vector<1x128xf32>
    %50 = arith.truncf %47 : vector<256x256xf32> to vector<256x256xbf16>
    %cst_34 = arith.constant dense<0.000000e+00> : vector<256x128xf32>
    %51 = tpu.matmul %50, %48, %cst_34 {dimension_numbers = #tpu.dot_dimension_numbers<[1], [0], [0], [1], [0, 0, 1, 1], [], []>} : vector<256x256xbf16>, vector<256x128xbf16>, vector<256x128xf32> -> vector<256x128xf32>
    %52 = vector.broadcast %49 : vector<1x128xf32> to vector<256x128xf32>
    %53 = arith.addf %51, %52 : vector<256x128xf32>
    %cst_35 = arith.constant 0.000000e+00 : f32
    %54 = vector.broadcast %cst_35 : f32 to vector<256x128xf32>
    %55 = arith.maximumf %53, %54 : vector<256x128xf32>
    %c0_36 = arith.constant 0 : index
    %c0_37 = arith.constant 0 : index
    %56 = vector.load %arg14[%c0_36, %c0_37] : memref<128x64xbf16, #tpu.memory_space<vmem>>, vector<128x64xbf16>
    %c0_38 = arith.constant 0 : index
    %c0_39 = arith.constant 0 : index
    %57 = vector.load %arg15[%c0_38, %c0_39] : memref<1x64xf32, #tpu.memory_space<vmem>>, vector<1x64xf32>
    %58 = arith.truncf %55 : vector<256x128xf32> to vector<256x128xbf16>
    %cst_40 = arith.constant dense<0.000000e+00> : vector<256x64xf32>
    %59 = tpu.matmul %58, %56, %cst_40 {dimension_numbers = #tpu.dot_dimension_numbers<[1], [0], [0], [1], [0, 0, 1, 1], [], []>} : vector<256x128xbf16>, vector<128x64xbf16>, vector<256x64xf32> -> vector<256x64xf32>
    %60 = vector.broadcast %57 : vector<1x64xf32> to vector<256x64xf32>
    %61 = arith.addf %59, %60 : vector<256x64xf32>
    %cst_41 = arith.constant 0.000000e+00 : f32
    %62 = vector.broadcast %cst_41 : f32 to vector<256x64xf32>
    %63 = arith.maximumf %61, %62 : vector<256x64xf32>
    %c0_42 = arith.constant 0 : index
    %c0_43 = arith.constant 0 : index
    %64 = vector.load %arg16[%c0_42, %c0_43] : memref<64x32xbf16, #tpu.memory_space<vmem>>, vector<64x32xbf16>
    %c0_44 = arith.constant 0 : index
    %c0_45 = arith.constant 0 : index
    %65 = vector.load %arg17[%c0_44, %c0_45] : memref<1x32xf32, #tpu.memory_space<vmem>>, vector<1x32xf32>
    %66 = arith.truncf %63 : vector<256x64xf32> to vector<256x64xbf16>
    %cst_46 = arith.constant dense<0.000000e+00> : vector<256x32xf32>
    %67 = tpu.matmul %66, %64, %cst_46 {dimension_numbers = #tpu.dot_dimension_numbers<[1], [0], [0], [1], [0, 0, 1, 1], [], []>} : vector<256x64xbf16>, vector<64x32xbf16>, vector<256x32xf32> -> vector<256x32xf32>
    %68 = vector.broadcast %65 : vector<1x32xf32> to vector<256x32xf32>
    %69 = arith.addf %67, %68 : vector<256x32xf32>
    %cst_47 = arith.constant 0.000000e+00 : f32
    %70 = vector.broadcast %cst_47 : f32 to vector<256x32xf32>
    %71 = arith.maximumf %69, %70 : vector<256x32xf32>
    %c0_48 = arith.constant 0 : index
    %c0_49 = arith.constant 0 : index
    %72 = vector.load %arg18[%c0_48, %c0_49] : memref<1x32xf32, #tpu.memory_space<vmem>>, vector<1x32xf32>
    %c0_50 = arith.constant 0 : index
    %c0_51 = arith.constant 0 : index
    %73 = vector.load %arg19[%c0_50, %c0_51] : memref<1x1xf32, #tpu.memory_space<vmem>>, vector<1x1xf32>
    %74 = vector.broadcast %72 : vector<1x32xf32> to vector<256x32xf32>
    %75 = arith.mulf %71, %74 : vector<256x32xf32>
    %cst_52 = arith.constant dense<0.000000e+00> : vector<256xf32>
    %76 = vector.multi_reduction <add>, %75, %cst_52 [1] : vector<256x32xf32> to vector<256xf32>
    %77 = vector.shape_cast %76 : vector<256xf32> to vector<256x1xf32>
    %78 = vector.broadcast %73 : vector<1x1xf32> to vector<256x1xf32>
    %79 = arith.addf %77, %78 : vector<256x1xf32>
    %80 = arith.negf %79 : vector<256x1xf32>
    %81 = math.exp %80 : vector<256x1xf32>
    %cst_53 = arith.constant 1.000000e+00 : f32
    %82 = vector.broadcast %cst_53 : f32 to vector<256x1xf32>
    %83 = arith.addf %82, %81 : vector<256x1xf32>
    %84 = arith.divf %82, %83 : vector<256x1xf32>
    %85 = arith.mulf %46, %84 : vector<256x1xf32>
    %86 = tpu.concatenate %46, %85 in 1 : vector<256x1xf32>, vector<256x1xf32> -> vector<256x2xf32>
    %c0_54 = arith.constant 0 : index
    %c0_55 = arith.constant 0 : index
    %87 = vector.load %arg20[%c0_54, %c0_55] : memref<256x2xf32, #tpu.memory_space<vmem>>, vector<256x2xf32>
    tpu.vector_store %arg20[%c0_54, %c0_55], %86 {strides = array<i32>} : memref<256x2xf32, #tpu.memory_space<vmem>>, vector<256x2xf32>,
    return
  }
  func.func @transform_0(%arg0: i32) -> (i32, i32) {
    %c0_i32 = arith.constant 0 : i32
    %c0_i32_0 = arith.constant 0 : i32
    return %arg0, %c0_i32 : i32, i32
  }
  func.func @transform_1(%arg0: i32) -> (i32, i32) {
    %c0_i32 = arith.constant 0 : i32
    %c0_i32_0 = arith.constant 0 : i32
    %c0_i32_1 = arith.constant 0 : i32
    return %c0_i32, %c0_i32_0 : i32, i32
  }
  func.func @transform_2(%arg0: i32) -> (i32, i32) {
    %c0_i32 = arith.constant 0 : i32
    %c0_i32_0 = arith.constant 0 : i32
    %c0_i32_1 = arith.constant 0 : i32
    return %c0_i32, %c0_i32_0 : i32, i32
  }
  func.func @transform_3(%arg0: i32) -> (i32, i32) {
    %c0_i32 = arith.constant 0 : i32
    %c0_i32_0 = arith.constant 0 : i32
    %c0_i32_1 = arith.constant 0 : i32
    return %c0_i32, %c0_i32_0 : i32, i32
  }
  func.func @transform_4(%arg0: i32) -> (i32, i32) {
    %c0_i32 = arith.constant 0 : i32
    %c0_i32_0 = arith.constant 0 : i32
    %c0_i32_1 = arith.constant 0 : i32
    return %c0_i32, %c0_i32_0 : i32, i32
  }
  func.func @transform_5(%arg0: i32) -> (i32, i32) {
    %c0_i32 = arith.constant 0 : i32
    %c0_i32_0 = arith.constant 0 : i32
    %c0_i32_1 = arith.constant 0 : i32
    return %c0_i32, %c0_i32_0 : i32, i32
  }
  func.func @transform_6(%arg0: i32) -> (i32, i32) {
    %c0_i32 = arith.constant 0 : i32
    %c0_i32_0 = arith.constant 0 : i32
    %c0_i32_1 = arith.constant 0 : i32
    return %c0_i32, %c0_i32_0 : i32, i32
  }
  func.func @transform_7(%arg0: i32) -> (i32, i32) {
    %c0_i32 = arith.constant 0 : i32
    %c0_i32_0 = arith.constant 0 : i32
    %c0_i32_1 = arith.constant 0 : i32
    return %c0_i32, %c0_i32_0 : i32, i32
  }
  func.func @transform_8(%arg0: i32) -> (i32, i32) {
    %c0_i32 = arith.constant 0 : i32
    %c0_i32_0 = arith.constant 0 : i32
    %c0_i32_1 = arith.constant 0 : i32
    return %c0_i32, %c0_i32_0 : i32, i32
  }
  func.func @transform_9(%arg0: i32) -> (i32, i32) {
    %c0_i32 = arith.constant 0 : i32
    %c0_i32_0 = arith.constant 0 : i32
    %c0_i32_1 = arith.constant 0 : i32
    return %c0_i32, %c0_i32_0 : i32, i32
  }
  func.func @transform_10(%arg0: i32) -> (i32, i32) {
    %c0_i32 = arith.constant 0 : i32
    %c0_i32_0 = arith.constant 0 : i32
    %c0_i32_1 = arith.constant 0 : i32
    return %c0_i32, %c0_i32_0 : i32, i32
  }
  func.func @transform_11(%arg0: i32) -> (i32, i32) {
    %c0_i32 = arith.constant 0 : i32
    %c0_i32_0 = arith.constant 0 : i32
    %c0_i32_1 = arith.constant 0 : i32
    return %c0_i32, %c0_i32_0 : i32, i32
  }
  func.func @transform_12(%arg0: i32) -> (i32, i32) {
    %c0_i32 = arith.constant 0 : i32
    %c0_i32_0 = arith.constant 0 : i32
    %c0_i32_1 = arith.constant 0 : i32
    return %c0_i32, %c0_i32_0 : i32, i32
  }
  func.func @transform_13(%arg0: i32) -> (i32, i32) {
    %c0_i32 = arith.constant 0 : i32
    %c0_i32_0 = arith.constant 0 : i32
    %c0_i32_1 = arith.constant 0 : i32
    return %c0_i32, %c0_i32_0 : i32, i32
  }
  func.func @transform_14(%arg0: i32) -> (i32, i32) {
    %c0_i32 = arith.constant 0 : i32
    %c0_i32_0 = arith.constant 0 : i32
    %c0_i32_1 = arith.constant 0 : i32
    return %c0_i32, %c0_i32_0 : i32, i32
  }
  func.func @transform_15(%arg0: i32) -> (i32, i32) {
    %c0_i32 = arith.constant 0 : i32
    %c0_i32_0 = arith.constant 0 : i32
    %c0_i32_1 = arith.constant 0 : i32
    return %c0_i32, %c0_i32_0 : i32, i32
  }
  func.func @transform_16(%arg0: i32) -> (i32, i32) {
    %c0_i32 = arith.constant 0 : i32
    %c0_i32_0 = arith.constant 0 : i32
    %c0_i32_1 = arith.constant 0 : i32
    return %c0_i32, %c0_i32_0 : i32, i32
  }
  func.func @transform_17(%arg0: i32) -> (i32, i32) {
    %c0_i32 = arith.constant 0 : i32
    %c0_i32_0 = arith.constant 0 : i32
    %c0_i32_1 = arith.constant 0 : i32
    return %c0_i32, %c0_i32_0 : i32, i32
  }
  func.func @transform_18(%arg0: i32) -> (i32, i32) {
    %c0_i32 = arith.constant 0 : i32
    %c0_i32_0 = arith.constant 0 : i32
    %c0_i32_1 = arith.constant 0 : i32
    return %c0_i32, %c0_i32_0 : i32, i32
  }
  func.func @transform_19(%arg0: i32) -> (i32, i32) {
    %c0_i32 = arith.constant 0 : i32
    %c0_i32_0 = arith.constant 0 : i32
    return %arg0, %c0_i32 : i32, i32
  }
}

</mosaic_0001>

<bundles_post_ra>
// kernel: tpu_custom_call.1
= control target key start
LH: loop header
LB: loop body
LE: loop exit
PB: predicated region body
PF: predicated region fallthrough
CT: control target
= control target key end

     0   :  { %vm246_vm0 = vcmask 1043456   ;;  %v4635_v1 = vmov 0   ;;  %vm197_vm1 = vcmask 326656   ;;  %vm1468_vm2 = vcmask 523264   ;;  %s6304_s1 = inlined_call_operand.vmem [shape: bf16[40,512], index: 1, kind: input, shape index: {}]   ;;  %s6305_s0 = inlined_call_operand.vmem [shape: f32[256,40], index: 0, kind: input, shape index: {}]   ;;  %s6306_s3 = inlined_call_operand.vmem [shape: bf16[256,128], index: 3, kind: input, shape index: {}]   ;;  %s6307_s2 = inlined_call_operand.vmem [shape: f32[1,512], index: 2, kind: input, shape index: {}]   ;;  %s6308_s11 = inlined_call_operand.vmem [shape: bf16[256,128], index: 11, kind: input, shape index: {}]   ;;  %s6309_s5 = inlined_call_operand.vmem [shape: bf16[128,64], index: 5, kind: input, shape index: {}]   ;;  %s6310_s4 = inlined_call_operand.vmem [shape: f32[1,128], index: 4, kind: input, shape index: {}]   ;;  %s6311_s7 = inlined_call_operand.vmem [shape: bf16[64,32], index: 7, kind: input, shape index: {}]   ;;  %s6312_s13 = inlined_call_operand.vmem [shape: bf16[128,64], index: 13, kind: input, shape index: {}]   ;;  %s6313_s6 = inlined_call_operand.vmem [shape: f32[1,64], index: 6, kind: input, shape index: {}]   ;;  %s6314_s12 = inlined_call_operand.vmem [shape: f32[1,128], index: 12, kind: input, shape index: {}]   ;;  %s6315_s15 = inlined_call_operand.vmem [shape: bf16[64,32], index: 15, kind: input, shape index: {}]   ;;  %s6316_s8 = inlined_call_operand.vmem [shape: f32[1,32], index: 8, kind: input, shape index: {}]   ;;  %s6317_s9 = inlined_call_operand.vmem [shape: f32[1,32], index: 9, kind: input, shape index: {}]   ;;  %s6318_s10 = inlined_call_operand.<no memory space> [shape: f32[1,1], index: 10, kind: input, shape index: {}]   ;;  %s6319_s14 = inlined_call_operand.vmem [shape: f32[1,64], index: 14, kind: input, shape index: {}]   ;;  %s6320_s18 = inlined_call_operand.<no memory space> [shape: f32[1,1], index: 18, kind: input, shape index: {}]   ;;  %s6321_s16 = inlined_call_operand.vmem [shape: f32[1,32], index: 16, kind: input, shape index: {}]   ;;  %s6322_s17 = inlined_call_operand.vmem [shape: f32[1,32], index: 17, kind: input, shape index: {}]   ;;  %s6323_s19 = inlined_call_operand.vmem [shape: f32[256,2], index: 19, kind: output, shape index: {}]  }
   0x1   :  { %6327 = sst [smem:[#allocation5_spill]] %s6304_s1  ;;  %291 = vmatprep.mubr.bf16.mxu0 %v4635_v1  ;;  %484 = vmatprep.mubr.bf16.mxu1 %v4635_v1  ;;  %vm1750_vm3 = vcmask 261120   ;;  %vm3539_vm4 = vcmask 7168   ;;  %vm3572_vm5 = vcmask 15360  }
   0x2   :  { %6328 = sst [smem:[#allocation6_spill]] %s6305_s0 }
   0x3   :  { %6329 = sst [smem:[#allocation7_spill]] %s6306_s3 }
   0x4   :  { %6330 = sst [smem:[#allocation8_spill]] %s6307_s2 }
   0x5   :  { %s6331_s20 = sld [smem:[#allocation5_spill]] }
   0x6   :  { %s6332_s28 = sld [smem:[#allocation6_spill]] }
   0x7   :  { %s6333_s0 = sld [smem:[#allocation7_spill]] }
   0x8   :  { %s6334_s22 = sld [smem:[#allocation8_spill]] }
   0xb   :  { %v107_v0 = vld [vmem:[%s6331_s20 + $0x40] sm:$0xff] }
   0xc   :  { %v3618_v2 = vcombine.high %v107_v0, %v107_v0  ;;  %v3617_v3 = vcombine.low %v107_v0, %v107_v0  ;;  %v4309_v4 = vld [vmem:[%s6331_s20 + $0x24] ss:$16 sps:$4 sm:$0xff]   ;;  %v4311_v6 = vld [vmem:[%s6331_s20 + $0x20] ss:$16 sps:$4 sm:$0xff]   ;;  %v68_v10 = vld [vmem:[%s6332_s28 + $0x8] sm:$0xff] }
   0xd   :  { %v4312_v7 = vld [vmem:[%s6331_s20 + $0x4] ss:$16 sps:$4 sm:$0xff]   ;;  %v4314_v8 = vld [vmem:[%s6331_s20] ss:$16 sps:$4 sm:$0xff]   ;;  %v4315_v11 = vld [vmem:[%s6333_s0 + $0x78] sm:$0xff]  }
   0xe   :  { %3621 = vmatprep.subr.msk.bf16.mxu0 %vm246_vm0, %v3618_v2  ;;  %v248_v5 = vsel %vm246_vm0, %v3617_v3, 0  ;;  %v67_v9 = vld [vmem:[%s6332_s28] sm:$0xff]  ;;  %v4316_v13 = vld [vmem:[%s6333_s0 + $0x38] sm:$0xff]   ;;  %v4317_v14 = vld [vmem:[%s6333_s0 + $0x70] sm:$0xff]  }
   0xf   :  { %270 = vmatpush1.bf16.msra.mxu0 %v248_v5  ;;  %v4765_v12 = vpack.c.bf16 %v68_v10, %v67_v9  ;;  %v69_v15 = vld [vmem:[%s6332_s28 + $0x10] sm:$0xff]  ;;  %v70_v16 = vld [vmem:[%s6332_s28 + $0x18] sm:$0xff]  ;;  %v4319_v18 = vld [vmem:[%s6333_s0 + $0x68] sm:$0xff]  }
  0x10   :  { %271 = vmatprep.subr.bf16.mxu0 %v4309_v4  ;;  %v4318_v17 = vld [vmem:[%s6333_s0 + $0x30] sm:$0xff]   ;;  %v4788_v19 = vpack.c.bf16 %v70_v16, %v69_v15  ;;  %v4320_v20 = vld [vmem:[%s6333_s0 + $0x28] sm:$0xff]   ;;  %v4321_v21 = vld [vmem:[%s6333_s0 + $0x60] sm:$0xff]  }
  0x11   :  { %v71_v22 = vld [vmem:[%s6332_s28 + $0x20] sm:$0xff]  ;;  %v72_v23 = vld [vmem:[%s6332_s28 + $0x28] sm:$0xff]  ;;  %v4323_v25 = vld [vmem:[%s6333_s0 + $0x58] sm:$0xff]  }
  0x12   :  { %v4322_v24 = vld [vmem:[%s6333_s0 + $0x20] sm:$0xff]   ;;  %v4811_v26 = vpack.c.bf16 %v72_v23, %v71_v22  ;;  %v4324_v27 = vld [vmem:[%s6333_s0 + $0x18] sm:$0xff]   ;;  %v4325_v28 = vld [vmem:[%s6333_s0 + $0x50] sm:$0xff]  }
  0x13   :  { %272 = vmatpush1.bf16.msra.mxu0 %v4311_v6  ;;  %v73_v29 = vld [vmem:[%s6332_s28 + $0x30] sm:$0xff]  ;;  %v74_v30 = vld [vmem:[%s6332_s28 + $0x38] sm:$0xff]  ;;  %v4327_v32 = vld [vmem:[%s6333_s0 + $0x48] sm:$0xff]  }
  0x14   :  { %273 = vmatprep.subr.bf16.mxu0 %v4312_v7  ;;  %v4326_v31 = vld [vmem:[%s6333_s0 + $0x10] sm:$0xff]   ;;  %v4834_v33 = vpack.c.bf16 %v74_v30, %v73_v29  ;;  %v4328_v34 = vld [vmem:[%s6333_s0 + $0x8] sm:$0xff]   ;;  %v4329_v35 = vld [vmem:[%s6333_s0 + $0x40] sm:$0xff]  }
  0x15   :  { %v75_v36 = vld [vmem:[%s6332_s28 + $0x40] sm:$0xff]  ;;  %v76_v37 = vld [vmem:[%s6332_s28 + $0x48] sm:$0xff]  ;;  %v77_v40 = vld [vmem:[%s6332_s28 + $0x50] sm:$0xff] }
  0x16   :  { %v4330_v38 = vld [vmem:[%s6333_s0] sm:$0xff]   ;;  %v4854_v39 = vpack.c.bf16 %v76_v37, %v75_v36  ;;  %v78_v41 = vld [vmem:[%s6332_s28 + $0x58] sm:$0xff]  ;;  %v80_v44 = vld [vmem:[%s6332_s28 + $0x68] sm:$0xff] }
  0x17   :  { %274 = vmatpush1.bf16.msra.mxu0 %v4314_v8  ;;  %v4865_v42 = vpack.c.bf16 %v78_v41, %v77_v40  ;;  %v79_v43 = vld [vmem:[%s6332_s28 + $0x60] sm:$0xff]  ;;  %v81_v46 = vld [vmem:[%s6332_s28 + $0x70] sm:$0xff]  ;;  %v82_v47 = vld [vmem:[%s6332_s28 + $0x78] sm:$0xff] }
  0x18   :  { %3817 = vmatprep.subr.bf16.mxu0 %v4315_v11  ;;  %v4876_v45 = vpack.c.bf16 %v80_v44, %v79_v43  ;;  %v4887_v48 = vpack.c.bf16 %v82_v47, %v81_v46  ;;  %v83_v49 = vld [vmem:[%s6332_s28 + $0x80] sm:$0xff]  ;;  %v84_v50 = vld [vmem:[%s6332_s28 + $0x88] sm:$0xff]  ;;  %v85_v52 = vld [vmem:[%s6332_s28 + $0x90] sm:$0xff] }
  0x19   :  { %v4898_v51 = vpack.c.bf16 %v84_v50, %v83_v49  ;;  %v86_v53 = vld [vmem:[%s6332_s28 + $0x98] sm:$0xff]  ;;  %v87_v55 = vld [vmem:[%s6332_s28 + $0xa0] sm:$0xff]  ;;  %v88_v56 = vld [vmem:[%s6332_s28 + $0xa8] sm:$0xff] }
  0x1a   :  { %3622 = vmatmul.mubr.msk.bf16.vlgmr.msra.gmra.mxu0 %vm197_vm1, %v4765_v12  ;;  %v4909_v54 = vpack.c.bf16 %v86_v53, %v85_v52  ;;  %v4920_v57 = vpack.c.bf16 %v88_v56, %v87_v55  ;;  %v89_v58 = vld [vmem:[%s6332_s28 + $0xb0] sm:$0xff]  ;;  %v90_v59 = vld [vmem:[%s6332_s28 + $0xb8] sm:$0xff]  ;;  %v91_v61 = vld [vmem:[%s6332_s28 + $0xc0] sm:$0xff] }
  0x1b   :  { %301 = vmatprep.mubr.bf16.mxu0 %v4635_v1  ;;  %3818 = vmatpush3.bf16.msra.mxu0 %v4316_v13  ;;  %v4931_v60 = vpack.c.bf16 %v90_v59, %v89_v58  ;;  %v92_v62 = vld [vmem:[%s6332_s28 + $0xc8] sm:$0xff]  ;;  %v93_v0 = vld [vmem:[%s6332_s28 + $0xd0] sm:$0xff]  ;;  %v94_v2 = vld [vmem:[%s6332_s28 + $0xd8] sm:$0xff] }
  0x1c   :  { %3819 = vmatprep.subr.bf16.mxu0 %v4317_v14  ;;  %v4942_v63 = vpack.c.bf16 %v92_v62, %v91_v61  ;;  %v4953_v3 = vpack.c.bf16 %v94_v2, %v93_v0  ;;  %v95_v4 = vld [vmem:[%s6332_s28 + $0xe0] sm:$0xff]  ;;  %v96_v5 = vld [vmem:[%s6332_s28 + $0xe8] sm:$0xff]  ;;  %v97_v7 = vld [vmem:[%s6332_s28 + $0xf0] sm:$0xff] }
  0x1d   :  { %v4964_v6 = vpack.c.bf16 %v96_v5, %v95_v4  ;;  %v98_v8 = vld [vmem:[%s6332_s28 + $0xf8] sm:$0xff]  ;;  %v108_v9 = vld [vmem:[%s6331_s20 + $0x48] sm:$0xff]  ;;  %v5027_v22 = vld [vmem:[%s6334_s22] sm:$0xf] }
  0x1e   :  { %v3620_v10 = vcombine.high %v108_v9, %v108_v9  ;;  %v3619_v11 = vcombine.low %v108_v9, %v108_v9  ;;  %v4978_v13 = vpack.c.bf16 %v98_v8, %v97_v7  ;;  %v4333_v15 = vld [vmem:[%s6331_s20 + $0x2c] ss:$16 sps:$4 sm:$0xff]   ;;  %v4335_v16 = vld [vmem:[%s6331_s20 + $0x28] ss:$16 sps:$4 sm:$0xff]   ;;  %v4343_v44 = vld [vmem:[%s6309_s5 + $0x30] sm:$0xff]  }
  0x1f   :  { %3820 = vmatpush3.bf16.msra.mxu0 %v4318_v17  ;;  %v4336_v17 = vld [vmem:[%s6331_s20 + $0xc] ss:$16 sps:$4 sm:$0xff]   ;;  %v4342_v47 = vld [vmem:[%s6308_s11 + $0x70] sm:$0xff]   ;;  %v4349_v61 = vld [vmem:[%s6309_s5 + $0x20] sm:$0xff]  }
  0x20   :  { %3821 = vmatprep.subr.bf16.mxu0 %v4319_v18  ;;  %3638 = vmatprep.subr.msk.bf16.mxu1 %vm246_vm0, %v3620_v10  ;;  %v254_v14 = vsel %vm246_vm0, %v3619_v11, 0  ;;  %v4338_v18 = vld [vmem:[%s6331_s20 + $0x8] ss:$16 sps:$4 sm:$0xff]   ;;  %v4350_v11 = vld [vmem:[%s6308_s11 + $0x20] sm:$0xff]  }
  0x21   :  { %463 = vmatpush1.bf16.msra.mxu1 %v254_v14  ;;  %v4340_v36 = vld [vmem:[%s6309_s5 + $0x38] sm:$0xff]   ;;  %v4345_v58 = vld [vmem:[%s6308_s11 + $0x68] sm:$0xff]  }
  0x22   :  { %3623 = vmatmul.mubr.msk.bf16.gmra.mxu0 %vm197_vm1, %v4788_v19  ;;  %464 = vmatprep.subr.bf16.mxu1 %v4333_v15  ;;  %v4341_v41 = vld [vmem:[%s6308_s11 + $0x38] sm:$0xff]   ;;  %v4347_v2 = vld [vmem:[%s6308_s11 + $0x28] sm:$0xff]  }
  0x23   :  { %311 = vmatprep.mubr.bf16.mxu0 %v4635_v1  ;;  %3822 = vmatpush3.bf16.msra.mxu0 %v4320_v20 }
  0x24   :  { %3823 = vmatprep.subr.bf16.mxu0 %v4321_v21 }
  0x25   :  { %465 = vmatpush1.bf16.msra.mxu1 %v4335_v16 }
  0x26   :  { %466 = vmatprep.subr.bf16.mxu1 %v4336_v17 }
  0x27   :  { %3824 = vmatpush3.bf16.msra.mxu0 %v4322_v24 }
  0x28   :  { %3825 = vmatprep.subr.bf16.mxu0 %v4323_v25 }
  0x29   :  { %467 = vmatpush1.bf16.msra.mxu1 %v4338_v18 }
  0x2a   :  { %3624 = vmatmul.mubr.msk.bf16.gmra.mxu0 %vm197_vm1, %v4811_v26  ;;  %4129 = vmatprep.subr.bf16.mxu1 %v4340_v36 }
  0x2b   :  { %321 = vmatprep.mubr.bf16.mxu0 %v4635_v1  ;;  %3826 = vmatpush3.bf16.msra.mxu0 %v4324_v27 }
  0x2c   :  { %3827 = vmatprep.subr.bf16.mxu0 %v4325_v28  ;;  %3639 = vmatmul.mubr.msk.bf16.vlgmr.msra.gmra.mxu1 %vm197_vm1, %v4765_v12  ;;  %v127_v12 = vlaneseq }
  0x2d   :  { %494 = vmatprep.mubr.bf16.mxu1 %v4635_v1  ;;  %4130 = vmatpush3.bf16.msra.mxu1 %v4340_v36 }
  0x2e   :  { %4131 = vmatprep.subr.bf16.mxu1 %v4343_v44 }
  0x2f   :  { %3828 = vmatpush3.bf16.msra.mxu0 %v4326_v31 }
  0x30   :  { %3829 = vmatprep.subr.bf16.mxu0 %v4327_v32 }
  0x31   :  { %4132 = vmatpush3.bf16.msra.mxu1 %v4343_v44 }
  0x32   :  { %3625 = vmatmul.mubr.msk.bf16.gmra.mxu0 %vm197_vm1, %v4834_v33 }
  0x33   :  { %331 = vmatprep.mubr.bf16.mxu0 %v4635_v1  ;;  %3830 = vmatpush3.bf16.msra.mxu0 %v4328_v34 }
  0x34   :  { %3831 = vmatprep.subr.bf16.mxu0 %v4329_v35  ;;  %3640 = vmatmul.mubr.msk.bf16.gmra.mxu1 %vm197_vm1, %v4788_v19  ;;  %v5019_v19 = vshrl.u32 %v127_v12, 7 }
  0x35   :  { %504 = vmatprep.mubr.bf16.mxu1 %v4635_v1 }
  0x36   :  { %v133_v20 = vsub.s32 1, %v5019_v19  ;;  %v129_v21 = vsub.s32 0, %v5019_v19 }
  0x37   :  { %3832 = vmatpush3.bf16.msra.mxu0 %v4330_v38 }
  0x38   :  { %v5030_v24 = vrot.slane %v5027_v22, %v133_v20  ;;  %v5035_v25 = vrot.slane %v5027_v22, %v129_v21 }
  0x3a   :  { %3626 = vmatmul.mubr.msk.bf16.gmra.mxu0 %vm197_vm1, %v4854_v39 }
  0x3b   :  { %341 = vmatprep.mubr.bf16.mxu0 %v4635_v1 }
  0x3c   :  { %3641 = vmatmul.mubr.msk.bf16.gmra.mxu1 %vm197_vm1, %v4811_v26 }
  0x3d   :  { %514 = vmatprep.mubr.bf16.mxu1 %v4635_v1 }
  0x42   :  { %3627 = vmatmul.mubr.msk.bf16.gmra.mxu0 %vm197_vm1, %v4865_v42 }
  0x43   :  { %351 = vmatprep.mubr.bf16.mxu0 %v4635_v1 }
  0x44   :  { %3642 = vmatmul.mubr.msk.bf16.gmra.mxu1 %vm197_vm1, %v4834_v33  ;;  %v4339_v33 = vld [vmem:[%s6308_s11 + $0x78] sm:$0xff]  }
  0x45   :  { %524 = vmatprep.mubr.bf16.mxu1 %v4635_v1  ;;  %3973 = vmatprep.subr.bf16.mxu0 %v4339_v33 }
  0x4a   :  { %3628 = vmatmul.mubr.msk.bf16.gmra.mxu0 %vm197_vm1, %v4876_v45 }
  0x4b   :  { %361 = vmatprep.mubr.bf16.mxu0 %v4635_v1 }
  0x4c   :  { %3643 = vmatmul.mubr.msk.bf16.gmra.mxu1 %vm197_vm1, %v4854_v39 }
  0x4d   :  { %534 = vmatprep.mubr.bf16.mxu1 %v4635_v1 }
  0x52   :  { %3629 = vmatmul.mubr.msk.bf16.gmra.mxu0 %vm197_vm1, %v4887_v48 }
  0x53   :  { %371 = vmatprep.mubr.bf16.mxu0 %v4635_v1 }
  0x54   :  { %3644 = vmatmul.mubr.msk.bf16.gmra.mxu1 %vm197_vm1, %v4865_v42 }
  0x55   :  { %544 = vmatprep.mubr.bf16.mxu1 %v4635_v1 }
  0x5a   :  { %3630 = vmatmul.mubr.msk.bf16.gmra.mxu0 %vm197_vm1, %v4898_v51 }
  0x5b   :  { %381 = vmatprep.mubr.bf16.mxu0 %v4635_v1 }
  0x5c   :  { %3645 = vmatmul.mubr.msk.bf16.gmra.mxu1 %vm197_vm1, %v4876_v45 }
  0x5d   :  { %554 = vmatprep.mubr.bf16.mxu1 %v4635_v1 }
  0x62   :  { %3631 = vmatmul.mubr.msk.bf16.gmra.mxu0 %vm197_vm1, %v4909_v54 }
  0x63   :  { %391 = vmatprep.mubr.bf16.mxu0 %v4635_v1 }
  0x64   :  { %3646 = vmatmul.mubr.msk.bf16.gmra.mxu1 %vm197_vm1, %v4887_v48 }
  0x65   :  { %564 = vmatprep.mubr.bf16.mxu1 %v4635_v1 }
  0x6a   :  { %3632 = vmatmul.mubr.msk.bf16.gmra.mxu0 %vm197_vm1, %v4920_v57 }
  0x6b   :  { %401 = vmatprep.mubr.bf16.mxu0 %v4635_v1 }
  0x6c   :  { %3647 = vmatmul.mubr.msk.bf16.gmra.mxu1 %vm197_vm1, %v4898_v51  ;;  %v4346_v51 = vld [vmem:[%s6309_s5 + $0x28] sm:$0xff]  }
  0x6d   :  { %574 = vmatprep.mubr.bf16.mxu1 %v4635_v1  ;;  %4133 = vmatprep.subr.bf16.mxu1 %v4346_v51 }
  0x6e   :  { %4134 = vmatpush3.bf16.msra.mxu1 %v4346_v51 }
  0x6f   :  { %4135 = vmatprep.subr.bf16.mxu1 %v4349_v61 }
  0x72   :  { %3633 = vmatmul.mubr.msk.bf16.gmra.mxu0 %vm197_vm1, %v4931_v60  ;;  %4136 = vmatpush3.bf16.msra.mxu1 %v4349_v61 }
  0x73   :  { %411 = vmatprep.mubr.bf16.mxu0 %v4635_v1 }
  0x74   :  { %3648 = vmatmul.mubr.msk.bf16.gmra.mxu1 %vm197_vm1, %v4909_v54  ;;  %v4344_v54 = vld [vmem:[%s6308_s11 + $0x30] sm:$0xff]  }
  0x75   :  { %584 = vmatprep.mubr.bf16.mxu1 %v4635_v1 }
  0x7a   :  { %3634 = vmatmul.mubr.msk.bf16.gmra.mxu0 %vm197_vm1, %v4942_v63 }
  0x7b   :  { %421 = vmatprep.mubr.bf16.mxu0 %v4635_v1 }
  0x7c   :  { %3649 = vmatmul.mubr.msk.bf16.gmra.mxu1 %vm197_vm1, %v4920_v57  ;;  %v4348_v57 = vld [vmem:[%s6308_s11 + $0x60] sm:$0xff]  }
  0x7d   :  { %594 = vmatprep.mubr.bf16.mxu1 %v4635_v1 }
  0x82   :  { %3635 = vmatmul.mubr.msk.bf16.gmra.mxu0 %vm197_vm1, %v4953_v3 }
  0x83   :  { %431 = vmatprep.mubr.bf16.mxu0 %v4635_v1 }
  0x84   :  { %3650 = vmatmul.mubr.msk.bf16.gmra.mxu1 %vm197_vm1, %v4931_v60 }
  0x85   :  { %604 = vmatprep.mubr.bf16.mxu1 %v4635_v1 }
  0x8a   :  { %3636 = vmatmul.mubr.msk.bf16.gmra.mxu0 %vm197_vm1, %v4964_v6 }
  0x8b   :  { %441 = vmatprep.mubr.bf16.mxu0 %v4635_v1 }
  0x8c   :  { %3651 = vmatmul.mubr.msk.bf16.gmra.mxu1 %vm197_vm1, %v4942_v63 }
  0x8d   :  { %614 = vmatprep.mubr.bf16.mxu1 %v4635_v1 }
  0x92   :  { %3637 = vmatmul.mubr.msk.bf16.gmra.mxu0 %vm197_vm1, %v4978_v13 }
  0x94   :  { %3652 = vmatmul.mubr.msk.bf16.gmra.mxu1 %vm197_vm1, %v4953_v3 }
  0x95   :  { %624 = vmatprep.mubr.bf16.mxu1 %v4635_v1 }
  0x9c   :  { %3653 = vmatmul.mubr.msk.bf16.gmra.mxu1 %vm197_vm1, %v4964_v6 }
  0x9d   :  { %634 = vmatprep.mubr.bf16.mxu1 %v4635_v1 }
  0xa4   :  { %3654 = vmatmul.mubr.msk.bf16.gmra.mxu1 %vm197_vm1, %v4978_v13 }
  0xda   :  { %v293_v23 = vpop.f32.mrf.mxu0 }
  0xdb   :  { %v294_v30 = vadd.f32 %v293_v23, %v5035_v25 }
  0xdc   :  { %v295_v26 = vpop.f32.mrf.mxu0 }
  0xdd   :  { %v296_v28 = vadd.f32 %v295_v26, %v5030_v24  ;;  %v645_v39 = vmax.f32 %v294_v30, 0.0 }
  0xde   :  { %v297_v27 = vpop.f32.mrf.mxu0 }
  0xdf   :  { %v298_v29 = vadd.f32 %v297_v27, %v5035_v25  ;;  %v646_v37 = vmax.f32 %v296_v28, 0.0 }
  0xe0   :  { %v299_v31 = vpop.f32.mrf.mxu0 }
  0xe1   :  { %v300_v32 = vadd.f32 %v299_v31, %v5030_v24  ;;  %v649_v34 = vmax.f32 %v298_v29, 0.0 }
  0xe2   :  { %v303_v35 = vpop.f32.mrf.mxu0 }
  0xe3   :  { %v650_v38 = vmax.f32 %v300_v32, 0.0  ;;  %v806_v45 = vpack.c.bf16 %v649_v34, %v645_v39  ;;  %v304_v49 = vadd.f32 %v303_v35, %v5035_v25 }
  0xe4   :  { %v305_v40 = vpop.f32.mrf.mxu0 }
  0xe5   :  { %v306_v42 = vadd.f32 %v305_v40, %v5030_v24  ;;  %v807_v43 = vpack.c.bf16 %v650_v38, %v646_v37  ;;  %v653_v62 = vmax.f32 %v304_v49, 0.0 }
  0xe6   :  { %v307_v46 = vpop.f32.mrf.mxu0 }
  0xe7   :  { %v308_v48 = vadd.f32 %v307_v46, %v5035_v25  ;;  %972 = vmatprep.mubr.bf16.mxu0 %v807_v43  ;;  %v654_v52 = vmax.f32 %v306_v42, 0.0 }
  0xe8   :  { %v309_v50 = vpop.f32.mrf.mxu0  ;;  %973 = vmatmul.mubr.bf16.vlgmr.msra.gmra.mxu0 %v806_v45 }
  0xe9   :  { %v310_v53 = vadd.f32 %v309_v50, %v5030_v24  ;;  %3974 = vmatpush3.bf16.msra.mxu0 %v4341_v41  ;;  %v657_v55 = vmax.f32 %v308_v48, 0.0 }
  0xea   :  { %v313_v56 = vpop.f32.mrf.mxu0  ;;  %3975 = vmatprep.subr.bf16.mxu0 %v4342_v47 }
  0xeb   :  { %v658_v59 = vmax.f32 %v310_v53, 0.0  ;;  %v314_v4 = vadd.f32 %v313_v56, %v5035_v25  ;;  %v808_v7 = vpack.c.bf16 %v657_v55, %v653_v62 }
  0xec   :  { %v315_v0 = vpop.f32.mrf.mxu0 }
  0xed   :  { %v809_v5 = vpack.c.bf16 %v658_v59, %v654_v52  ;;  %3976 = vmatpush3.bf16.msra.mxu0 %v4344_v54  ;;  %v316_v9 = vadd.f32 %v315_v0, %v5030_v24  ;;  %v661_v15 = vmax.f32 %v314_v4, 0.0 }
  0xee   :  { %v317_v8 = vpop.f32.mrf.mxu0  ;;  %3977 = vmatprep.subr.bf16.mxu0 %v4345_v58 }
  0xef   :  { %v318_v10 = vadd.f32 %v317_v8, %v5035_v25  ;;  %980 = vmatprep.mubr.bf16.mxu0 %v809_v5  ;;  %v662_v12 = vmax.f32 %v316_v9, 0.0 }
  0xf0   :  { %v319_v14 = vpop.f32.mrf.mxu0  ;;  %981 = vmatmul.mubr.bf16.gmra.mxu0 %v808_v7 }
  0xf1   :  { %v665_v16 = vmax.f32 %v318_v10, 0.0  ;;  %v320_v17 = vadd.f32 %v319_v14, %v5030_v24  ;;  %3978 = vmatpush3.bf16.msra.mxu0 %v4347_v2 }
  0xf2   :  { %v323_v18 = vpop.f32.mrf.mxu0  ;;  %3979 = vmatprep.subr.bf16.mxu0 %v4348_v57 }
  0xf3   :  { %v666_v20 = vmax.f32 %v320_v17, 0.0  ;;  %v810_v26 = vpack.c.bf16 %v665_v16, %v661_v15  ;;  %v324_v30 = vadd.f32 %v323_v18, %v5035_v25 }
  0xf4   :  { %v325_v21 = vpop.f32.mrf.mxu0 }
  0xf5   :  { %v811_v23 = vpack.c.bf16 %v666_v20, %v662_v12  ;;  %3980 = vmatpush3.bf16.msra.mxu0 %v4350_v11  ;;  %v326_v28 = vadd.f32 %v325_v21, %v5030_v24  ;;  %v669_v36 = vmax.f32 %v324_v30, 0.0 }
  0xf6   :  { %v327_v27 = vpop.f32.mrf.mxu0 }
  0xf7   :  { %v328_v29 = vadd.f32 %v327_v27, %v5035_v25  ;;  %988 = vmatprep.mubr.bf16.mxu0 %v811_v23  ;;  %v670_v34 = vmax.f32 %v326_v28, 0.0 }
  0xf8   :  { %v329_v31 = vpop.f32.mrf.mxu0  ;;  %989 = vmatmul.mubr.bf16.gmra.mxu0 %v810_v26 }
  0xf9   :  { %v330_v32 = vadd.f32 %v329_v31, %v5030_v24  ;;  %v673_v33 = vmax.f32 %v328_v29, 0.0 }
  0xfa   :  { %v333_v60 = vpop.f32.mrf.mxu0 }
  0xfb   :  { %v674_v35 = vmax.f32 %v330_v32, 0.0  ;;  %v812_v39 = vpack.c.bf16 %v673_v33, %v669_v36  ;;  %v334_v43 = vadd.f32 %v333_v60, %v5035_v25 }
  0xfc   :  { %v335_v37 = vpop.f32.mrf.mxu0 }
  0xfd   :  { %v813_v38 = vpack.c.bf16 %v674_v35, %v670_v34  ;;  %v336_v41 = vadd.f32 %v335_v37, %v5030_v24  ;;  %v677_v49 = vmax.f32 %v334_v43, 0.0 }
  0xfe   :  { %v337_v40 = vpop.f32.mrf.mxu0 }
  0xff   :  { %v338_v42 = vadd.f32 %v337_v40, %v5035_v25  ;;  %996 = vmatprep.mubr.bf16.mxu0 %v813_v38  ;;  %v678_v47 = vmax.f32 %v336_v41, 0.0 }
 0x100   :  { %v339_v44 = vpop.f32.mrf.mxu0  ;;  %997 = vmatmul.mubr.bf16.gmra.mxu0 %v812_v39 }
 0x101   :  { %v340_v45 = vadd.f32 %v339_v44, %v5030_v24  ;;  %v681_v46 = vmax.f32 %v338_v42, 0.0 }
 0x102   :  { %v343_v63 = vpop.f32.mrf.mxu0 }
 0x103   :  { %v682_v48 = vmax.f32 %v340_v45, 0.0  ;;  %v814_v52 = vpack.c.bf16 %v681_v46, %v677_v49  ;;  %v344_v56 = vadd.f32 %v343_v63, %v5035_v25 }
 0x104   :  { %v345_v50 = vpop.f32.mrf.mxu0 }
 0x105   :  { %v815_v51 = vpack.c.bf16 %v682_v48, %v678_v47  ;;  %v346_v54 = vadd.f32 %v345_v50, %v5030_v24  ;;  %v685_v2 = vmax.f32 %v344_v56, 0.0 }
 0x106   :  { %v347_v53 = vpop.f32.mrf.mxu0 }
 0x107   :  { %v348_v55 = vadd.f32 %v347_v53, %v5035_v25  ;;  %1004 = vmatprep.mubr.bf16.mxu0 %v815_v51  ;;  %v686_v62 = vmax.f32 %v346_v54, 0.0 }
 0x108   :  { %v349_v58 = vpop.f32.mrf.mxu0  ;;  %1005 = vmatmul.mubr.bf16.gmra.mxu0 %v814_v52 }
 0x109   :  { %v350_v59 = vadd.f32 %v349_v58, %v5030_v24  ;;  %v689_v61 = vmax.f32 %v348_v55, 0.0 }
 0x10a   :  { %v353_v3 = vpop.f32.mrf.mxu0 }
 0x10b   :  { %v690_v0 = vmax.f32 %v350_v59, 0.0  ;;  %v816_v57 = vpack.c.bf16 %v689_v61, %v685_v2  ;;  %v354_v10 = vadd.f32 %v353_v3, %v5035_v25 }
 0x10c   :  { %v355_v4 = vpop.f32.mrf.mxu0 }
 0x10d   :  { %v817_v5 = vpack.c.bf16 %v690_v0, %v686_v62  ;;  %v356_v8 = vadd.f32 %v355_v4, %v5030_v24  ;;  %v693_v1 = vmax.f32 %v354_v10, 0.0  ;;  %v4351_v0 = vld [vmem:[%s6309_s5 + $0x18] sm:$0xff]   ;;  %v4352_v10 = vld [vmem:[%s6309_s5 + $0x10] sm:$0xff]  }
 0x10e   :  { %v357_v7 = vpop.f32.mrf.mxu0  ;;  %4137 = vmatprep.subr.bf16.mxu1 %v4351_v0 }
 0x10f   :  { %v358_v9 = vadd.f32 %v357_v7, %v5035_v25  ;;  %1012 = vmatprep.mubr.bf16.mxu0 %v817_v5  ;;  %v694_v16 = vmax.f32 %v356_v8, 0.0  ;;  %4138 = vmatpush3.bf16.msra.mxu1 %v4351_v0  ;;  %v4358_v0 = vld [vmem:[%s6308_s11 + $0x10] sm:$0xff]  }
 0x110   :  { %v359_v11 = vpop.f32.mrf.mxu0  ;;  %1013 = vmatmul.mubr.bf16.gmra.mxu0 %v816_v57  ;;  %4139 = vmatprep.subr.bf16.mxu1 %v4352_v10 }
 0x111   :  { %v360_v14 = vadd.f32 %v359_v11, %v5030_v24  ;;  %v697_v15 = vmax.f32 %v358_v9, 0.0 }
 0x112   :  { %v363_v6 = vpop.f32.mrf.mxu0 }
 0x113   :  { %v698_v17 = vmax.f32 %v360_v14, 0.0  ;;  %v818_v20 = vpack.c.bf16 %v697_v15, %v693_v1  ;;  %v364_v27 = vadd.f32 %v363_v6, %v5035_v25  ;;  %4140 = vmatpush3.bf16.msra.mxu1 %v4352_v10 }
 0x114   :  { %v365_v18 = vpop.f32.mrf.mxu0 }
 0x115   :  { %v819_v12 = vpack.c.bf16 %v698_v17, %v694_v16  ;;  %v366_v23 = vadd.f32 %v365_v18, %v5030_v24  ;;  %v701_v33 = vmax.f32 %v364_v27, 0.0  ;;  %v4355_v18 = vld [vmem:[%s6309_s5 + $0x8] sm:$0xff]  }
 0x116   :  { %v367_v21 = vpop.f32.mrf.mxu0  ;;  %4141 = vmatprep.subr.bf16.mxu1 %v4355_v18 }
 0x117   :  { %v368_v26 = vadd.f32 %v367_v21, %v5035_v25  ;;  %1020 = vmatprep.mubr.bf16.mxu0 %v819_v12  ;;  %v702_v32 = vmax.f32 %v366_v23, 0.0  ;;  %4142 = vmatpush3.bf16.msra.mxu1 %v4355_v18 }
 0x118   :  { %v369_v28 = vpop.f32.mrf.mxu0  ;;  %1021 = vmatmul.mubr.bf16.gmra.mxu0 %v818_v20 }
 0x119   :  { %v370_v29 = vadd.f32 %v369_v28, %v5030_v24  ;;  %v705_v30 = vmax.f32 %v368_v26, 0.0  ;;  %v4353_v26 = vld [vmem:[%s6308_s11 + $0x58] sm:$0xff]  }
 0x11a   :  { %v373_v31 = vpop.f32.mrf.mxu0  ;;  %3981 = vmatprep.subr.bf16.mxu0 %v4353_v26 }
 0x11b   :  { %v706_v13 = vmax.f32 %v370_v29, 0.0  ;;  %v820_v35 = vpack.c.bf16 %v705_v30, %v701_v33  ;;  %v374_v39 = vadd.f32 %v373_v31, %v5035_v25  ;;  %v4356_v30 = vld [vmem:[%s6309_s5] sm:$0xff]  }
 0x11c   :  { %v375_v60 = vpop.f32.mrf.mxu0  ;;  %4143 = vmatprep.subr.bf16.mxu1 %v4356_v30 }
 0x11d   :  { %v821_v34 = vpack.c.bf16 %v706_v13, %v702_v32  ;;  %v376_v37 = vadd.f32 %v375_v60, %v5030_v24  ;;  %v709_v46 = vmax.f32 %v374_v39, 0.0  ;;  %4144 = vmatpush3.bf16.msra.mxu1 %v4356_v30 }
 0x11e   :  { %v377_v36 = vpop.f32.mrf.mxu0 }
 0x11f   :  { %v378_v38 = vadd.f32 %v377_v36, %v5035_v25  ;;  %1028 = vmatprep.mubr.bf16.mxu0 %v821_v34  ;;  %v710_v44 = vmax.f32 %v376_v37, 0.0  ;;  %v4354_v36 = vld [vmem:[%s6308_s11 + $0x18] sm:$0xff]  }
 0x120   :  { %v379_v40 = vpop.f32.mrf.mxu0  ;;  %1029 = vmatmul.mubr.bf16.gmra.mxu0 %v820_v35 }
 0x121   :  { %v380_v41 = vadd.f32 %v379_v40, %v5030_v24  ;;  %v713_v42 = vmax.f32 %v378_v38, 0.0  ;;  %3982 = vmatpush3.bf16.msra.mxu0 %v4354_v36 }
 0x122   :  { %v383_v43 = vpop.f32.mrf.mxu0 }
 0x123   :  { %v714_v45 = vmax.f32 %v380_v41, 0.0  ;;  %v822_v48 = vpack.c.bf16 %v713_v42, %v709_v46  ;;  %v384_v52 = vadd.f32 %v383_v43, %v5035_v25 }
 0x124   :  { %v385_v63 = vpop.f32.mrf.mxu0 }
 0x125   :  { %v823_v47 = vpack.c.bf16 %v714_v45, %v710_v44  ;;  %v386_v50 = vadd.f32 %v385_v63, %v5030_v24  ;;  %v717_v61 = vmax.f32 %v384_v52, 0.0 }
 0x126   :  { %v387_v49 = vpop.f32.mrf.mxu0 }
 0x127   :  { %v388_v51 = vadd.f32 %v387_v49, %v5035_v25  ;;  %1036 = vmatprep.mubr.bf16.mxu0 %v823_v47  ;;  %v718_v58 = vmax.f32 %v386_v50, 0.0 }
 0x128   :  { %v389_v53 = vpop.f32.mrf.mxu0  ;;  %1037 = vmatmul.mubr.bf16.gmra.mxu0 %v822_v48 }
 0x129   :  { %v390_v54 = vadd.f32 %v389_v53, %v5030_v24  ;;  %v721_v55 = vmax.f32 %v388_v51, 0.0 }
 0x12a   :  { %v393_v56 = vpop.f32.mrf.mxu0 }
 0x12b   :  { %v722_v59 = vmax.f32 %v390_v54, 0.0  ;;  %v824_v2 = vpack.c.bf16 %v721_v55, %v717_v61  ;;  %v394_v7 = vadd.f32 %v393_v56, %v5035_v25  ;;  %v4357_v54 = vld [vmem:[%s6308_s11 + $0x50] sm:$0xff]  }
 0x12c   :  { %v395_v3 = vpop.f32.mrf.mxu0  ;;  %3983 = vmatprep.subr.bf16.mxu0 %v4357_v54 }
 0x12d   :  { %v825_v62 = vpack.c.bf16 %v722_v59, %v718_v58  ;;  %v396_v5 = vadd.f32 %v395_v3, %v5030_v24  ;;  %v725_v16 = vmax.f32 %v394_v7, 0.0  ;;  %3984 = vmatpush3.bf16.msra.mxu0 %v4358_v0 }
 0x12e   :  { %v397_v4 = vpop.f32.mrf.mxu0 }
 0x12f   :  { %v398_v57 = vadd.f32 %v397_v4, %v5035_v25  ;;  %1044 = vmatprep.mubr.bf16.mxu0 %v825_v62  ;;  %v726_v15 = vmax.f32 %v396_v5, 0.0 }
 0x130   :  { %v399_v8 = vpop.f32.mrf.mxu0  ;;  %1045 = vmatmul.mubr.bf16.gmra.mxu0 %v824_v2 }
 0x131   :  { %v400_v9 = vadd.f32 %v399_v8, %v5030_v24  ;;  %v729_v11 = vmax.f32 %v398_v57, 0.0 }
 0x132   :  { %v403_v14 = vpop.f32.mrf.mxu0 }
 0x133   :  { %v730_v6 = vmax.f32 %v400_v9, 0.0  ;;  %v826_v12 = vpack.c.bf16 %v729_v11, %v725_v16  ;;  %v404_v27 = vadd.f32 %v403_v14, %v5035_v25 }
 0x134   :  { %v405_v17 = vpop.f32.mrf.mxu0 }
 0x135   :  { %v827_v1 = vpack.c.bf16 %v730_v6, %v726_v15  ;;  %v406_v21 = vadd.f32 %v405_v17, %v5030_v24  ;;  %v733_v60 = vmax.f32 %v404_v27, 0.0  ;;  %v4359_v27 = vld [vmem:[%s6308_s11 + $0x48] sm:$0xff]  }
 0x136   :  { %v407_v20 = vpop.f32.mrf.mxu0  ;;  %3985 = vmatprep.subr.bf16.mxu0 %v4359_v27 }
 0x137   :  { %v408_v23 = vadd.f32 %v407_v20, %v5035_v25  ;;  %1052 = vmatprep.mubr.bf16.mxu0 %v827_v1  ;;  %v734_v13 = vmax.f32 %v406_v21, 0.0 }
 0x138   :  { %v409_v28 = vpop.f32.mrf.mxu0  ;;  %1053 = vmatmul.mubr.bf16.gmra.mxu0 %v826_v12 }
 0x139   :  { %v410_v29 = vadd.f32 %v409_v28, %v5030_v24  ;;  %v737_v31 = vmax.f32 %v408_v23, 0.0 }
 0x13a   :  { %v413_v32 = vpop.f32.mrf.mxu0 }
 0x13b   :  { %v738_v33 = vmax.f32 %v410_v29, 0.0  ;;  %v828_v37 = vpack.c.bf16 %v737_v31, %v733_v60  ;;  %v414_v41 = vadd.f32 %v413_v32, %v5035_v25  ;;  %v486_v60 = vpop.f32.mrf.mxu1 }
 0x13c   :  { %v415_v34 = vpop.f32.mrf.mxu0 }
 0x13d   :  { %v829_v35 = vpack.c.bf16 %v738_v33, %v734_v13  ;;  %v416_v39 = vadd.f32 %v415_v34, %v5030_v24  ;;  %v741_v47 = vmax.f32 %v414_v41, 0.0  ;;  %v4360_v33 = vld [vmem:[%s6308_s11 + $0x8] sm:$0xff]   ;;  %v488_v36 = vpop.f32.mrf.mxu1 }
 0x13e   :  { %v417_v38 = vpop.f32.mrf.mxu0  ;;  %3986 = vmatpush3.bf16.msra.mxu0 %v4360_v33 }
 0x13f   :  { %v418_v40 = vadd.f32 %v417_v38, %v5035_v25  ;;  %1060 = vmatprep.mubr.bf16.mxu0 %v829_v35  ;;  %v742_v46 = vmax.f32 %v416_v39, 0.0  ;;  %v137_v38 = vsub.s32 2, %v5019_v19 }
 0x140   :  { %v419_v42 = vpop.f32.mrf.mxu0  ;;  %1061 = vmatmul.mubr.bf16.gmra.mxu0 %v828_v37 }
 0x141   :  { %v420_v43 = vadd.f32 %v419_v42, %v5030_v24  ;;  %v745_v44 = vmax.f32 %v418_v40, 0.0  ;;  %v5194_v40 = vrot.slane %v5027_v22, %v137_v38 }
 0x142   :  { %v423_v45 = vpop.f32.mrf.mxu0 }
 0x143   :  { %v746_v63 = vmax.f32 %v420_v43, 0.0  ;;  %v830_v50 = vpack.c.bf16 %v745_v44, %v741_v47  ;;  %v424_v55 = vadd.f32 %v423_v45, %v5035_v25  ;;  %v487_v44 = vadd.f32 %v486_v60, %v5194_v40 }
 0x144   :  { %v425_v48 = vpop.f32.mrf.mxu0 }
 0x145   :  { %v831_v49 = vpack.c.bf16 %v746_v63, %v742_v46  ;;  %v426_v52 = vadd.f32 %v425_v48, %v5030_v24  ;;  %v749_v2 = vmax.f32 %v424_v55, 0.0  ;;  %v647_v48 = vmax.f32 %v487_v44, 0.0 }
 0x146   :  { %v427_v51 = vpop.f32.mrf.mxu0 }
 0x147   :  { %v428_v53 = vadd.f32 %v427_v51, %v5035_v25  ;;  %1068 = vmatprep.mubr.bf16.mxu0 %v831_v49  ;;  %v750_v3 = vmax.f32 %v426_v52, 0.0 }
 0x148   :  { %v429_v56 = vpop.f32.mrf.mxu0  ;;  %1069 = vmatmul.mubr.bf16.gmra.mxu0 %v830_v50 }
 0x149   :  { %v430_v58 = vadd.f32 %v429_v56, %v5030_v24  ;;  %v753_v59 = vmax.f32 %v428_v53, 0.0 }
 0x14a   :  { %v433_v61 = vpop.f32.mrf.mxu0 }
 0x14b   :  { %v754_v62 = vmax.f32 %v430_v58, 0.0  ;;  %v832_v57 = vpack.c.bf16 %v753_v59, %v749_v2  ;;  %v434_v10 = vadd.f32 %v433_v61, %v5035_v25 }
 0x14c   :  { %v435_v4 = vpop.f32.mrf.mxu0 }
 0x14d   :  { %v833_v5 = vpack.c.bf16 %v754_v62, %v750_v3  ;;  %v436_v8 = vadd.f32 %v435_v4, %v5030_v24  ;;  %v757_v1 = vmax.f32 %v434_v10, 0.0 }
 0x14e   :  { %v437_v7 = vpop.f32.mrf.mxu0 }
 0x14f   :  { %v438_v9 = vadd.f32 %v437_v7, %v5035_v25  ;;  %1076 = vmatprep.mubr.bf16.mxu0 %v833_v5  ;;  %v758_v16 = vmax.f32 %v436_v8, 0.0 }
 0x150   :  { %v439_v11 = vpop.f32.mrf.mxu0  ;;  %1077 = vmatmul.mubr.bf16.gmra.mxu0 %v832_v57 }
 0x151   :  { %v440_v14 = vadd.f32 %v439_v11, %v5030_v24  ;;  %v761_v15 = vmax.f32 %v438_v9, 0.0 }
 0x152   :  { %v443_v6 = vpop.f32.mrf.mxu0 }
 0x153   :  { %v762_v17 = vmax.f32 %v440_v14, 0.0  ;;  %v834_v20 = vpack.c.bf16 %v761_v15, %v757_v1  ;;  %v444_v28 = vadd.f32 %v443_v6, %v5035_v25 }
 0x154   :  { %v445_v18 = vpop.f32.mrf.mxu0 }
 0x155   :  { %v835_v12 = vpack.c.bf16 %v762_v17, %v758_v16  ;;  %v446_v23 = vadd.f32 %v445_v18, %v5030_v24  ;;  %v765_v34 = vmax.f32 %v444_v28, 0.0 }
 0x156   :  { %v447_v21 = vpop.f32.mrf.mxu0 }
 0x157   :  { %v448_v26 = vadd.f32 %v447_v21, %v5035_v25  ;;  %1084 = vmatprep.mubr.bf16.mxu0 %v835_v12  ;;  %v766_v32 = vmax.f32 %v446_v23, 0.0  ;;  %v141_v25 = vsub.s32 3, %v5019_v19  ;;  %v4361_v19 = vld [vmem:[%s6308_s11 + $0x40] sm:$0xff]  }
 0x158   :  { %v449_v29 = vpop.f32.mrf.mxu0  ;;  %1085 = vmatmul.mubr.bf16.gmra.mxu0 %v834_v20  ;;  %3987 = vmatprep.subr.bf16.mxu0 %v4361_v19 }
 0x159   :  { %v450_v30 = vadd.f32 %v449_v29, %v5030_v24  ;;  %v769_v31 = vmax.f32 %v448_v26, 0.0  ;;  %v490_v24 = vpop.f32.mrf.mxu1  ;;  %v5191_v39 = vrot.slane %v5027_v22, %v141_v25  ;;  %v4362_v22 = vld [vmem:[%s6308_s11] sm:$0xff]  }
 0x15a   :  { %v491_v45 = vadd.f32 %v490_v24, %v5194_v40  ;;  %3988 = vmatpush3.bf16.msra.mxu0 %v4362_v22 }
 0x15b   :  { %v770_v13 = vmax.f32 %v450_v30, 0.0  ;;  %v836_v37 = vpack.c.bf16 %v769_v31, %v765_v34  ;;  %v492_v41 = vpop.f32.mrf.mxu1  ;;  %v489_v42 = vadd.f32 %v488_v36, %v5191_v39 }
 0x15c   :  { %v493_v43 = vadd.f32 %v492_v41, %v5191_v39  ;;  %v651_v49 = vmax.f32 %v491_v45, 0.0 }
 0x15d   :  { %v837_v35 = vpack.c.bf16 %v770_v13, %v766_v32  ;;  %v496_v46 = vpop.f32.mrf.mxu1  ;;  %v648_v63 = vmax.f32 %v489_v42, 0.0 }
 0x15e   :  { %v652_v47 = vmax.f32 %v493_v43, 0.0  ;;  %v2110_v52 = vpack.c.bf16 %v651_v49, %v647_v48  ;;  %v497_v53 = vadd.f32 %v496_v46, %v5194_v40 }
 0x15f   :  { %1092 = vmatprep.mubr.bf16.mxu0 %v837_v35  ;;  %v498_v50 = vpop.f32.mrf.mxu1 }
 0x160   :  { %1093 = vmatmul.mubr.bf16.gmra.mxu0 %v836_v37  ;;  %v2111_v51 = vpack.c.bf16 %v652_v47, %v648_v63  ;;  %v499_v54 = vadd.f32 %v498_v50, %v5191_v39  ;;  %v655_v61 = vmax.f32 %v497_v53, 0.0 }
 0x161   :  { %v500_v55 = vpop.f32.mrf.mxu1 }
 0x162   :  { %2276 = vmatprep.mubr.bf16.mxu0 %v2111_v51  ;;  %v656_v58 = vmax.f32 %v499_v54, 0.0  ;;  %v501_v3 = vadd.f32 %v500_v55, %v5194_v40 }
 0x163   :  { %v502_v56 = vpop.f32.mrf.mxu1 }
 0x164   :  { %v503_v59 = vadd.f32 %v502_v56, %v5191_v39  ;;  %v659_v2 = vmax.f32 %v501_v3, 0.0 }
 0x165   :  { %v506_v62 = vpop.f32.mrf.mxu1 }
 0x166   :  { %v660_v0 = vmax.f32 %v503_v59, 0.0  ;;  %v2112_v57 = vpack.c.bf16 %v659_v2, %v655_v61  ;;  %v507_v7 = vadd.f32 %v506_v62, %v5194_v40 }
 0x167   :  { %v508_v4 = vpop.f32.mrf.mxu1 }
 0x168   :  { %2277 = vmatmul.mubr.bf16.vlgmr.msra.gmra.mxu0 %v2110_v52  ;;  %v2113_v5 = vpack.c.bf16 %v660_v0, %v656_v58  ;;  %v509_v8 = vadd.f32 %v508_v4, %v5191_v39  ;;  %v663_v15 = vmax.f32 %v507_v7, 0.0 }
 0x169   :  { %v510_v9 = vpop.f32.mrf.mxu1 }
 0x16a   :  { %2284 = vmatprep.mubr.bf16.mxu0 %v2113_v5  ;;  %v664_v11 = vmax.f32 %v509_v8, 0.0  ;;  %v511_v6 = vadd.f32 %v510_v9, %v5194_v40 }
 0x16b   :  { %v512_v10 = vpop.f32.mrf.mxu1 }
 0x16c   :  { %v513_v14 = vadd.f32 %v512_v10, %v5191_v39  ;;  %v667_v1 = vmax.f32 %v511_v6, 0.0 }
 0x16d   :  { %v516_v16 = vpop.f32.mrf.mxu1 }
 0x16e   :  { %v668_v17 = vmax.f32 %v513_v14, 0.0  ;;  %v2114_v20 = vpack.c.bf16 %v667_v1, %v663_v15  ;;  %v517_v21 = vadd.f32 %v516_v16, %v5194_v40 }
 0x16f   :  { %v518_v18 = vpop.f32.mrf.mxu1 }
 0x170   :  { %2285 = vmatmul.mubr.bf16.gmra.mxu0 %v2112_v57  ;;  %v2115_v12 = vpack.c.bf16 %v668_v17, %v664_v11  ;;  %v519_v23 = vadd.f32 %v518_v18, %v5191_v39  ;;  %v671_v30 = vmax.f32 %v517_v21, 0.0 }
 0x171   :  { %v520_v26 = vpop.f32.mrf.mxu1 }
 0x172   :  { %2292 = vmatprep.mubr.bf16.mxu0 %v2115_v12  ;;  %v672_v28 = vmax.f32 %v519_v23, 0.0  ;;  %v521_v31 = vadd.f32 %v520_v26, %v5194_v40 }
 0x173   :  { %v522_v27 = vpop.f32.mrf.mxu1 }
 0x174   :  { %v523_v29 = vadd.f32 %v522_v27, %v5191_v39  ;;  %v675_v33 = vmax.f32 %v521_v31, 0.0 }
 0x175   :  { %v526_v32 = vpop.f32.mrf.mxu1 }
 0x176   :  { %v676_v13 = vmax.f32 %v523_v29, 0.0  ;;  %v2116_v35 = vpack.c.bf16 %v675_v33, %v671_v30  ;;  %v527_v36 = vadd.f32 %v526_v32, %v5194_v40 }
 0x177   :  { %v528_v60 = vpop.f32.mrf.mxu1 }
 0x178   :  { %2293 = vmatmul.mubr.bf16.gmra.mxu0 %v2114_v20  ;;  %v2117_v34 = vpack.c.bf16 %v676_v13, %v672_v28  ;;  %v529_v37 = vadd.f32 %v528_v60, %v5191_v39  ;;  %v679_v42 = vmax.f32 %v527_v36, 0.0 }
 0x179   :  { %v530_v25 = vpop.f32.mrf.mxu1 }
 0x17a   :  { %2300 = vmatprep.mubr.bf16.mxu0 %v2117_v34  ;;  %v680_v24 = vmax.f32 %v529_v37, 0.0  ;;  %v531_v43 = vadd.f32 %v530_v25, %v5194_v40 }
 0x17b   :  { %v532_v38 = vpop.f32.mrf.mxu1 }
 0x17c   :  { %v533_v41 = vadd.f32 %v532_v38, %v5191_v39  ;;  %v683_v46 = vmax.f32 %v531_v43, 0.0 }
 0x17d   :  { %v536_v44 = vpop.f32.mrf.mxu1 }
 0x17e   :  { %v684_v45 = vmax.f32 %v533_v41, 0.0  ;;  %v2118_v47 = vpack.c.bf16 %v683_v46, %v679_v42  ;;  %v537_v22 = vadd.f32 %v536_v44, %v5194_v40 }
 0x17f   :  { %v538_v19 = vpop.f32.mrf.mxu1 }
 0x180   :  { %2301 = vmatmul.mubr.bf16.gmra.mxu0 %v2116_v35  ;;  %v2119_v63 = vpack.c.bf16 %v684_v45, %v680_v24  ;;  %v539_v48 = vadd.f32 %v538_v19, %v5191_v39  ;;  %v687_v53 = vmax.f32 %v537_v22, 0.0 }
 0x181   :  { %v540_v49 = vpop.f32.mrf.mxu1 }
 0x182   :  { %2308 = vmatprep.mubr.bf16.mxu0 %v2119_v63  ;;  %v688_v51 = vmax.f32 %v539_v48, 0.0  ;;  %v541_v54 = vadd.f32 %v540_v49, %v5194_v40 }
 0x183   :  { %v542_v50 = vpop.f32.mrf.mxu1 }
 0x184   :  { %v543_v52 = vadd.f32 %v542_v50, %v5191_v39  ;;  %v691_v58 = vmax.f32 %v541_v54, 0.0 }
 0x185   :  { %v546_v55 = vpop.f32.mrf.mxu1 }
 0x186   :  { %v692_v56 = vmax.f32 %v543_v52, 0.0  ;;  %v2120_v3 = vpack.c.bf16 %v691_v58, %v687_v53  ;;  %v547_v62 = vadd.f32 %v546_v55, %v5194_v40  ;;  %v5245_v53 = vld [vmem:[%s6310_s4] ss:$0 sm:$0xff] }
 0x187   :  { %v548_v59 = vpop.f32.mrf.mxu1 }
 0x188   :  { %2309 = vmatmul.mubr.bf16.gmra.mxu0 %v2118_v47  ;;  %v2121_v61 = vpack.c.bf16 %v692_v56, %v688_v51  ;;  %v549_v0 = vadd.f32 %v548_v59, %v5191_v39  ;;  %v695_v7 = vmax.f32 %v547_v62, 0.0 }
 0x189   :  { %v550_v2 = vpop.f32.mrf.mxu1 }
 0x18a   :  { %2316 = vmatprep.mubr.bf16.mxu0 %v2121_v61  ;;  %v696_v5 = vmax.f32 %v549_v0, 0.0  ;;  %v551_v8 = vadd.f32 %v550_v2, %v5194_v40 }
 0x18b   :  { %v552_v4 = vpop.f32.mrf.mxu1 }
 0x18c   :  { %v553_v57 = vadd.f32 %v552_v4, %v5191_v39  ;;  %v699_v11 = vmax.f32 %v551_v8, 0.0 }
 0x18d   :  { %v556_v9 = vpop.f32.mrf.mxu1 }
 0x18e   :  { %v700_v10 = vmax.f32 %v553_v57, 0.0  ;;  %v2122_v6 = vpack.c.bf16 %v699_v11, %v695_v7  ;;  %v557_v16 = vadd.f32 %v556_v9, %v5194_v40  ;;  %v4363_v9 = vld [vmem:[%s6311_s7 + $0x18] sm:$0xff]  }
 0x18f   :  { %v558_v14 = vpop.f32.mrf.mxu1  ;;  %4177 = vmatprep.subr.bf16.mxu1 %v4363_v9 }
 0x190   :  { %2317 = vmatmul.mubr.bf16.gmra.mxu0 %v2120_v3  ;;  %v2123_v15 = vpack.c.bf16 %v700_v10, %v696_v5  ;;  %v559_v17 = vadd.f32 %v558_v14, %v5191_v39  ;;  %v703_v21 = vmax.f32 %v557_v16, 0.0 }
 0x191   :  { %v560_v1 = vpop.f32.mrf.mxu1 }
 0x192   :  { %2324 = vmatprep.mubr.bf16.mxu0 %v2123_v15  ;;  %v704_v12 = vmax.f32 %v559_v17, 0.0  ;;  %v561_v23 = vadd.f32 %v560_v1, %v5194_v40 }
 0x193   :  { %v562_v18 = vpop.f32.mrf.mxu1 }
 0x194   :  { %v563_v20 = vadd.f32 %v562_v18, %v5191_v39  ;;  %v707_v28 = vmax.f32 %v561_v23, 0.0 }
 0x195   :  { %v566_v26 = vpop.f32.mrf.mxu1 }
 0x196   :  { %v708_v27 = vmax.f32 %v563_v20, 0.0  ;;  %v2124_v31 = vpack.c.bf16 %v707_v28, %v703_v21  ;;  %v567_v32 = vadd.f32 %v566_v26, %v5194_v40 }
 0x197   :  { %v568_v29 = vpop.f32.mrf.mxu1 }
 0x198   :  { %2325 = vmatmul.mubr.bf16.gmra.mxu0 %v2122_v6  ;;  %v2125_v30 = vpack.c.bf16 %v708_v27, %v704_v12  ;;  %v569_v13 = vadd.f32 %v568_v29, %v5191_v39  ;;  %v711_v36 = vmax.f32 %v567_v32, 0.0 }
 0x199   :  { %v570_v33 = vpop.f32.mrf.mxu1 }
 0x19a   :  { %2332 = vmatprep.mubr.bf16.mxu0 %v2125_v30  ;;  %v712_v34 = vmax.f32 %v569_v13, 0.0  ;;  %v571_v37 = vadd.f32 %v570_v33, %v5194_v40 }
 0x19b   :  { %v572_v60 = vpop.f32.mrf.mxu1 }
 0x19c   :  { %v573_v35 = vadd.f32 %v572_v60, %v5191_v39  ;;  %v715_v24 = vmax.f32 %v571_v37, 0.0 }
 0x19d   :  { %v576_v25 = vpop.f32.mrf.mxu1 }
 0x19e   :  { %v716_v38 = vmax.f32 %v573_v35, 0.0  ;;  %v2126_v43 = vpack.c.bf16 %v715_v24, %v711_v36  ;;  %v577_v44 = vadd.f32 %v576_v25, %v5194_v40 }
 0x19f   :  { %v578_v41 = vpop.f32.mrf.mxu1 }
 0x1a0   :  { %2333 = vmatmul.mubr.bf16.gmra.mxu0 %v2124_v31  ;;  %v2127_v42 = vpack.c.bf16 %v716_v38, %v712_v34  ;;  %v579_v45 = vadd.f32 %v578_v41, %v5191_v39  ;;  %v719_v50 = vmax.f32 %v577_v44, 0.0 }
 0x1a1   :  { %v580_v46 = vpop.f32.mrf.mxu1 }
 0x1a2   :  { %2340 = vmatprep.mubr.bf16.mxu0 %v2127_v42  ;;  %v720_v22 = vmax.f32 %v579_v45, 0.0  ;;  %v581_v51 = vadd.f32 %v580_v46, %v5194_v40 }
 0x1a3   :  { %v582_v63 = vpop.f32.mrf.mxu1 }
 0x1a4   :  { %v583_v48 = vadd.f32 %v582_v63, %v5191_v39  ;;  %v723_v58 = vmax.f32 %v581_v51, 0.0 }
 0x1a5   :  { %v586_v52 = vpop.f32.mrf.mxu1 }
 0x1a6   :  { %v724_v55 = vmax.f32 %v583_v48, 0.0  ;;  %v587_v56 = vadd.f32 %v586_v52, %v5194_v40  ;;  %v2128_v4 = vpack.c.bf16 %v723_v58, %v719_v50 }
 0x1a7   :  { %v588_v59 = vpop.f32.mrf.mxu1 }
 0x1a8   :  { %v3833_v19 = vpop.f32.mrf.mxu0  ;;  %2341 = vmatmul.mubr.bf16.gmra.mxu0 %v2126_v43  ;;  %v589_v3 = vadd.f32 %v588_v59, %v5191_v39  ;;  %v2129_v62 = vpack.c.bf16 %v724_v55, %v720_v22  ;;  %v727_v7 = vmax.f32 %v587_v56, 0.0 }
 0x1a9   :  { %v590_v5 = vpop.f32.mrf.mxu1 }
 0x1aa   :  { %v3834_v47 = vpop.f32.mrf.mxu0  ;;  %v591_v8 = vadd.f32 %v590_v5, %v5194_v40  ;;  %2348 = vmatprep.mubr.bf16.mxu0 %v2129_v62  ;;  %v728_v15 = vmax.f32 %v589_v3, 0.0 }
 0x1ab   :  { %v3835_v49 = vadd.f32 %v3834_v47, %v3833_v19  ;;  %v592_v11 = vpop.f32.mrf.mxu1 }
 0x1ac   :  { %v3836_v54 = vpop.f32.mrf.mxu0  ;;  %v731_v6 = vmax.f32 %v591_v8, 0.0  ;;  %v593_v16 = vadd.f32 %v592_v11, %v5191_v39 }
 0x1ad   :  { %v975_v0 = vadd.f32 %v3835_v49, %v5245_v53  ;;  %v596_v12 = vpop.f32.mrf.mxu1 }
 0x1ae   :  { %v3837_v61 = vpop.f32.mrf.mxu0  ;;  %v732_v21 = vmax.f32 %v593_v16, 0.0  ;;  %v2130_v26 = vpack.c.bf16 %v731_v6, %v727_v7  ;;  %v597_v27 = vadd.f32 %v596_v12, %v5194_v40 }
 0x1af   :  { %v3838_v2 = vadd.f32 %v3837_v61, %v3836_v54  ;;  %v1101_v17 = vmax.f32 %v975_v0, 0.0  ;;  %v598_v28 = vpop.f32.mrf.mxu1 }
 0x1b0   :  { %v3839_v57 = vpop.f32.mrf.mxu0  ;;  %2349 = vmatmul.mubr.bf16.gmra.mxu0 %v2128_v4  ;;  %v599_v30 = vadd.f32 %v598_v28, %v5191_v39  ;;  %v2131_v31 = vpack.c.bf16 %v732_v21, %v728_v15  ;;  %v735_v36 = vmax.f32 %v597_v27, 0.0 }
 0x1b1   :  { %v978_v10 = vadd.f32 %v3838_v2, %v5245_v53  ;;  %v600_v33 = vpop.f32.mrf.mxu1 }
 0x1b2   :  { %v3840_v14 = vpop.f32.mrf.mxu0  ;;  %v601_v34 = vadd.f32 %v600_v33, %v5194_v40  ;;  %2356 = vmatprep.mubr.bf16.mxu0 %v2131_v31  ;;  %v736_v38 = vmax.f32 %v599_v30, 0.0 }
 0x1b3   :  { %v1102_v1 = vmax.f32 %v978_v10, 0.0  ;;  %v3841_v18 = vadd.f32 %v3840_v14, %v3839_v57  ;;  %v602_v37 = vpop.f32.mrf.mxu1 }
 0x1b4   :  { %v3842_v20 = vpop.f32.mrf.mxu0  ;;  %v739_v24 = vmax.f32 %v601_v34, 0.0  ;;  %v603_v41 = vadd.f32 %v602_v37, %v5191_v39 }
 0x1b5   :  { %v1150_v23 = vpack.c.bf16 %v1102_v1, %v1101_v17  ;;  %v983_v32 = vadd.f32 %v3841_v18, %v5245_v53  ;;  %v606_v45 = vpop.f32.mrf.mxu1 }
 0x1b6   :  { %v3843_v29 = vpop.f32.mrf.mxu0  ;;  %v740_v19 = vmax.f32 %v603_v41, 0.0  ;;  %v2132_v47 = vpack.c.bf16 %v739_v24, %v735_v36  ;;  %v607_v22 = vadd.f32 %v606_v45, %v5194_v40 }
 0x1b7   :  { %v3844_v13 = vadd.f32 %v3843_v29, %v3842_v20  ;;  %4145 = vmatprep.mubr.bf16.mxu1 %v1150_v23  ;;  %v1103_v42 = vmax.f32 %v983_v32, 0.0  ;;  %v608_v48 = vpop.f32.mrf.mxu1 }
 0x1b8   :  { %v3845_v60 = vpop.f32.mrf.mxu0  ;;  %2357 = vmatmul.mubr.bf16.gmra.mxu0 %v2130_v26  ;;  %v609_v50 = vadd.f32 %v608_v48, %v5191_v39  ;;  %v2133_v51 = vpack.c.bf16 %v740_v19, %v736_v38  ;;  %v743_v61 = vmax.f32 %v607_v22, 0.0 }
 0x1b9   :  { %v986_v35 = vadd.f32 %v3844_v13, %v5245_v53  ;;  %v610_v55 = vpop.f32.mrf.mxu1 }
 0x1ba   :  { %v3846_v25 = vpop.f32.mrf.mxu0  ;;  %v611_v58 = vadd.f32 %v610_v55, %v5194_v40  ;;  %2364 = vmatprep.mubr.bf16.mxu0 %v2133_v51  ;;  %v744_v0 = vmax.f32 %v609_v50, 0.0 }
 0x1bb   :  { %v1104_v43 = vmax.f32 %v986_v35, 0.0  ;;  %v3847_v44 = vadd.f32 %v3846_v25, %v3845_v60  ;;  %v612_v3 = vpop.f32.mrf.mxu1 }
 0x1bc   :  { %v3848_v46 = vpop.f32.mrf.mxu0  ;;  %v747_v2 = vmax.f32 %v611_v58, 0.0  ;;  %v613_v4 = vadd.f32 %v612_v3, %v5191_v39 }
 0x1bd   :  { %v1151_v63 = vpack.c.bf16 %v1104_v43, %v1103_v42  ;;  %v991_v52 = vadd.f32 %v3847_v44, %v5245_v53  ;;  %v616_v8 = vpop.f32.mrf.mxu1 }
 0x1be   :  { %v3849_v49 = vpop.f32.mrf.mxu0  ;;  %v748_v11 = vmax.f32 %v613_v4, 0.0  ;;  %v2134_v15 = vpack.c.bf16 %v747_v2, %v743_v61 }
 0x1bf   :  { %v3850_v54 = vadd.f32 %v3849_v49, %v3848_v46  ;;  %4146 = vmatmul.mubr.bf16.vlgmr.msra.gmra.mxu1 %v1151_v63  ;;  %v1105_v5 = vmax.f32 %v991_v52, 0.0  ;;  %v618_v6 = vpop.f32.mrf.mxu1 }
 0x1c0   :  { %v3851_v56 = vpop.f32.mrf.mxu0  ;;  %4178 = vmatpush3.bf16.msra.mxu1 %v4363_v9  ;;  %2365 = vmatmul.mubr.bf16.gmra.mxu0 %v2132_v47  ;;  %v617_v9 = vadd.f32 %v616_v8, %v5194_v40  ;;  %v619_v17 = vadd.f32 %v618_v6, %v5191_v39  ;;  %v2135_v1 = vpack.c.bf16 %v748_v11, %v744_v0 }
 0x1c1   :  { %v994_v59 = vadd.f32 %v3850_v54, %v5245_v53  ;;  %v620_v20 = vpop.f32.mrf.mxu1 }
 0x1c2   :  { %v3852_v62 = vpop.f32.mrf.mxu0  ;;  %v621_v23 = vadd.f32 %v620_v20, %v5194_v40  ;;  %2372 = vmatprep.mubr.bf16.mxu0 %v2135_v1  ;;  %v751_v27 = vmax.f32 %v617_v9, 0.0  ;;  %v752_v30 = vmax.f32 %v619_v17, 0.0 }
 0x1c3   :  { %v1106_v57 = vmax.f32 %v994_v59, 0.0  ;;  %v3853_v7 = vadd.f32 %v3852_v62, %v3851_v56  ;;  %v622_v28 = vpop.f32.mrf.mxu1 }
 0x1c4   :  { %v3854_v10 = vpop.f32.mrf.mxu0  ;;  %v755_v31 = vmax.f32 %v621_v23, 0.0  ;;  %v623_v32 = vadd.f32 %v622_v28, %v5191_v39 }
 0x1c5   :  { %v1152_v14 = vpack.c.bf16 %v1106_v57, %v1105_v5  ;;  %v999_v18 = vadd.f32 %v3853_v7, %v5245_v53  ;;  %v626_v34 = vpop.f32.mrf.mxu1 }
 0x1c6   :  { %v3855_v16 = vpop.f32.mrf.mxu0  ;;  %v756_v36 = vmax.f32 %v623_v32, 0.0  ;;  %v2136_v25 = vpack.c.bf16 %v755_v31, %v751_v27  ;;  %v627_v38 = vadd.f32 %v626_v34, %v5194_v40 }
 0x1c7   :  { %v3856_v12 = vadd.f32 %v3855_v16, %v3854_v10  ;;  %4149 = vmatprep.mubr.bf16.mxu1 %v1152_v14  ;;  %v1107_v13 = vmax.f32 %v999_v18, 0.0  ;;  %v628_v24 = vpop.f32.mrf.mxu1 }
 0x1c8   :  { %v3857_v21 = vpop.f32.mrf.mxu0  ;;  %2373 = vmatmul.mubr.bf16.gmra.mxu0 %v2134_v15  ;;  %v629_v42 = vadd.f32 %v628_v24, %v5191_v39  ;;  %v2137_v43 = vpack.c.bf16 %v756_v36, %v752_v30  ;;  %v759_v22 = vmax.f32 %v627_v38, 0.0 }
 0x1c9   :  { %v1002_v26 = vadd.f32 %v3856_v12, %v5245_v53  ;;  %v630_v46 = vpop.f32.mrf.mxu1 }
 0x1ca   :  { %v3858_v29 = vpop.f32.mrf.mxu0  ;;  %v631_v63 = vadd.f32 %v630_v46, %v5194_v40  ;;  %2380 = vmatprep.mubr.bf16.mxu0 %v2137_v43  ;;  %v760_v50 = vmax.f32 %v629_v42, 0.0 }
 0x1cb   :  { %v1108_v33 = vmax.f32 %v1002_v26, 0.0  ;;  %v3859_v60 = vadd.f32 %v3858_v29, %v3857_v21  ;;  %v632_v48 = vpop.f32.mrf.mxu1 }
 0x1cc   :  { %v3860_v35 = vpop.f32.mrf.mxu0  ;;  %v763_v51 = vmax.f32 %v631_v63, 0.0  ;;  %v633_v52 = vadd.f32 %v632_v48, %v5191_v39 }
 0x1cd   :  { %v1153_v37 = vpack.c.bf16 %v1108_v33, %v1107_v13  ;;  %v1007_v44 = vadd.f32 %v3859_v60, %v5245_v53  ;;  %v636_v58 = vpop.f32.mrf.mxu1 }
 0x1ce   :  { %v3861_v41 = vpop.f32.mrf.mxu0  ;;  %v764_v61 = vmax.f32 %v633_v52, 0.0  ;;  %v2138_v62 = vpack.c.bf16 %v763_v51, %v759_v22  ;;  %v637_v0 = vadd.f32 %v636_v58, %v5194_v40 }
 0x1cf   :  { %v3862_v45 = vadd.f32 %v3861_v41, %v3860_v35  ;;  %4150 = vmatmul.mubr.bf16.gmra.mxu1 %v1153_v37  ;;  %v1109_v54 = vmax.f32 %v1007_v44, 0.0  ;;  %v638_v2 = vpop.f32.mrf.mxu1 }
 0x1d0   :  { %v3863_v19 = vpop.f32.mrf.mxu0  ;;  %2381 = vmatmul.mubr.bf16.gmra.mxu0 %v2136_v25  ;;  %v639_v5 = vadd.f32 %v638_v2, %v5191_v39  ;;  %v2139_v57 = vpack.c.bf16 %v764_v61, %v760_v50  ;;  %v767_v9 = vmax.f32 %v637_v0, 0.0 }
 0x1d1   :  { %v1010_v47 = vadd.f32 %v3862_v45, %v5245_v53  ;;  %v640_v10 = vpop.f32.mrf.mxu1 }
 0x1d2   :  { %v3864_v49 = vpop.f32.mrf.mxu0  ;;  %v641_v14 = vadd.f32 %v640_v10, %v5194_v40  ;;  %2388 = vmatprep.mubr.bf16.mxu0 %v2139_v57  ;;  %v768_v17 = vmax.f32 %v639_v5, 0.0 }
 0x1d3   :  { %v1110_v55 = vmax.f32 %v1010_v47, 0.0  ;;  %v3865_v56 = vadd.f32 %v3864_v49, %v3863_v19  ;;  %v642_v6 = vpop.f32.mrf.mxu1 }
 0x1d4   :  { %v3866_v59 = vpop.f32.mrf.mxu0  ;;  %v771_v1 = vmax.f32 %v641_v14, 0.0  ;;  %v643_v18 = vadd.f32 %v642_v6, %v5191_v39  ;;  %v4364_v14 = vld [vmem:[%s6311_s7 + $0x10] sm:$0xff]  }
 0x1d5   :  { %v1154_v3 = vpack.c.bf16 %v1110_v55, %v1109_v54  ;;  %v1015_v7 = vadd.f32 %v3865_v56, %v5245_v53  ;;  %4179 = vmatprep.subr.bf16.mxu1 %v4364_v14 }
 0x1d6   :  { %v3867_v4 = vpop.f32.mrf.mxu0  ;;  %v772_v26 = vmax.f32 %v643_v18, 0.0  ;;  %v2140_v28 = vpack.c.bf16 %v771_v1, %v767_v9  ;;  %4180 = vmatpush3.bf16.msra.mxu1 %v4364_v14  ;;  %v4365_v18 = vld [vmem:[%s6311_s7 + $0x8] sm:$0xff]  }
 0x1d7   :  { %v3868_v8 = vadd.f32 %v3867_v4, %v3866_v59  ;;  %4153 = vmatprep.mubr.bf16.mxu1 %v1154_v3  ;;  %v1111_v12 = vmax.f32 %v1015_v7, 0.0  ;;  %4181 = vmatprep.subr.bf16.mxu1 %v4365_v18 }
 0x1d8   :  { %v3869_v11 = vpop.f32.mrf.mxu0  ;;  %2389 = vmatmul.mubr.bf16.gmra.mxu0 %v2138_v62  ;;  %v2141_v40 = vpack.c.bf16 %v772_v26, %v768_v17 }
 0x1d9   :  { %v1018_v15 = vadd.f32 %v3868_v8, %v5245_v53 }
 0x1da   :  { %v3870_v16 = vpop.f32.mrf.mxu0  ;;  %2396 = vmatprep.mubr.bf16.mxu0 %v2141_v40  ;;  %4182 = vmatpush3.bf16.msra.mxu1 %v4365_v18 }
 0x1db   :  { %v1112_v20 = vmax.f32 %v1018_v15, 0.0  ;;  %v3871_v21 = vadd.f32 %v3870_v16, %v3869_v11 }
 0x1dc   :  { %v3872_v23 = vpop.f32.mrf.mxu0 }
 0x1dd   :  { %v1155_v27 = vpack.c.bf16 %v1112_v20, %v1111_v12  ;;  %v1023_v30 = vadd.f32 %v3871_v21, %v5245_v53 }
 0x1de   :  { %v3873_v29 = vpop.f32.mrf.mxu0 }
 0x1df   :  { %v3874_v31 = vadd.f32 %v3873_v29, %v3872_v23  ;;  %4154 = vmatmul.mubr.bf16.gmra.mxu1 %v1155_v27  ;;  %v1113_v39 = vmax.f32 %v1023_v30, 0.0  ;;  %v4366_v27 = vld [vmem:[%s6311_s7] sm:$0xff]  }
 0x1e0   :  { %v3875_v32 = vpop.f32.mrf.mxu0  ;;  %2397 = vmatmul.mubr.bf16.gmra.mxu0 %v2140_v28  ;;  %4183 = vmatprep.subr.bf16.mxu1 %v4366_v27 }
 0x1e1   :  { %v1026_v13 = vadd.f32 %v3874_v31, %v5245_v53  ;;  %4184 = vmatpush3.bf16.msra.mxu1 %v4366_v27 }
 0x1e2   :  { %v3876_v33 = vpop.f32.mrf.mxu0 }
 0x1e3   :  { %v1114_v60 = vmax.f32 %v1026_v13, 0.0  ;;  %v3877_v34 = vadd.f32 %v3876_v33, %v3875_v32 }
 0x1e4   :  { %v3878_v35 = vpop.f32.mrf.mxu0 }
 0x1e5   :  { %v1156_v36 = vpack.c.bf16 %v1114_v60, %v1113_v39  ;;  %v1031_v25 = vadd.f32 %v3877_v34, %v5245_v53 }
 0x1e6   :  { %v3879_v37 = vpop.f32.mrf.mxu0 }
 0x1e7   :  { %v3880_v38 = vadd.f32 %v3879_v37, %v3878_v35  ;;  %4157 = vmatprep.mubr.bf16.mxu1 %v1156_v36  ;;  %v1115_v43 = vmax.f32 %v1031_v25, 0.0 }
 0x1e8   :  { %v3881_v24 = vpop.f32.mrf.mxu0 }
 0x1e9   :  { %v1034_v41 = vadd.f32 %v3880_v38, %v5245_v53 }
 0x1ea   :  { %v3882_v42 = vpop.f32.mrf.mxu0 }
 0x1eb   :  { %v1116_v44 = vmax.f32 %v1034_v41, 0.0  ;;  %v3883_v45 = vadd.f32 %v3882_v42, %v3881_v24 }
 0x1ec   :  { %v3884_v46 = vpop.f32.mrf.mxu0 }
 0x1ed   :  { %v1157_v19 = vpack.c.bf16 %v1116_v44, %v1115_v43  ;;  %v1039_v47 = vadd.f32 %v3883_v45, %v5245_v53 }
 0x1ee   :  { %v3885_v63 = vpop.f32.mrf.mxu0 }
 0x1ef   :  { %v3886_v22 = vadd.f32 %v3885_v63, %v3884_v46  ;;  %4158 = vmatmul.mubr.bf16.gmra.mxu1 %v1157_v19  ;;  %v1117_v51 = vmax.f32 %v1039_v47, 0.0 }
 0x1f0   :  { %v3887_v48 = vpop.f32.mrf.mxu0 }
 0x1f1   :  { %v1042_v49 = vadd.f32 %v3886_v22, %v5245_v53 }
 0x1f2   :  { %v3888_v50 = vpop.f32.mrf.mxu0 }
 0x1f3   :  { %v1118_v52 = vmax.f32 %v1042_v49, 0.0  ;;  %v3889_v54 = vadd.f32 %v3888_v50, %v3887_v48 }
 0x1f4   :  { %v3890_v55 = vpop.f32.mrf.mxu0 }
 0x1f5   :  { %v1158_v56 = vpack.c.bf16 %v1118_v52, %v1117_v51  ;;  %v1047_v59 = vadd.f32 %v3889_v54, %v5245_v53 }
 0x1f6   :  { %v3891_v58 = vpop.f32.mrf.mxu0 }
 0x1f7   :  { %v3892_v61 = vadd.f32 %v3891_v58, %v3890_v55  ;;  %4161 = vmatprep.mubr.bf16.mxu1 %v1158_v56  ;;  %v1119_v2 = vmax.f32 %v1047_v59, 0.0 }
 0x1f8   :  { %v3893_v3 = vpop.f32.mrf.mxu0 }
 0x1f9   :  { %v1050_v62 = vadd.f32 %v3892_v61, %v5245_v53 }
 0x1fa   :  { %v3894_v0 = vpop.f32.mrf.mxu0 }
 0x1fb   :  { %v1120_v4 = vmax.f32 %v1050_v62, 0.0  ;;  %v3895_v5 = vadd.f32 %v3894_v0, %v3893_v3 }
 0x1fc   :  { %v3896_v57 = vpop.f32.mrf.mxu0 }
 0x1fd   :  { %v1159_v7 = vpack.c.bf16 %v1120_v4, %v1119_v2  ;;  %v1055_v10 = vadd.f32 %v3895_v5, %v5245_v53 }
 0x1fe   :  { %v3897_v8 = vpop.f32.mrf.mxu0 }
 0x1ff   :  { %v3898_v11 = vadd.f32 %v3897_v8, %v3896_v57  ;;  %4162 = vmatmul.mubr.bf16.gmra.mxu1 %v1159_v7  ;;  %v1121_v16 = vmax.f32 %v1055_v10, 0.0 }
 0x200   :  { %v3899_v15 = vpop.f32.mrf.mxu0 }
 0x201   :  { %v1058_v9 = vadd.f32 %v3898_v11, %v5245_v53 }
 0x202   :  { %v3900_v6 = vpop.f32.mrf.mxu0 }
 0x203   :  { %v1122_v17 = vmax.f32 %v1058_v9, 0.0  ;;  %v3901_v1 = vadd.f32 %v3900_v6, %v3899_v15 }
 0x204   :  { %v3902_v12 = vpop.f32.mrf.mxu0 }
 0x205   :  { %v1160_v20 = vpack.c.bf16 %v1122_v17, %v1121_v16  ;;  %v1063_v23 = vadd.f32 %v3901_v1, %v5245_v53 }
 0x206   :  { %v3903_v21 = vpop.f32.mrf.mxu0 }
 0x207   :  { %v3904_v26 = vadd.f32 %v3903_v21, %v3902_v12  ;;  %4165 = vmatprep.mubr.bf16.mxu1 %v1160_v20  ;;  %v1123_v30 = vmax.f32 %v1063_v23, 0.0 }
 0x208   :  { %v3905_v28 = vpop.f32.mrf.mxu0 }
 0x209   :  { %v1066_v29 = vadd.f32 %v3904_v26, %v5245_v53 }
 0x20a   :  { %v3906_v40 = vpop.f32.mrf.mxu0 }
 0x20b   :  { %v1124_v31 = vmax.f32 %v1066_v29, 0.0  ;;  %v3907_v32 = vadd.f32 %v3906_v40, %v3905_v28 }
 0x20c   :  { %v3908_v13 = vpop.f32.mrf.mxu0 }
 0x20d   :  { %v1161_v33 = vpack.c.bf16 %v1124_v31, %v1123_v30  ;;  %v1071_v60 = vadd.f32 %v3907_v32, %v5245_v53 }
 0x20e   :  { %v3909_v39 = vpop.f32.mrf.mxu0 }
 0x20f   :  { %v3910_v34 = vadd.f32 %v3909_v39, %v3908_v13  ;;  %4166 = vmatmul.mubr.bf16.gmra.mxu1 %v1161_v33  ;;  %v1125_v25 = vmax.f32 %v1071_v60, 0.0  ;;  %v5363_v39 = vld [vmem:[%s6313_s6] ss:$0 sm:$0xff] }
 0x210   :  { %v3911_v35 = vpop.f32.mrf.mxu0 }
 0x211   :  { %v1074_v36 = vadd.f32 %v3910_v34, %v5245_v53 }
 0x212   :  { %v3912_v37 = vpop.f32.mrf.mxu0 }
 0x213   :  { %v1126_v38 = vmax.f32 %v1074_v36, 0.0  ;;  %v3913_v24 = vadd.f32 %v3912_v37, %v3911_v35 }
 0x214   :  { %v3914_v41 = vpop.f32.mrf.mxu0 }
 0x215   :  { %v1162_v42 = vpack.c.bf16 %v1126_v38, %v1125_v25  ;;  %v1079_v44 = vadd.f32 %v3913_v24, %v5245_v53 }
 0x216   :  { %v3915_v43 = vpop.f32.mrf.mxu0 }
 0x217   :  { %v3916_v45 = vadd.f32 %v3915_v43, %v3914_v41  ;;  %4169 = vmatprep.mubr.bf16.mxu1 %v1162_v42  ;;  %v1127_v47 = vmax.f32 %v1079_v44, 0.0 }
 0x218   :  { %v3917_v46 = vpop.f32.mrf.mxu0 }
 0x219   :  { %v1082_v19 = vadd.f32 %v3916_v45, %v5245_v53 }
 0x21a   :  { %v3918_v63 = vpop.f32.mrf.mxu0 }
 0x21b   :  { %v1128_v22 = vmax.f32 %v1082_v19, 0.0  ;;  %v3919_v48 = vadd.f32 %v3918_v63, %v3917_v46  ;;  %v4368_v19 = vld [vmem:[%s6312_s13 + $0x30] sm:$0xff]  }
 0x21c   :  { %v3920_v49 = vpop.f32.mrf.mxu0 }
 0x21d   :  { %v1163_v50 = vpack.c.bf16 %v1128_v22, %v1127_v47  ;;  %v1087_v52 = vadd.f32 %v3919_v48, %v5245_v53  ;;  %v4369_v22 = vld [vmem:[%s6312_s13 + $0x28] sm:$0xff]  }
 0x21e   :  { %v3921_v51 = vpop.f32.mrf.mxu0 }
 0x21f   :  { %v3922_v54 = vadd.f32 %v3921_v51, %v3920_v49  ;;  %4170 = vmatmul.mubr.bf16.gmra.mxu1 %v1163_v50  ;;  %v1129_v59 = vmax.f32 %v1087_v52, 0.0  ;;  %v4370_v51 = vld [vmem:[%s6312_s13 + $0x20] sm:$0xff]  }
 0x220   :  { %v3923_v55 = vpop.f32.mrf.mxu0 }
 0x221   :  { %v1090_v56 = vadd.f32 %v3922_v54, %v5245_v53 }
 0x222   :  { %v3924_v58 = vpop.f32.mrf.mxu0 }
 0x223   :  { %v1130_v61 = vmax.f32 %v1090_v56, 0.0  ;;  %v3925_v3 = vadd.f32 %v3924_v58, %v3923_v55 }
 0x224   :  { %v3926_v62 = vpop.f32.mrf.mxu0 }
 0x225   :  { %v1164_v0 = vpack.c.bf16 %v1130_v61, %v1129_v59  ;;  %v1095_v4 = vadd.f32 %v3925_v3, %v5245_v53  ;;  %v4371_v3 = vld [vmem:[%s6312_s13 + $0x18] sm:$0xff]  }
 0x226   :  { %v3927_v2 = vpop.f32.mrf.mxu0 }
 0x227   :  { %v3928_v5 = vadd.f32 %v3927_v2, %v3926_v62  ;;  %4173 = vmatprep.mubr.bf16.mxu1 %v1164_v0  ;;  %v1131_v7 = vmax.f32 %v1095_v4, 0.0 }
 0x228   :  { %v5315_v11 = vpop.f32.mrf.mxu0 }
 0x229   :  { %v1098_v57 = vadd.f32 %v3928_v5, %v5245_v53  ;;  %v4367_v53 = vld [vmem:[%s6312_s13 + $0x38] sm:$0xff]  }
 0x22a   :  { %v5317_v14 = vpop.f32.mrf.mxu0  ;;  %4217 = vmatprep.subr.bf16.mxu1 %v4367_v53 }
 0x22b   :  { %v1132_v8 = vmax.f32 %v1098_v57, 0.0 }
 0x22c   :  { %v5319_v15 = vpop.f32.mrf.mxu0 }
 0x22d   :  { %v1165_v10 = vpack.c.bf16 %v1132_v8, %v1131_v7  ;;  %v4372_v7 = vld [vmem:[%s6312_s13 + $0x10] sm:$0xff]  }
 0x22e   :  { %v5321_v9 = vpop.f32.mrf.mxu0 }
 0x22f   :  { %4174 = vmatmul.mubr.bf16.gmra.mxu1 %v1165_v10 }
 0x230   :  { %v5323_v6 = vpop.f32.mrf.mxu0 }
 0x232   :  { %v5325_v16 = vpop.f32.mrf.mxu0 }
 0x234   :  { %v5327_v17 = vpop.f32.mrf.mxu0 }
 0x236   :  { %v5332_v1 = vpop.f32.mrf.mxu0 }
 0x238   :  { %v5334_v18 = vpop.f32.mrf.mxu0 }
 0x23a   :  { %v5336_v12 = vpop.f32.mrf.mxu0 }
 0x23c   :  { %v5338_v20 = vpop.f32.mrf.mxu0 }
 0x23e   :  { %v5340_v21 = vpop.f32.mrf.mxu0 }
 0x240   :  { %v5342_v23 = vpop.f32.mrf.mxu0 }
 0x242   :  { %v5344_v26 = vpop.f32.mrf.mxu0 }
 0x244   :  { %v5346_v27 = vpop.f32.mrf.mxu0 }
 0x246   :  { %v5348_v28 = vpop.f32.mrf.mxu0 }
 0x248   :  { %v5350_v29 = vpop.f32.mrf.mxu0 }
 0x24a   :  { %v5352_v40 = vpop.f32.mrf.mxu0 }
 0x24c   :  { %v5354_v30 = vpop.f32.mrf.mxu0 }
 0x24e   :  { %v5356_v31 = vpop.f32.mrf.mxu0 }
 0x250   :  { %v5358_v13 = vpop.f32.mrf.mxu0 }
 0x252   :  { %v5367_v36 = vpop.f32.mrf.mxu0 }
 0x254   :  { %v5371_v43 = vpop.f32.mrf.mxu0 }
 0x256   :  { %v5377_v63 = vpop.f32.mrf.mxu0 }
 0x258   :  { %v5383_v48 = vpop.f32.mrf.mxu0 }
 0x25a   :  { %v5390_v55 = vpop.f32.mrf.mxu0 }
 0x25c   :  { %v5397_v2 = vpop.f32.mrf.mxu0 }
 0x25e   :  { %v5403_v8 = vpop.f32.mrf.mxu0 }
 0x27f   :  { %v4147_v32 = vpop.f32.mrf.mxu1 }
 0x280   :  { %v1263_v37 = vadd.f32 %v4147_v32, %v5363_v39  ;;  %v5409_v32 = vpop.f32.mrf.mxu0 }
 0x281   :  { %v1254_v33 = vpop.f32.mrf.mxu1 }
 0x282   :  { %v1255_v34 = vadd.f32 %v5363_v39, %v1254_v33  ;;  %v1383_v44 = vmax.f32 %v1263_v37, 0.0 }
 0x283   :  { %v4148_v60 = vpop.f32.mrf.mxu1 }
 0x284   :  { %v1266_v35 = vadd.f32 %v4148_v60, %v5363_v39  ;;  %v1381_v41 = vmax.f32 %v1255_v34, 0.0  ;;  %v4374_v34 = vld [vmem:[%s6312_s13] sm:$0xff]  }
 0x285   :  { %v1257_v25 = vpop.f32.mrf.mxu1 }
 0x286   :  { %v1258_v38 = vadd.f32 %v5363_v39, %v1257_v25  ;;  %v1384_v24 = vmax.f32 %v1266_v35, 0.0  ;;  %v5416_v25 = vpop.f32.mrf.mxu0 }
 0x288   :  { %v1382_v42 = vmax.f32 %v1258_v38, 0.0  ;;  %v1423_v46 = vpack.c.bf16 %v1384_v24, %v1383_v44 }
 0x28a   :  { %v1422_v45 = vpack.c.bf16 %v1382_v42, %v1381_v41 }
 0x28c   :  { %4185 = vmatprep.mubr.msk.bf16.mxu1 %vm1468_vm2, %v1422_v45 }
 0x28d   :  { %4186 = vmatmul.mubr.msk.bf16.vlgmr.msra.gmra.mxu1 %vm1468_vm2, %v1423_v46  ;;  %v5420_v46 = vpop.f32.mrf.mxu0 }
 0x28e   :  { %4218 = vmatpush3.bf16.msra.mxu1 %v4367_v53  ;;  %v4373_v53 = vld [vmem:[%s6312_s13 + $0x8] sm:$0xff]  }
 0x28f   :  { %v4151_v47 = vpop.f32.mrf.mxu1  ;;  %4219 = vmatprep.subr.bf16.mxu1 %v4368_v19 }
 0x290   :  { %v1279_v56 = vadd.f32 %v4151_v47, %v5363_v39 }
 0x291   :  { %v1270_v49 = vpop.f32.mrf.mxu1 }
 0x292   :  { %4220 = vmatpush3.bf16.msra.mxu1 %v4368_v19  ;;  %v1271_v52 = vadd.f32 %v5363_v39, %v1270_v49  ;;  %v1387_v4 = vmax.f32 %v1279_v56, 0.0  ;;  %v5423_v49 = vpop.f32.mrf.mxu0 }
 0x293   :  { %v4152_v50 = vpop.f32.mrf.mxu1  ;;  %4221 = vmatprep.subr.bf16.mxu1 %v4369_v22 }
 0x294   :  { %v1282_v54 = vadd.f32 %v4152_v50, %v5363_v39  ;;  %v1385_v62 = vmax.f32 %v1271_v52, 0.0 }
 0x295   :  { %v1273_v58 = vpop.f32.mrf.mxu1 }
 0x296   :  { %v1274_v59 = vadd.f32 %v5363_v39, %v1273_v58  ;;  %4222 = vmatpush3.bf16.msra.mxu1 %v4369_v22  ;;  %v1388_v61 = vmax.f32 %v1282_v54, 0.0 }
 0x297   :  { %4223 = vmatprep.subr.bf16.mxu1 %v4370_v51 }
 0x298   :  { %v1386_v0 = vmax.f32 %v1274_v59, 0.0  ;;  %v1425_v57 = vpack.c.bf16 %v1388_v61, %v1387_v4 }
 0x29a   :  { %v1424_v5 = vpack.c.bf16 %v1386_v0, %v1385_v62  ;;  %4224 = vmatpush3.bf16.msra.mxu1 %v4370_v51  ;;  %v5426_v51 = vpop.f32.mrf.mxu0 }
 0x29b   :  { %4225 = vmatprep.subr.bf16.mxu1 %v4371_v3 }
 0x29c   :  { %4189 = vmatprep.mubr.msk.bf16.mxu1 %vm1468_vm2, %v1424_v5  ;;  %v5430_v59 = vpop.f32.mrf.mxu0 }
 0x29d   :  { %4190 = vmatmul.mubr.msk.bf16.gmra.mxu1 %vm1468_vm2, %v1425_v57 }
 0x29e   :  { %4226 = vmatpush3.bf16.msra.mxu1 %v4371_v3  ;;  %v5434_v57 = vpop.f32.mrf.mxu0 }
 0x29f   :  { %v4155_v10 = vpop.f32.mrf.mxu1  ;;  %4227 = vmatprep.subr.bf16.mxu1 %v4372_v7 }
 0x2a0   :  { %v1295_v38 = vadd.f32 %v4155_v10, %v5363_v39 }
 0x2a1   :  { %v1286_v33 = vpop.f32.mrf.mxu1 }
 0x2a2   :  { %4228 = vmatpush3.bf16.msra.mxu1 %v4372_v7  ;;  %v1287_v35 = vadd.f32 %v5363_v39, %v1286_v33  ;;  %v1391_v19 = vmax.f32 %v1295_v38, 0.0  ;;  %v5437_v33 = vpop.f32.mrf.mxu0 }
 0x2a3   :  { %v4156_v60 = vpop.f32.mrf.mxu1  ;;  %4229 = vmatprep.subr.bf16.mxu1 %v4373_v53 }
 0x2a4   :  { %v1298_v37 = vadd.f32 %v4156_v60, %v5363_v39  ;;  %v1389_v44 = vmax.f32 %v1287_v35, 0.0 }
 0x2a5   :  { %v1289_v24 = vpop.f32.mrf.mxu1 }
 0x2a6   :  { %v1290_v41 = vadd.f32 %v5363_v39, %v1289_v24  ;;  %4230 = vmatpush3.bf16.msra.mxu1 %v4373_v53  ;;  %v1392_v42 = vmax.f32 %v1298_v37, 0.0 }
 0x2a7   :  { %4231 = vmatprep.subr.bf16.mxu1 %v4374_v34 }
 0x2a8   :  { %v1390_v45 = vmax.f32 %v1290_v41, 0.0  ;;  %v1427_v22 = vpack.c.bf16 %v1392_v42, %v1391_v19 }
 0x2aa   :  { %v1426_v47 = vpack.c.bf16 %v1390_v45, %v1389_v44  ;;  %4232 = vmatpush3.bf16.msra.mxu1 %v4374_v34  ;;  %v5440_v34 = vpop.f32.mrf.mxu0 }
 0x2ac   :  { %4193 = vmatprep.mubr.msk.bf16.mxu1 %vm1468_vm2, %v1426_v47  ;;  %v5444_v41 = vpop.f32.mrf.mxu0 }
 0x2ad   :  { %4194 = vmatmul.mubr.msk.bf16.gmra.mxu1 %vm1468_vm2, %v1427_v22 }
 0x2af   :  { %v4159_v50 = vpop.f32.mrf.mxu1 }
 0x2b0   :  { %v1311_v61 = vadd.f32 %v4159_v50, %v5363_v39  ;;  %v5448_v50 = vpop.f32.mrf.mxu0 }
 0x2b1   :  { %v1302_v52 = vpop.f32.mrf.mxu1 }
 0x2b2   :  { %v1303_v56 = vadd.f32 %v5363_v39, %v1302_v52  ;;  %v1395_v7 = vmax.f32 %v1311_v61, 0.0 }
 0x2b3   :  { %v4160_v54 = vpop.f32.mrf.mxu1 }
 0x2b4   :  { %v1314_v58 = vadd.f32 %v4160_v54, %v5363_v39  ;;  %v1393_v4 = vmax.f32 %v1303_v56, 0.0 }
 0x2b5   :  { %v1305_v3 = vpop.f32.mrf.mxu1 }
 0x2b6   :  { %v1306_v62 = vadd.f32 %v5363_v39, %v1305_v3  ;;  %v1396_v0 = vmax.f32 %v1314_v58, 0.0  ;;  %v5451_v58 = vpop.f32.mrf.mxu0 }
 0x2b8   :  { %v1394_v5 = vmax.f32 %v1306_v62, 0.0  ;;  %v1429_v53 = vpack.c.bf16 %v1396_v0, %v1395_v7  ;;  %v5454_v3 = vpop.f32.mrf.mxu0 }
 0x2ba   :  { %v1428_v10 = vpack.c.bf16 %v1394_v5, %v1393_v4  ;;  %v5458_v7 = vpop.f32.mrf.mxu0 }
 0x2bc   :  { %4197 = vmatprep.mubr.msk.bf16.mxu1 %vm1468_vm2, %v1428_v10 }
 0x2bd   :  { %4198 = vmatmul.mubr.msk.bf16.gmra.mxu1 %vm1468_vm2, %v1429_v53 }
 0x2bf   :  { %v4163_v60 = vpop.f32.mrf.mxu1 }
 0x2c0   :  { %v1327_v42 = vadd.f32 %v4163_v60, %v5363_v39 }
 0x2c1   :  { %v1318_v35 = vpop.f32.mrf.mxu1 }
 0x2c2   :  { %v1319_v38 = vadd.f32 %v5363_v39, %v1318_v35  ;;  %v1399_v52 = vmax.f32 %v1327_v42, 0.0 }
 0x2c3   :  { %v4164_v37 = vpop.f32.mrf.mxu1 }
 0x2c4   :  { %v1330_v24 = vadd.f32 %v4164_v37, %v5363_v39  ;;  %v1397_v47 = vmax.f32 %v1319_v38, 0.0 }
 0x2c5   :  { %v1321_v44 = vpop.f32.mrf.mxu1 }
 0x2c6   :  { %v1322_v45 = vadd.f32 %v5363_v39, %v1321_v44  ;;  %v1400_v19 = vmax.f32 %v1330_v24, 0.0  ;;  %v5462_v24 = vpop.f32.mrf.mxu0 }
 0x2c8   :  { %v1398_v22 = vmax.f32 %v1322_v45, 0.0  ;;  %v1431_v56 = vpack.c.bf16 %v1400_v19, %v1399_v52  ;;  %v5465_v19 = vpop.f32.mrf.mxu0 }
 0x2ca   :  { %v1430_v54 = vpack.c.bf16 %v1398_v22, %v1397_v47  ;;  %v5468_v22 = vpop.f32.mrf.mxu0 }
 0x2cc   :  { %4201 = vmatprep.mubr.msk.bf16.mxu1 %vm1468_vm2, %v1430_v54 }
 0x2cd   :  { %4202 = vmatmul.mubr.msk.bf16.gmra.mxu1 %vm1468_vm2, %v1431_v56 }
 0x2cf   :  { %v4167_v61 = vpop.f32.mrf.mxu1 }
 0x2d0   :  { %v1343_v10 = vadd.f32 %v4167_v61, %v5363_v39 }
 0x2d1   :  { %v1334_v62 = vpop.f32.mrf.mxu1 }
 0x2d2   :  { %v1335_v4 = vadd.f32 %v5363_v39, %v1334_v62  ;;  %v1403_v42 = vmax.f32 %v1343_v10, 0.0  ;;  %v5472_v62 = vpop.f32.mrf.mxu0 }
 0x2d3   :  { %v4168_v0 = vpop.f32.mrf.mxu1 }
 0x2d4   :  { %v1346_v5 = vadd.f32 %v4168_v0, %v5363_v39  ;;  %v1401_v37 = vmax.f32 %v1335_v4, 0.0 }
 0x2d5   :  { %v1337_v53 = vpop.f32.mrf.mxu1 }
 0x2d6   :  { %v1338_v60 = vadd.f32 %v5363_v39, %v1337_v53  ;;  %v1404_v35 = vmax.f32 %v1346_v5, 0.0 }
 0x2d8   :  { %v1402_v38 = vmax.f32 %v1338_v60, 0.0  ;;  %v1433_v45 = vpack.c.bf16 %v1404_v35, %v1403_v42  ;;  %v5476_v35 = vpop.f32.mrf.mxu0 }
 0x2da   :  { %v1432_v44 = vpack.c.bf16 %v1402_v38, %v1401_v37 }
 0x2dc   :  { %4205 = vmatprep.mubr.msk.bf16.mxu1 %vm1468_vm2, %v1432_v44  ;;  %v5479_v44 = vpop.f32.mrf.mxu0 }
 0x2dd   :  { %4206 = vmatmul.mubr.msk.bf16.gmra.mxu1 %vm1468_vm2, %v1433_v45  ;;  %v3991_v45 = vadd.f32 %v5317_v14, %v5315_v11 }
 0x2df   :  { %v4171_v47 = vpop.f32.mrf.mxu1 }
 0x2e0   :  { %v1359_v0 = vadd.f32 %v4171_v47, %v5363_v39  ;;  %v5487_v47 = vld [vmem:[%s6314_s12] ss:$0 sm:$0xff] }
 0x2e1   :  { %v1350_v52 = vpop.f32.mrf.mxu1 }
 0x2e2   :  { %v1351_v56 = vadd.f32 %v5363_v39, %v1350_v52  ;;  %v1407_v37 = vmax.f32 %v1359_v0, 0.0  ;;  %v3994_v52 = vadd.f32 %v5321_v9, %v5319_v15  ;;  %v2279_v0 = vadd.f32 %v3991_v45, %v5487_v47 }
 0x2e3   :  { %v4172_v54 = vpop.f32.mrf.mxu1 }
 0x2e4   :  { %v1362_v61 = vadd.f32 %v4172_v54, %v5363_v39  ;;  %v1405_v53 = vmax.f32 %v1351_v56, 0.0  ;;  %v5491_v56 = vpop.f32.mrf.mxu0 }
 0x2e5   :  { %v1353_v4 = vpop.f32.mrf.mxu1 }
 0x2e6   :  { %v1354_v5 = vadd.f32 %v5363_v39, %v1353_v4  ;;  %v1408_v10 = vmax.f32 %v1362_v61, 0.0  ;;  %v2282_v4 = vadd.f32 %v3994_v52, %v5487_v47  ;;  %v5497_v14 = vpop.f32.mrf.mxu0  ;;  %v4003_v52 = vadd.f32 %v5336_v12, %v5334_v18 }
 0x2e7   :  { %6335 = vst [vmem:[#allocation4_spill] sm:$0xff] %v5497_v14 }
 0x2e8   :  { %v1406_v60 = vmax.f32 %v1354_v5, 0.0  ;;  %v1435_v42 = vpack.c.bf16 %v1408_v10, %v1407_v37  ;;  %v2405_v37 = vmax.f32 %v2279_v0, 0.0  ;;  %v2406_v9 = vmax.f32 %v2282_v4, 0.0  ;;  %v5509_v14 = vpop.f32.mrf.mxu0 }
 0x2ea   :  { %v1434_v38 = vpack.c.bf16 %v1406_v60, %v1405_v53  ;;  %v2454_v18 = vpack.c.bf16 %v2406_v9, %v2405_v37  ;;  %v5516_v12 = vpop.f32.mrf.mxu0  ;;  %v4018_v37 = vadd.f32 %v5356_v31, %v5354_v30  ;;  %v4024_v30 = vadd.f32 %v5377_v63, %v5371_v43 }
 0x2eb   :  { %v4027_v31 = vadd.f32 %v5390_v55, %v5383_v48  ;;  %v4033_v43 = vadd.f32 %v5416_v25, %v5409_v32  ;;  %v4036_v55 = vadd.f32 %v5423_v49, %v5420_v46  ;;  %v4042_v32 = vadd.f32 %v5437_v33, %v5434_v57 }
 0x2ec   :  { %4209 = vmatprep.mubr.msk.bf16.mxu1 %vm1468_vm2, %v1434_v38  ;;  %v3997_v38 = vadd.f32 %v5325_v16, %v5323_v6  ;;  %v5527_v9 = vpop.f32.mrf.mxu0  ;;  %v4048_v57 = vadd.f32 %v5451_v58, %v5448_v50 }
 0x2ed   :  { %4210 = vmatmul.mubr.msk.bf16.gmra.mxu1 %vm1468_vm2, %v1435_v42  ;;  %v4000_v42 = vadd.f32 %v5332_v1, %v5327_v17  ;;  %v2295_v17 = vadd.f32 %v4003_v52, %v5487_v47  ;;  %v2346_v49 = vadd.f32 %v4042_v32, %v5487_v47 }
 0x2ee   :  { %v2287_v4 = vadd.f32 %v3997_v38, %v5487_v47 }
 0x2ef   :  { %v4175_v54 = vpop.f32.mrf.mxu1  ;;  %v2290_v6 = vadd.f32 %v4000_v42, %v5487_v47 }
 0x2f0   :  { %v1375_v53 = vadd.f32 %v4175_v54, %v5363_v39 }
 0x2f1   :  { %v1366_v61 = vpop.f32.mrf.mxu1 }
 0x2f2   :  { %v1367_v10 = vadd.f32 %v5363_v39, %v1366_v61  ;;  %v4006_v61 = vadd.f32 %v5340_v21, %v5338_v20  ;;  %v1411_v0 = vmax.f32 %v1375_v53, 0.0  ;;  %v4009_v20 = vadd.f32 %v5344_v26, %v5342_v23 }
 0x2f3   :  { %v4176_v5 = vpop.f32.mrf.mxu1  ;;  %v2407_v21 = vmax.f32 %v2287_v4, 0.0  ;;  %v2409_v53 = vmax.f32 %v2295_v17, 0.0 }
 0x2f4   :  { %v1378_v11 = vadd.f32 %v4176_v5, %v5363_v39  ;;  %v1409_v5 = vmax.f32 %v1367_v10, 0.0  ;;  %v2298_v1 = vadd.f32 %v4006_v61, %v5487_v47  ;;  %v2408_v10 = vmax.f32 %v2290_v6, 0.0 }
 0x2f5   :  { %v1369_v60 = vpop.f32.mrf.mxu1  ;;  %v2303_v38 = vadd.f32 %v4009_v20, %v5487_v47  ;;  %v2322_v6 = vadd.f32 %v4024_v30, %v5487_v47  ;;  %v2338_v20 = vadd.f32 %v4036_v55, %v5487_v47  ;;  %v4066_v30 = vadd.f32 %v5516_v12, %v5509_v14 }
 0x2f6   :  { %v1370_v15 = vadd.f32 %v5363_v39, %v1369_v60  ;;  %v1412_v45 = vmax.f32 %v1378_v11, 0.0  ;;  %v4012_v11 = vadd.f32 %v5348_v28, %v5346_v27  ;;  %v2410_v60 = vmax.f32 %v2298_v1, 0.0  ;;  %v5533_v28 = vpop.f32.mrf.mxu0 }
 0x2f7   :  { %v2455_v42 = vpack.c.bf16 %v2408_v10, %v2407_v21  ;;  %v2411_v52 = vmax.f32 %v2303_v38, 0.0  ;;  %v2335_v1 = vadd.f32 %v4033_v43, %v5487_v47  ;;  %v4054_v38 = vadd.f32 %v5465_v19, %v5462_v24 }
 0x2f8   :  { %v1410_v54 = vmax.f32 %v1370_v15, 0.0  ;;  %v1437_v16 = vpack.c.bf16 %v1412_v45, %v1411_v0  ;;  %v4015_v15 = vadd.f32 %v5352_v40, %v5350_v29  ;;  %v2306_v23 = vadd.f32 %v4012_v11, %v5487_v47  ;;  %v5543_v0 = vpop.f32.mrf.mxu0 }
 0x2f9   :  { %v2314_v45 = vadd.f32 %v4018_v37, %v5487_v47  ;;  %v2456_v27 = vpack.c.bf16 %v2410_v60, %v2409_v53  ;;  %v4021_v40 = vadd.f32 %v5367_v36, %v5358_v13  ;;  %v2327_v13 = vadd.f32 %v4027_v31, %v5487_v47 }
 0x2fa   :  { %v1436_v39 = vpack.c.bf16 %v1410_v54, %v1409_v5  ;;  %v2311_v26 = vadd.f32 %v4015_v15, %v5487_v47  ;;  %v2412_v29 = vmax.f32 %v2306_v23, 0.0  ;;  %v4030_v54 = vadd.f32 %v5403_v8, %v5397_v2  ;;  %v5551_v48 = vpop.f32.mrf.mxu0 }
 0x2fb   :  { %v2414_v5 = vmax.f32 %v2314_v45, 0.0  ;;  %v2319_v4 = vadd.f32 %v4021_v40, %v5487_v47  ;;  %v2416_v8 = vmax.f32 %v2322_v6, 0.0  ;;  %v2419_v10 = vmax.f32 %v2335_v1, 0.0 }
 0x2fc   :  { %4213 = vmatprep.mubr.msk.bf16.mxu1 %vm1468_vm2, %v1436_v39  ;;  %v2413_v61 = vmax.f32 %v2311_v26, 0.0  ;;  %v2457_v39 = vpack.c.bf16 %v2412_v29, %v2411_v52  ;;  %v2330_v36 = vadd.f32 %v4030_v54, %v5487_v47  ;;  %v4073_v25 = vpop.f32.mrf.mxu0  ;;  %v2420_v60 = vmax.f32 %v2338_v20, 0.0  ;;  %v6336_v29 = vld [vmem:[#allocation4_spill] sm:$0xff] }
 0x2fd   :  { %4214 = vmatmul.mubr.msk.bf16.gmra.mxu1 %vm1468_vm2, %v1437_v16  ;;  %v2415_v2 = vmax.f32 %v2319_v4, 0.0  ;;  %v2417_v16 = vmax.f32 %v2327_v13, 0.0  ;;  %v2422_v15 = vmax.f32 %v2346_v49, 0.0  ;;  %v4051_v37 = vadd.f32 %v5458_v7, %v5454_v3  ;;  %v4377_v49 = vld [vmem:[%s6315_s15 + $0x8] sm:$0xff]  }
 0x2fe   :  { %4233 = vmatprep.mubr.bf16.mxu1 %v2454_v18  ;;  %v2458_v63 = vpack.c.bf16 %v2414_v5, %v2413_v61  ;;  %v2418_v17 = vmax.f32 %v2330_v36, 0.0  ;;  %v4039_v18 = vadd.f32 %v5430_v59, %v5426_v51  ;;  %v4074_v53 = vpop.f32.mrf.mxu0  ;;  %v4375_v51 = vld [vmem:[%s6315_s15 + $0x18] sm:$0xff]   ;;  %v4045_v59 = vadd.f32 %v5444_v41, %v5440_v34 }
 0x2ff   :  { %v2459_v21 = vpack.c.bf16 %v2416_v8, %v2415_v2  ;;  %4265 = vmatprep.subr.bf16.mxu1 %v4375_v51  ;;  %v2461_v23 = vpack.c.bf16 %v2420_v60, %v2419_v10  ;;  %v2354_v45 = vadd.f32 %v4048_v57, %v5487_v47  ;;  %v2359_v34 = vadd.f32 %v4051_v37, %v5487_v47 }
 0x300   :  { %v2343_v46 = vadd.f32 %v4039_v18, %v5487_v47  ;;  %v2460_v11 = vpack.c.bf16 %v2418_v17, %v2417_v16  ;;  %v2351_v26 = vadd.f32 %v4045_v59, %v5487_v47  ;;  %v2362_v41 = vadd.f32 %v4054_v38, %v5487_v47 }
 0x301   :  { %v2424_v3 = vmax.f32 %v2354_v45, 0.0  ;;  %v4057_v7 = vadd.f32 %v5472_v62, %v5468_v22  ;;  %v4060_v24 = vadd.f32 %v5479_v44, %v5476_v35  ;;  %v2425_v19 = vmax.f32 %v2359_v34, 0.0  ;;  %v4376_v44 = vld [vmem:[%s6315_s15 + $0x10] sm:$0xff]  }
 0x302   :  { %v2421_v33 = vmax.f32 %v2343_v46, 0.0  ;;  %v2426_v52 = vmax.f32 %v2362_v41, 0.0  ;;  %v4063_v40 = vadd.f32 %v6336_v29, %v5491_v56  ;;  %v2378_v22 = vadd.f32 %v4066_v30, %v5487_v47 }
 0x303   :  { %v2367_v5 = vadd.f32 %v4057_v7, %v5487_v47  ;;  %v2370_v54 = vadd.f32 %v4060_v24, %v5487_v47  ;;  %v4069_v12 = vadd.f32 %v5533_v28, %v5527_v9  ;;  %v4072_v4 = vadd.f32 %v5551_v48, %v5543_v0 }
 0x304   :  { %v2462_v50 = vpack.c.bf16 %v2422_v15, %v2421_v33  ;;  %v2464_v35 = vpack.c.bf16 %v2426_v52, %v2425_v19  ;;  %v2430_v13 = vmax.f32 %v2378_v22, 0.0  ;;  %v4075_v36 = vadd.f32 %v4074_v53, %v4073_v25  ;;  %v5618_v15 = vld [vmem:[%s6317_s9] ss:$0 sm:$0xff] }
 0x305   :  { %4234 = vmatmul.mubr.bf16.vlgmr.msra.gmra.mxu1 %v2455_v42  ;;  %v4076_v42 = vpop.f32.mrf.mxu0  ;;  %v2427_v56 = vmax.f32 %v2367_v5, 0.0  ;;  %v2428_v14 = vmax.f32 %v2370_v54, 0.0  ;;  %v2383_v2 = vadd.f32 %v4069_v12, %v5487_v47  ;;  %v2386_v8 = vadd.f32 %v4072_v4, %v5487_v47 }
 0x306   :  { %4237 = vmatprep.mubr.bf16.mxu1 %v2456_v27  ;;  %4266 = vmatpush3.bf16.msra.mxu1 %v4375_v51  ;;  %v2423_v27 = vmax.f32 %v2351_v26, 0.0  ;;  %v2391_v16 = vadd.f32 %v4075_v36, %v5487_v47  ;;  %v4378_v51 = vld [vmem:[%s6315_s15] sm:$0xff]   ;;  %v24_v19 = vstv %s6318_s10 }
 0x307   :  { %v4077_v58 = vpop.f32.mrf.mxu0  ;;  %4267 = vmatprep.subr.bf16.mxu1 %v4376_v44  ;;  %v2465_v55 = vpack.c.bf16 %v2428_v14, %v2427_v56  ;;  %v2431_v28 = vmax.f32 %v2383_v2, 0.0  ;;  %v2432_v0 = vmax.f32 %v2386_v8, 0.0  ;;  %25 = vst [vmem:[#allocation2] sm:$0x1] %v24_v19 }
 0x308   :  { %v2463_v61 = vpack.c.bf16 %v2424_v3, %v2423_v27  ;;  %v4078_v43 = vadd.f32 %v4077_v58, %v4076_v42  ;;  %v2433_v32 = vmax.f32 %v2391_v16, 0.0 }
 0x309   :  { %v4079_v31 = vpop.f32.mrf.mxu0  ;;  %v2467_v20 = vpack.c.bf16 %v2432_v0, %v2431_v28 }
 0x30a   :  { %4268 = vmatpush3.bf16.msra.mxu1 %v4376_v44  ;;  %v2394_v17 = vadd.f32 %v4078_v43, %v5487_v47 }
 0x30b   :  { %v4080_v62 = vpop.f32.mrf.mxu0  ;;  %4269 = vmatprep.subr.bf16.mxu1 %v4377_v49 }
 0x30c   :  { %v4081_v48 = vadd.f32 %v4080_v62, %v4079_v31  ;;  %v2434_v25 = vmax.f32 %v2394_v17, 0.0 }
 0x30d   :  { %4238 = vmatmul.mubr.bf16.gmra.mxu1 %v2457_v39  ;;  %v2375_v39 = vadd.f32 %v4063_v40, %v5487_v47 }
 0x30e   :  { %4241 = vmatprep.mubr.bf16.mxu1 %v2458_v63  ;;  %v4082_v63 = vpop.f32.mrf.mxu0  ;;  %v2468_v46 = vpack.c.bf16 %v2434_v25, %v2433_v32  ;;  %4270 = vmatpush3.bf16.msra.mxu1 %v4377_v49 }
 0x30f   :  { %v2429_v6 = vmax.f32 %v2375_v39, 0.0  ;;  %4271 = vmatprep.subr.bf16.mxu1 %v4378_v51 }
 0x310   :  { %v4083_v1 = vpop.f32.mrf.mxu0 }
 0x311   :  { %v2466_v9 = vpack.c.bf16 %v2430_v13, %v2429_v6  ;;  %v4084_v18 = vadd.f32 %v4083_v1, %v4082_v63 }
 0x312   :  { %4272 = vmatpush3.bf16.msra.mxu1 %v4378_v51 }
 0x313   :  { %v2402_v10 = vadd.f32 %v4084_v18, %v5487_v47 }
 0x315   :  { %4242 = vmatmul.mubr.bf16.gmra.mxu1 %v2459_v21  ;;  %v2399_v21 = vadd.f32 %v4081_v48, %v5487_v47  ;;  %v2436_v53 = vmax.f32 %v2402_v10, 0.0  ;;  %v5612_v47 = vld [vmem:[%s6316_s8] ss:$0 sm:$0xff] }
 0x316   :  { %4245 = vmatprep.mubr.bf16.mxu1 %v2460_v11 }
 0x317   :  { %v2435_v11 = vmax.f32 %v2399_v21, 0.0 }
 0x319   :  { %v2469_v60 = vpack.c.bf16 %v2436_v53, %v2435_v11 }
 0x31d   :  { %4246 = vmatmul.mubr.bf16.gmra.mxu1 %v2461_v23 }
 0x31e   :  { %4249 = vmatprep.mubr.bf16.mxu1 %v2462_v50 }
 0x325   :  { %4250 = vmatmul.mubr.bf16.gmra.mxu1 %v2463_v61 }
 0x326   :  { %4253 = vmatprep.mubr.bf16.mxu1 %v2464_v35 }
 0x32d   :  { %4254 = vmatmul.mubr.bf16.gmra.mxu1 %v2465_v55 }
 0x32e   :  { %4257 = vmatprep.mubr.bf16.mxu1 %v2466_v9 }
 0x335   :  { %4258 = vmatmul.mubr.bf16.gmra.mxu1 %v2467_v20 }
 0x336   :  { %4261 = vmatprep.mubr.bf16.mxu1 %v2468_v46 }
 0x33d   :  { %4262 = vmatmul.mubr.bf16.gmra.mxu1 %v2469_v60 }
 0x34d   :  { %v4187_v59 = vpop.f32.mrf.mxu1 }
 0x34e   :  { %v1560_v57 = vadd.f32 %v4187_v59, %v5612_v47 }
 0x34f   :  { %v1551_v33 = vpop.f32.mrf.mxu1 }
 0x350   :  { %v1680_v37 = vmax.f32 %v1560_v57, 0.0  ;;  %v1552_v38 = vadd.f32 %v5612_v47, %v1551_v33 }
 0x351   :  { %v4188_v42 = vpop.f32.mrf.mxu1 }
 0x352   :  { %v1678_v23 = vmax.f32 %v1552_v38, 0.0  ;;  %v1563_v26 = vadd.f32 %v4188_v42, %v5612_v47  ;;  %v1720_v45 = vmul.f32 %v5618_v15, %v1680_v37 }
 0x353   :  { %v1554_v34 = vpop.f32.mrf.mxu1 }
 0x354   :  { %v1681_v41 = vmax.f32 %v1563_v26, 0.0  ;;  %v1555_v50 = vadd.f32 %v5612_v47, %v1554_v34  ;;  %v1757_v58 = vsel %vm1750_vm3, %v1720_v45, 0.0  ;;  %v1718_v27 = vmul.f32 %v5618_v15, %v1678_v23 }
 0x355   :  { %1758 = vadd.xlane.f32.xlu1 %v1757_v58 }
 0x356   :  { %v1679_v3 = vmax.f32 %v1555_v50, 0.0  ;;  %v1751_v7 = vsel %vm1750_vm3, %v1718_v27, 0.0  ;;  %v1721_v24 = vmul.f32 %v5618_v15, %v1681_v41 }
 0x357   :  { %1752 = vadd.xlane.f32.xlu0 %v1751_v7 }
 0x358   :  { %v1760_v52 = vsel %vm1750_vm3, %v1721_v24, 0.0  ;;  %v1719_v29 = vmul.f32 %v5618_v15, %v1679_v3 }
 0x359   :  { %1761 = vadd.xlane.f32.xlu1 %v1760_v52 }
 0x35a   :  { %v1754_v40 = vsel %vm1750_vm3, %v1719_v29, 0.0 }
 0x35b   :  { %1755 = vadd.xlane.f32.xlu0 %v1754_v40 }
 0x35d   :  { %v4191_v30 = vpop.f32.mrf.mxu1 }
 0x35e   :  { %v1576_v31 = vadd.f32 %v4191_v30, %v5612_v47 }
 0x35f   :  { %v1567_v61 = vpop.f32.mrf.mxu1 }
 0x360   :  { %v1684_v5 = vmax.f32 %v1576_v31, 0.0  ;;  %v1568_v54 = vadd.f32 %v5612_v47, %v1567_v61 }
 0x361   :  { %v4192_v39 = vpop.f32.mrf.mxu1 }
 0x362   :  { %v1682_v22 = vmax.f32 %v1568_v54, 0.0  ;;  %v1579_v62 = vadd.f32 %v4192_v39, %v5612_v47  ;;  %v1724_v35 = vmul.f32 %v5618_v15, %v1684_v5 }
 0x363   :  { %v1570_v44 = vpop.f32.mrf.mxu1 }
 0x364   :  { %v1685_v56 = vmax.f32 %v1579_v62, 0.0  ;;  %v1571_v14 = vadd.f32 %v5612_v47, %v1570_v44  ;;  %v1769_v12 = vsel %vm1750_vm3, %v1724_v35, 0.0  ;;  %v1722_v4 = vmul.f32 %v5618_v15, %v1682_v22 }
 0x365   :  { %1770 = vadd.xlane.f32.xlu0 %v1769_v12 }
 0x366   :  { %v1683_v6 = vmax.f32 %v1571_v14, 0.0  ;;  %v1725_v13 = vmul.f32 %v5618_v15, %v1685_v56  ;;  %v1763_v43 = vsel %vm1750_vm3, %v1722_v4, 0.0 }
 0x368   :  { %v1772_v36 = vsel %vm1750_vm3, %v1725_v13, 0.0  ;;  %v1723_v63 = vmul.f32 %v5618_v15, %v1683_v6 }
 0x369   :  { %1773 = vadd.xlane.f32.xlu1 %v1772_v36  ;;  %1764 = vadd.xlane.f32.xlu0 %v1763_v43 }
 0x36a   :  { %v1766_v55 = vsel %vm1750_vm3, %v1723_v63, 0.0 }
 0x36d   :  { %v4195_v2 = vpop.f32.mrf.mxu1  ;;  %1767 = vadd.xlane.f32.xlu1 %v1766_v55 }
 0x36e   :  { %v1592_v8 = vadd.f32 %v4195_v2, %v5612_v47 }
 0x36f   :  { %v1583_v16 = vpop.f32.mrf.mxu1 }
 0x370   :  { %v1688_v17 = vmax.f32 %v1592_v8, 0.0  ;;  %v1584_v1 = vadd.f32 %v5612_v47, %v1583_v16 }
 0x371   :  { %v4196_v9 = vpop.f32.mrf.mxu1 }
 0x372   :  { %v1686_v28 = vmax.f32 %v1584_v1, 0.0  ;;  %v1595_v0 = vadd.f32 %v4196_v9, %v5612_v47  ;;  %v1728_v48 = vmul.f32 %v5618_v15, %v1688_v17 }
 0x373   :  { %v1586_v18 = vpop.f32.mrf.mxu1 }
 0x374   :  { %v1689_v32 = vmax.f32 %v1595_v0, 0.0  ;;  %v1587_v25 = vadd.f32 %v5612_v47, %v1586_v18  ;;  %v1781_v20 = vsel %vm1750_vm3, %v1728_v48, 0.0  ;;  %v1726_v21 = vmul.f32 %v5618_v15, %v1686_v28 }
 0x375   :  { %1782 = vadd.xlane.f32.xlu0 %v1781_v20 }
 0x376   :  { %v1687_v10 = vmax.f32 %v1587_v25, 0.0  ;;  %v1729_v46 = vmul.f32 %v5618_v15, %v1689_v32  ;;  %v1775_v11 = vsel %vm1750_vm3, %v1726_v21, 0.0 }
 0x378   :  { %v1784_v49 = vsel %vm1750_vm3, %v1729_v46, 0.0  ;;  %v1727_v53 = vmul.f32 %v5618_v15, %v1687_v10 }
 0x379   :  { %1785 = vadd.xlane.f32.xlu1 %v1784_v49  ;;  %1776 = vadd.xlane.f32.xlu0 %v1775_v11 }
 0x37a   :  { %v1778_v60 = vsel %vm1750_vm3, %v1727_v53, 0.0 }
 0x37d   :  { %v4199_v51 = vpop.f32.mrf.mxu1  ;;  %1779 = vadd.xlane.f32.xlu1 %v1778_v60 }
 0x37e   :  { %v1608_v59 = vadd.f32 %v4199_v51, %v5612_v47 }
 0x37f   :  { %v1599_v57 = vpop.f32.mrf.mxu1 }
 0x380   :  { %v1692_v33 = vmax.f32 %v1608_v59, 0.0  ;;  %v1600_v37 = vadd.f32 %v5612_v47, %v1599_v57 }
 0x381   :  { %v4200_v38 = vpop.f32.mrf.mxu1 }
 0x382   :  { %v1690_v42 = vmax.f32 %v1600_v37, 0.0  ;;  %v1611_v23 = vadd.f32 %v4200_v38, %v5612_v47  ;;  %v1732_v26 = vmul.f32 %v5618_v15, %v1692_v33 }
 0x383   :  { %v1602_v45 = vpop.f32.mrf.mxu1 }
 0x384   :  { %v1693_v34 = vmax.f32 %v1611_v23, 0.0  ;;  %v1603_v41 = vadd.f32 %v5612_v47, %v1602_v45  ;;  %v1793_v50 = vsel %vm1750_vm3, %v1732_v26, 0.0  ;;  %v1730_v58 = vmul.f32 %v5618_v15, %v1690_v42 }
 0x385   :  { %1794 = vadd.xlane.f32.xlu0 %v1793_v50 }
 0x386   :  { %v1691_v27 = vmax.f32 %v1603_v41, 0.0  ;;  %v1733_v3 = vmul.f32 %v5618_v15, %v1693_v34  ;;  %v1787_v24 = vsel %vm1750_vm3, %v1730_v58, 0.0 }
 0x388   :  { %v1796_v7 = vsel %vm1750_vm3, %v1733_v3, 0.0  ;;  %v1731_v19 = vmul.f32 %v5618_v15, %v1691_v27 }
 0x389   :  { %1797 = vadd.xlane.f32.xlu1 %v1796_v7  ;;  %1788 = vadd.xlane.f32.xlu0 %v1787_v24 }
 0x38a   :  { %v1790_v52 = vsel %vm1750_vm3, %v1731_v19, 0.0 }
 0x38d   :  { %v4203_v29 = vpop.f32.mrf.mxu1  ;;  %1791 = vadd.xlane.f32.xlu1 %v1790_v52 }
 0x38e   :  { %v1624_v40 = vadd.f32 %v4203_v29, %v5612_v47 }
 0x38f   :  { %v1615_v30 = vpop.f32.mrf.mxu1 }
 0x390   :  { %v1696_v31 = vmax.f32 %v1624_v40, 0.0  ;;  %v1616_v61 = vadd.f32 %v5612_v47, %v1615_v30 }
 0x391   :  { %v4204_v5 = vpop.f32.mrf.mxu1 }
 0x392   :  { %v1694_v54 = vmax.f32 %v1616_v61, 0.0  ;;  %v1627_v39 = vadd.f32 %v4204_v5, %v5612_v47  ;;  %v1736_v22 = vmul.f32 %v5618_v15, %v1696_v31 }
 0x393   :  { %v1618_v62 = vpop.f32.mrf.mxu1 }
 0x394   :  { %v1697_v35 = vmax.f32 %v1627_v39, 0.0  ;;  %v1619_v44 = vadd.f32 %v5612_v47, %v1618_v62  ;;  %v1805_v56 = vsel %vm1750_vm3, %v1736_v22, 0.0  ;;  %v1734_v14 = vmul.f32 %v5618_v15, %v1694_v54 }
 0x395   :  { %1806 = vadd.xlane.f32.xlu0 %v1805_v56 }
 0x396   :  { %v1695_v12 = vmax.f32 %v1619_v44, 0.0  ;;  %v1737_v4 = vmul.f32 %v5618_v15, %v1697_v35  ;;  %v1799_v13 = vsel %vm1750_vm3, %v1734_v14, 0.0 }
 0x398   :  { %v1808_v6 = vsel %vm1750_vm3, %v1737_v4, 0.0  ;;  %v1735_v36 = vmul.f32 %v5618_v15, %v1695_v12 }
 0x399   :  { %1809 = vadd.xlane.f32.xlu1 %v1808_v6  ;;  %1800 = vadd.xlane.f32.xlu0 %v1799_v13  ;;  %v5717_v6 = vld [vmem:[%s6319_s14] ss:$0 sm:$0xff] }
 0x39a   :  { %v1802_v43 = vsel %vm1750_vm3, %v1735_v36, 0.0 }
 0x39d   :  { %v4207_v63 = vpop.f32.mrf.mxu1  ;;  %1803 = vadd.xlane.f32.xlu1 %v1802_v43 }
 0x39e   :  { %v1640_v55 = vadd.f32 %v4207_v63, %v5612_v47 }
 0x39f   :  { %v1631_v2 = vpop.f32.mrf.mxu1 }
 0x3a0   :  { %v1700_v8 = vmax.f32 %v1640_v55, 0.0  ;;  %v1632_v16 = vadd.f32 %v5612_v47, %v1631_v2 }
 0x3a1   :  { %v4208_v17 = vpop.f32.mrf.mxu1 }
 0x3a2   :  { %v1698_v1 = vmax.f32 %v1632_v16, 0.0  ;;  %v1643_v9 = vadd.f32 %v4208_v17, %v5612_v47  ;;  %v1740_v28 = vmul.f32 %v5618_v15, %v1700_v8 }
 0x3a3   :  { %v1634_v0 = vpop.f32.mrf.mxu1 }
 0x3a4   :  { %v1701_v48 = vmax.f32 %v1643_v9, 0.0  ;;  %v1635_v18 = vadd.f32 %v5612_v47, %v1634_v0  ;;  %v1817_v32 = vsel %vm1750_vm3, %v1740_v28, 0.0  ;;  %v1738_v25 = vmul.f32 %v5618_v15, %v1698_v1 }
 0x3a5   :  { %1818 = vadd.xlane.f32.xlu0 %v1817_v32 }
 0x3a6   :  { %v1699_v20 = vmax.f32 %v1635_v18, 0.0  ;;  %v1741_v21 = vmul.f32 %v5618_v15, %v1701_v48  ;;  %v1811_v46 = vsel %vm1750_vm3, %v1738_v25, 0.0 }
 0x3a8   :  { %v1820_v10 = vsel %vm1750_vm3, %v1741_v21, 0.0  ;;  %v1739_v49 = vmul.f32 %v5618_v15, %v1699_v20 }
 0x3a9   :  { %1821 = vadd.xlane.f32.xlu1 %v1820_v10  ;;  %1812 = vadd.xlane.f32.xlu0 %v1811_v46 }
 0x3aa   :  { %v1814_v11 = vsel %vm1750_vm3, %v1739_v49, 0.0 }
 0x3ad   :  { %v4211_v53 = vpop.f32.mrf.mxu1  ;;  %1815 = vadd.xlane.f32.xlu1 %v1814_v11 }
 0x3ae   :  { %v1656_v60 = vadd.f32 %v4211_v53, %v5612_v47 }
 0x3af   :  { %v1647_v51 = vpop.f32.mrf.mxu1 }
 0x3b0   :  { %v1704_v59 = vmax.f32 %v1656_v60, 0.0  ;;  %v1648_v57 = vadd.f32 %v5612_v47, %v1647_v51 }
 0x3b1   :  { %v4212_v33 = vpop.f32.mrf.mxu1 }
 0x3b2   :  { %v1702_v37 = vmax.f32 %v1648_v57, 0.0  ;;  %v1659_v38 = vadd.f32 %v4212_v33, %v5612_v47  ;;  %v1744_v42 = vmul.f32 %v5618_v15, %v1704_v59 }
 0x3b3   :  { %v1650_v23 = vpop.f32.mrf.mxu1 }
 0x3b4   :  { %v1705_v26 = vmax.f32 %v1659_v38, 0.0  ;;  %v1651_v45 = vadd.f32 %v5612_v47, %v1650_v23  ;;  %v1829_v34 = vsel %vm1750_vm3, %v1744_v42, 0.0  ;;  %v1742_v41 = vmul.f32 %v5618_v15, %v1702_v37 }
 0x3b5   :  { %1830 = vadd.xlane.f32.xlu0 %v1829_v34 }
 0x3b6   :  { %v1703_v50 = vmax.f32 %v1651_v45, 0.0  ;;  %v1745_v58 = vmul.f32 %v5618_v15, %v1705_v26  ;;  %v1823_v3 = vsel %vm1750_vm3, %v1742_v41, 0.0 }
 0x3b8   :  { %v1832_v27 = vsel %vm1750_vm3, %v1745_v58, 0.0  ;;  %v1743_v7 = vmul.f32 %v5618_v15, %v1703_v50 }
 0x3b9   :  { %1833 = vadd.xlane.f32.xlu1 %v1832_v27  ;;  %1824 = vadd.xlane.f32.xlu0 %v1823_v3 }
 0x3ba   :  { %v1826_v24 = vsel %vm1750_vm3, %v1743_v7, 0.0 }
 0x3bd   :  { %v4215_v19 = vpop.f32.mrf.mxu1  ;;  %1827 = vadd.xlane.f32.xlu1 %v1826_v24 }
 0x3be   :  { %v1672_v52 = vadd.f32 %v4215_v19, %v5612_v47 }
 0x3bf   :  { %v1663_v29 = vpop.f32.mrf.mxu1 }
 0x3c0   :  { %v1708_v40 = vmax.f32 %v1672_v52, 0.0  ;;  %v1664_v30 = vadd.f32 %v5612_v47, %v1663_v29 }
 0x3c1   :  { %v4216_v31 = vpop.f32.mrf.mxu1 }
 0x3c2   :  { %v1706_v61 = vmax.f32 %v1664_v30, 0.0  ;;  %v1675_v5 = vadd.f32 %v4216_v31, %v5612_v47  ;;  %v1748_v54 = vmul.f32 %v5618_v15, %v1708_v40 }
 0x3c3   :  { %v1666_v39 = vpop.f32.mrf.mxu1 }
 0x3c4   :  { %v1709_v22 = vmax.f32 %v1675_v5, 0.0  ;;  %v1667_v62 = vadd.f32 %v5612_v47, %v1666_v39  ;;  %v1841_v35 = vsel %vm1750_vm3, %v1748_v54, 0.0  ;;  %v1746_v44 = vmul.f32 %v5618_v15, %v1706_v61 }
 0x3c5   :  { %v4235_v56 = vpop.f32.mrf.mxu1  ;;  %1842 = vadd.xlane.f32.xlu0 %v1841_v35 }
 0x3c6   :  { %v1707_v14 = vmax.f32 %v1667_v62, 0.0  ;;  %v1749_v12 = vmul.f32 %v5618_v15, %v1709_v22  ;;  %v1835_v36 = vsel %vm1750_vm3, %v1746_v44, 0.0  ;;  %v2567_v2 = vadd.f32 %v4235_v56, %v5717_v6 }
 0x3c7   :  { %v2558_v4 = vpop.f32.mrf.mxu1 }
 0x3c8   :  { %v1844_v13 = vsel %vm1750_vm3, %v1749_v12, 0.0  ;;  %v1747_v47 = vmul.f32 %v5618_v15, %v1707_v14  ;;  %v2559_v63 = vadd.f32 %v5717_v6, %v2558_v4  ;;  %v2687_v15 = vmax.f32 %v2567_v2, 0.0 }
 0x3c9   :  { %v4236_v43 = vpop.f32.mrf.mxu1  ;;  %1845 = vadd.xlane.f32.xlu1 %v1844_v13  ;;  %1836 = vadd.xlane.f32.xlu0 %v1835_v36 }
 0x3ca   :  { %v2570_v55 = vadd.f32 %v4236_v43, %v5717_v6  ;;  %v1838_v17 = vsel %vm1750_vm3, %v1747_v47, 0.0  ;;  %v2685_v28 = vmax.f32 %v2559_v63, 0.0 }
 0x3cb   :  { %v2561_v8 = vpop.f32.mrf.mxu1 }
 0x3cc   :  { %v2562_v16 = vadd.f32 %v5717_v6, %v2561_v8  ;;  %v2688_v1 = vmax.f32 %v2570_v55, 0.0 }
 0x3cd   :  { %v4239_v9 = vpop.f32.mrf.mxu1  ;;  %1839 = vadd.xlane.f32.xlu1 %v1838_v17 }
 0x3ce   :  { %v2686_v0 = vmax.f32 %v2562_v16, 0.0  ;;  %v2727_v32 = vpack.c.bf16 %v2688_v1, %v2687_v15  ;;  %v2583_v10 = vadd.f32 %v4239_v9, %v5717_v6 }
 0x3cf   :  { %v2574_v48 = vpop.f32.mrf.mxu1 }
 0x3d0   :  { %v2726_v18 = vpack.c.bf16 %v2686_v0, %v2685_v28  ;;  %v2575_v20 = vadd.f32 %v5717_v6, %v2574_v48  ;;  %v2691_v59 = vmax.f32 %v2583_v10, 0.0 }
 0x3d1   :  { %v4240_v25 = vpop.f32.mrf.mxu1 }
 0x3d2   :  { %v2586_v21 = vadd.f32 %v4240_v25, %v5717_v6  ;;  %4273 = vmatprep.mubr.msk.bf16.mxu1 %vm1468_vm2, %v2726_v18  ;;  %v2689_v60 = vmax.f32 %v2575_v20, 0.0 }
 0x3d3   :  { %v2577_v46 = vpop.f32.mrf.mxu1  ;;  %4274 = vmatmul.mubr.msk.bf16.vlgmr.msra.gmra.mxu1 %vm1468_vm2, %v2727_v32 }
 0x3d4   :  { %v2578_v49 = vadd.f32 %v5717_v6, %v2577_v46  ;;  %v2692_v11 = vmax.f32 %v2586_v21, 0.0 }
 0x3d5   :  { %v4243_v53 = vpop.f32.mrf.mxu1 }
 0x3d6   :  { %v2690_v51 = vmax.f32 %v2578_v49, 0.0  ;;  %v2729_v37 = vpack.c.bf16 %v2692_v11, %v2691_v59  ;;  %v2599_v26 = vadd.f32 %v4243_v53, %v5717_v6 }
 0x3d7   :  { %v2590_v57 = vpop.f32.mrf.mxu1 }
 0x3d8   :  { %v2728_v33 = vpack.c.bf16 %v2690_v51, %v2689_v60  ;;  %v2591_v42 = vadd.f32 %v5717_v6, %v2590_v57  ;;  %v2695_v3 = vmax.f32 %v2599_v26, 0.0 }
 0x3d9   :  { %v4244_v38 = vpop.f32.mrf.mxu1 }
 0x3da   :  { %v2602_v23 = vadd.f32 %v4244_v38, %v5717_v6  ;;  %4277 = vmatprep.mubr.msk.bf16.mxu1 %vm1468_vm2, %v2728_v33  ;;  %v2693_v58 = vmax.f32 %v2591_v42, 0.0 }
 0x3db   :  { %v2593_v45 = vpop.f32.mrf.mxu1  ;;  %4278 = vmatmul.mubr.msk.bf16.gmra.mxu1 %vm1468_vm2, %v2729_v37 }
 0x3dc   :  { %v2594_v34 = vadd.f32 %v5717_v6, %v2593_v45  ;;  %v2696_v41 = vmax.f32 %v2602_v23, 0.0 }
 0x3dd   :  { %v4247_v50 = vpop.f32.mrf.mxu1 }
 0x3de   :  { %v2694_v27 = vmax.f32 %v2594_v34, 0.0  ;;  %v2731_v19 = vpack.c.bf16 %v2696_v41, %v2695_v3  ;;  %v2615_v30 = vadd.f32 %v4247_v50, %v5717_v6 }
 0x3df   :  { %v2606_v7 = vpop.f32.mrf.mxu1 }
 0x3e0   :  { %v2730_v24 = vpack.c.bf16 %v2694_v27, %v2693_v58  ;;  %v2607_v29 = vadd.f32 %v5717_v6, %v2606_v7  ;;  %v2699_v62 = vmax.f32 %v2615_v30, 0.0 }
 0x3e1   :  { %v4248_v52 = vpop.f32.mrf.mxu1 }
 0x3e2   :  { %v2618_v40 = vadd.f32 %v4248_v52, %v5717_v6  ;;  %4281 = vmatprep.mubr.msk.bf16.mxu1 %vm1468_vm2, %v2730_v24  ;;  %v2697_v39 = vmax.f32 %v2607_v29, 0.0 }
 0x3e3   :  { %v2609_v31 = vpop.f32.mrf.mxu1  ;;  %4282 = vmatmul.mubr.msk.bf16.gmra.mxu1 %vm1468_vm2, %v2731_v19 }
 0x3e4   :  { %v2610_v61 = vadd.f32 %v5717_v6, %v2609_v31  ;;  %v2700_v5 = vmax.f32 %v2618_v40, 0.0 }
 0x3e5   :  { %v4251_v54 = vpop.f32.mrf.mxu1 }
 0x3e6   :  { %v2698_v22 = vmax.f32 %v2610_v61, 0.0  ;;  %v2733_v56 = vpack.c.bf16 %v2700_v5, %v2699_v62  ;;  %v2631_v13 = vadd.f32 %v4251_v54, %v5717_v6  ;;  %v26_v61 = vstv %s6320_s18  ;;  %v5777_v5 = vld [vmem:[%s6321_s16] ss:$0 sm:$0xff]  ;;  %s4636_s16 = smov 1  }
 0x3e7   :  { %v2622_v35 = vpop.f32.mrf.mxu1  ;;  %27 = vst [vmem:[#allocation3] sm:$0x1] %v26_v61 }
 0x3e8   :  { %v2732_v44 = vpack.c.bf16 %v2698_v22, %v2697_v39  ;;  %v2623_v12 = vadd.f32 %v5717_v6, %v2622_v35  ;;  %v2703_v8 = vmax.f32 %v2631_v13, 0.0  ;;  %v5783_v22 = vld [vmem:[%s6322_s17] ss:$0 sm:$0xff] }
 0x3e9   :  { %v4252_v14 = vpop.f32.mrf.mxu1 }
 0x3ea   :  { %v2634_v4 = vadd.f32 %v4252_v14, %v5717_v6  ;;  %4285 = vmatprep.mubr.msk.bf16.mxu1 %vm1468_vm2, %v2732_v44  ;;  %v2701_v55 = vmax.f32 %v2623_v12, 0.0 }
 0x3eb   :  { %v2625_v36 = vpop.f32.mrf.mxu1  ;;  %4286 = vmatmul.mubr.msk.bf16.gmra.mxu1 %vm1468_vm2, %v2733_v56 }
 0x3ec   :  { %v2626_v47 = vadd.f32 %v5717_v6, %v2625_v36  ;;  %v2704_v43 = vmax.f32 %v2634_v4, 0.0 }
 0x3ed   :  { %v4255_v63 = vpop.f32.mrf.mxu1 }
 0x3ee   :  { %v2702_v2 = vmax.f32 %v2626_v47, 0.0  ;;  %v2735_v1 = vpack.c.bf16 %v2704_v43, %v2703_v8  ;;  %v2647_v15 = vadd.f32 %v4255_v63, %v5717_v6 }
 0x3ef   :  { %v2638_v16 = vpop.f32.mrf.mxu1 }
 0x3f0   :  { %v2734_v17 = vpack.c.bf16 %v2702_v2, %v2701_v55  ;;  %v2639_v28 = vadd.f32 %v5717_v6, %v2638_v16  ;;  %v2707_v10 = vmax.f32 %v2647_v15, 0.0 }
 0x3f1   :  { %v4256_v9 = vpop.f32.mrf.mxu1 }
 0x3f2   :  { %v2650_v0 = vadd.f32 %v4256_v9, %v5717_v6  ;;  %4289 = vmatprep.mubr.msk.bf16.mxu1 %vm1468_vm2, %v2734_v17  ;;  %v2705_v20 = vmax.f32 %v2639_v28, 0.0 }
 0x3f3   :  { %v2641_v48 = vpop.f32.mrf.mxu1  ;;  %4290 = vmatmul.mubr.msk.bf16.gmra.mxu1 %vm1468_vm2, %v2735_v1 }
 0x3f4   :  { %v2642_v18 = vadd.f32 %v5717_v6, %v2641_v48  ;;  %v2708_v32 = vmax.f32 %v2650_v0, 0.0 }
 0x3f5   :  { %v4259_v25 = vpop.f32.mrf.mxu1 }
 0x3f6   :  { %v2706_v21 = vmax.f32 %v2642_v18, 0.0  ;;  %v2737_v11 = vpack.c.bf16 %v2708_v32, %v2707_v10  ;;  %v2663_v59 = vadd.f32 %v4259_v25, %v5717_v6 }
 0x3f7   :  { %v2654_v46 = vpop.f32.mrf.mxu1 }
 0x3f8   :  { %v2736_v49 = vpack.c.bf16 %v2706_v21, %v2705_v20  ;;  %v2655_v60 = vadd.f32 %v5717_v6, %v2654_v46  ;;  %v2711_v26 = vmax.f32 %v2663_v59, 0.0 }
 0x3f9   :  { %v4260_v53 = vpop.f32.mrf.mxu1 }
 0x3fa   :  { %v2666_v51 = vadd.f32 %v4260_v53, %v5717_v6  ;;  %4293 = vmatprep.mubr.msk.bf16.mxu1 %vm1468_vm2, %v2736_v49  ;;  %v2709_v42 = vmax.f32 %v2655_v60, 0.0 }
 0x3fb   :  { %v2657_v57 = vpop.f32.mrf.mxu1  ;;  %4294 = vmatmul.mubr.msk.bf16.gmra.mxu1 %vm1468_vm2, %v2737_v11 }
 0x3fc   :  { %v2658_v33 = vadd.f32 %v5717_v6, %v2657_v57  ;;  %v2712_v37 = vmax.f32 %v2666_v51, 0.0 }
 0x3fd   :  { %v4263_v38 = vpop.f32.mrf.mxu1 }
 0x3fe   :  { %v2710_v23 = vmax.f32 %v2658_v33, 0.0  ;;  %v2739_v41 = vpack.c.bf16 %v2712_v37, %v2711_v26  ;;  %v2679_v3 = vadd.f32 %v4263_v38, %v5717_v6 }
 0x3ff   :  { %v2670_v45 = vpop.f32.mrf.mxu1 }
 0x400   :  { %v2738_v34 = vpack.c.bf16 %v2710_v23, %v2709_v42  ;;  %v2671_v58 = vadd.f32 %v5717_v6, %v2670_v45  ;;  %v2715_v40 = vmax.f32 %v2679_v3, 0.0 }
 0x401   :  { %v4264_v50 = vpop.f32.mrf.mxu1 }
 0x402   :  { %v2682_v27 = vadd.f32 %v4264_v50, %v5717_v6  ;;  %4297 = vmatprep.mubr.msk.bf16.mxu1 %vm1468_vm2, %v2738_v34  ;;  %v2713_v52 = vmax.f32 %v2671_v58, 0.0 }
 0x403   :  { %v2673_v7 = vpop.f32.mrf.mxu1  ;;  %4298 = vmatmul.mubr.msk.bf16.gmra.mxu1 %vm1468_vm2, %v2739_v41 }
 0x404   :  { %v2674_v24 = vadd.f32 %v5717_v6, %v2673_v7  ;;  %v2716_v19 = vmax.f32 %v2682_v27, 0.0 }
 0x406   :  { %v2714_v29 = vmax.f32 %v2674_v24, 0.0  ;;  %v2741_v31 = vpack.c.bf16 %v2716_v19, %v2715_v40 }
 0x408   :  { %v2740_v30 = vpack.c.bf16 %v2714_v29, %v2713_v52 }
 0x40a   :  { %4301 = vmatprep.mubr.msk.bf16.mxu1 %vm1468_vm2, %v2740_v30 }
 0x40b   :  { %4302 = vmatmul.mubr.msk.bf16.gmra.mxu1 %vm1468_vm2, %v2741_v31 }
 0x493   :  { %v4275_v6 = vpop.f32.mrf.mxu1 }
 0x494   :  { %v2863_v54 = vadd.f32 %v4275_v6, %v5777_v5 }
 0x495   :  { %v2854_v39 = vpop.f32.mrf.mxu1 }
 0x496   :  { %v2983_v62 = vmax.f32 %v2863_v54, 0.0  ;;  %v2855_v35 = vadd.f32 %v5777_v5, %v2854_v39 }
 0x497   :  { %v4276_v44 = vpop.f32.mrf.mxu1 }
 0x498   :  { %v2981_v56 = vmax.f32 %v2855_v35, 0.0  ;;  %v2866_v14 = vadd.f32 %v4276_v44, %v5777_v5  ;;  %v3023_v12 = vmul.f32 %v5783_v22, %v2983_v62 }
 0x499   :  { %v2857_v4 = vpop.f32.mrf.mxu1 }
 0x49a   :  { %v2984_v13 = vmax.f32 %v2866_v14, 0.0  ;;  %v2858_v36 = vadd.f32 %v5777_v5, %v2857_v4  ;;  %v3059_v47 = vsel %vm1750_vm3, %v3023_v12, 0.0  ;;  %v3021_v43 = vmul.f32 %v5783_v22, %v2981_v56 }
 0x49b   :  { %v4279_v63 = vpop.f32.mrf.mxu1  ;;  %3060 = vadd.xlane.f32.xlu0 %v3059_v47 }
 0x49c   :  { %v2982_v55 = vmax.f32 %v2858_v36, 0.0  ;;  %v2879_v2 = vadd.f32 %v4279_v63, %v5777_v5  ;;  %v3024_v8 = vmul.f32 %v5783_v22, %v2984_v13  ;;  %v3053_v17 = vsel %vm1750_vm3, %v3021_v43, 0.0 }
 0x49d   :  { %v2870_v16 = vpop.f32.mrf.mxu1 }
 0x49e   :  { %v2987_v1 = vmax.f32 %v2879_v2, 0.0  ;;  %v2871_v9 = vadd.f32 %v5777_v5, %v2870_v16  ;;  %v3062_v28 = vsel %vm1750_vm3, %v3024_v8, 0.0  ;;  %v3022_v0 = vmul.f32 %v5783_v22, %v2982_v55 }
 0x49f   :  { %v4280_v15 = vpop.f32.mrf.mxu1  ;;  %3063 = vadd.xlane.f32.xlu1 %v3062_v28  ;;  %3054 = vadd.xlane.f32.xlu0 %v3053_v17 }
 0x4a0   :  { %v2985_v48 = vmax.f32 %v2871_v9, 0.0  ;;  %v2882_v18 = vadd.f32 %v4280_v15, %v5777_v5  ;;  %v3027_v32 = vmul.f32 %v5783_v22, %v2987_v1  ;;  %v3056_v20 = vsel %vm1750_vm3, %v3022_v0, 0.0 }
 0x4a1   :  { %v2873_v25 = vpop.f32.mrf.mxu1 }
 0x4a2   :  { %v2988_v21 = vmax.f32 %v2882_v18, 0.0  ;;  %v2874_v10 = vadd.f32 %v5777_v5, %v2873_v25  ;;  %v3071_v46 = vsel %vm1750_vm3, %v3027_v32, 0.0  ;;  %v3025_v49 = vmul.f32 %v5783_v22, %v2985_v48 }
 0x4a3   :  { %v4283_v11 = vpop.f32.mrf.mxu1  ;;  %3057 = vadd.xlane.f32.xlu1 %v3056_v20  ;;  %3072 = vadd.xlane.f32.xlu0 %v3071_v46 }
 0x4a4   :  { %v2986_v53 = vmax.f32 %v2874_v10, 0.0  ;;  %v2895_v60 = vadd.f32 %v4283_v11, %v5777_v5  ;;  %v3028_v51 = vmul.f32 %v5783_v22, %v2988_v21  ;;  %v3065_v57 = vsel %vm1750_vm3, %v3025_v49, 0.0 }
 0x4a5   :  { %v2886_v59 = vpop.f32.mrf.mxu1 }
 0x4a6   :  { %v2991_v33 = vmax.f32 %v2895_v60, 0.0  ;;  %v2887_v37 = vadd.f32 %v5777_v5, %v2886_v59  ;;  %v3074_v38 = vsel %vm1750_vm3, %v3028_v51, 0.0  ;;  %v3026_v42 = vmul.f32 %v5783_v22, %v2986_v53 }
 0x4a7   :  { %v4284_v23 = vpop.f32.mrf.mxu1  ;;  %3075 = vadd.xlane.f32.xlu1 %v3074_v38  ;;  %3066 = vadd.xlane.f32.xlu0 %v3065_v57 }
 0x4a8   :  { %v2989_v26 = vmax.f32 %v2887_v37, 0.0  ;;  %v2898_v45 = vadd.f32 %v4284_v23, %v5777_v5  ;;  %v3031_v34 = vmul.f32 %v5783_v22, %v2991_v33  ;;  %v3068_v50 = vsel %vm1750_vm3, %v3026_v42, 0.0 }
 0x4a9   :  { %v2889_v41 = vpop.f32.mrf.mxu1 }
 0x4aa   :  { %v2992_v58 = vmax.f32 %v2898_v45, 0.0  ;;  %v2890_v27 = vadd.f32 %v5777_v5, %v2889_v41  ;;  %v3083_v3 = vsel %vm1750_vm3, %v3031_v34, 0.0  ;;  %v3029_v7 = vmul.f32 %v5783_v22, %v2989_v26 }
 0x4ab   :  { %v4287_v24 = vpop.f32.mrf.mxu1  ;;  %3069 = vadd.xlane.f32.xlu1 %v3068_v50  ;;  %3084 = vadd.xlane.f32.xlu0 %v3083_v3 }
 0x4ac   :  { %v2990_v19 = vmax.f32 %v2890_v27, 0.0  ;;  %v2911_v52 = vadd.f32 %v4287_v24, %v5777_v5  ;;  %v3032_v29 = vmul.f32 %v5783_v22, %v2992_v58  ;;  %v3077_v30 = vsel %vm1750_vm3, %v3029_v7, 0.0 }
 0x4ad   :  { %v2902_v40 = vpop.f32.mrf.mxu1 }
 0x4ae   :  { %v2995_v31 = vmax.f32 %v2911_v52, 0.0  ;;  %v2903_v61 = vadd.f32 %v5777_v5, %v2902_v40  ;;  %v3086_v6 = vsel %vm1750_vm3, %v3032_v29, 0.0  ;;  %v3030_v54 = vmul.f32 %v5783_v22, %v2990_v19 }
 0x4af   :  { %v4288_v39 = vpop.f32.mrf.mxu1  ;;  %3087 = vadd.xlane.f32.xlu1 %v3086_v6  ;;  %3078 = vadd.xlane.f32.xlu0 %v3077_v30 }
 0x4b0   :  { %v2993_v62 = vmax.f32 %v2903_v61, 0.0  ;;  %v2914_v35 = vadd.f32 %v4288_v39, %v5777_v5  ;;  %v3035_v44 = vmul.f32 %v5783_v22, %v2995_v31  ;;  %v3080_v14 = vsel %vm1750_vm3, %v3030_v54, 0.0 }
 0x4b1   :  { %v2905_v56 = vpop.f32.mrf.mxu1 }
 0x4b2   :  { %v2996_v12 = vmax.f32 %v2914_v35, 0.0  ;;  %v2906_v4 = vadd.f32 %v5777_v5, %v2905_v56  ;;  %v3095_v13 = vsel %vm1750_vm3, %v3035_v44, 0.0  ;;  %v3033_v36 = vmul.f32 %v5783_v22, %v2993_v62 }
 0x4b3   :  { %v4291_v47 = vpop.f32.mrf.mxu1  ;;  %3081 = vadd.xlane.f32.xlu1 %v3080_v14  ;;  %3096 = vadd.xlane.f32.xlu0 %v3095_v13 }
 0x4b4   :  { %v2994_v43 = vmax.f32 %v2906_v4, 0.0  ;;  %v2927_v63 = vadd.f32 %v4291_v47, %v5777_v5  ;;  %v3036_v55 = vmul.f32 %v5783_v22, %v2996_v12  ;;  %v3089_v8 = vsel %vm1750_vm3, %v3033_v36, 0.0 }
 0x4b5   :  { %v2918_v2 = vpop.f32.mrf.mxu1 }
 0x4b6   :  { %v2999_v16 = vmax.f32 %v2927_v63, 0.0  ;;  %v2919_v17 = vadd.f32 %v5777_v5, %v2918_v2  ;;  %v3098_v1 = vsel %vm1750_vm3, %v3036_v55, 0.0  ;;  %v3034_v9 = vmul.f32 %v5783_v22, %v2994_v43 }
 0x4b7   :  { %v4292_v28 = vpop.f32.mrf.mxu1  ;;  %3099 = vadd.xlane.f32.xlu1 %v3098_v1  ;;  %3090 = vadd.xlane.f32.xlu0 %v3089_v8 }
 0x4b8   :  { %v2997_v0 = vmax.f32 %v2919_v17, 0.0  ;;  %v2930_v15 = vadd.f32 %v4292_v28, %v5777_v5  ;;  %v3039_v48 = vmul.f32 %v5783_v22, %v2999_v16  ;;  %v3092_v32 = vsel %vm1750_vm3, %v3034_v9, 0.0 }
 0x4b9   :  { %v2921_v18 = vpop.f32.mrf.mxu1 }
 0x4ba   :  { %v3000_v25 = vmax.f32 %v2930_v15, 0.0  ;;  %v2922_v20 = vadd.f32 %v5777_v5, %v2921_v18  ;;  %v3107_v21 = vsel %vm1750_vm3, %v3039_v48, 0.0  ;;  %v3037_v10 = vmul.f32 %v5783_v22, %v2997_v0 }
 0x4bb   :  { %v4295_v46 = vpop.f32.mrf.mxu1  ;;  %3093 = vadd.xlane.f32.xlu1 %v3092_v32  ;;  %3108 = vadd.xlane.f32.xlu0 %v3107_v21 }
 0x4bc   :  { %v2998_v49 = vmax.f32 %v2922_v20, 0.0  ;;  %v2943_v11 = vadd.f32 %v4295_v46, %v5777_v5  ;;  %v3040_v53 = vmul.f32 %v5783_v22, %v3000_v25  ;;  %v3101_v51 = vsel %vm1750_vm3, %v3037_v10, 0.0  ;;  %v1753_v25 = vpop.xlane.xlu0 %1752 }
 0x4bd   :  { %v2934_v60 = vpop.f32.mrf.mxu1 }
 0x4be   :  { %v3003_v59 = vmax.f32 %v2943_v11, 0.0  ;;  %v2935_v57 = vadd.f32 %v5777_v5, %v2934_v60  ;;  %v3110_v33 = vsel %vm1750_vm3, %v3040_v53, 0.0  ;;  %v3038_v37 = vmul.f32 %v5783_v22, %v2998_v49  ;;  %v1759_v11 = vpop.xlane.xlu1 %1758 }
 0x4bf   :  { %v4296_v38 = vpop.f32.mrf.mxu1  ;;  %3111 = vadd.xlane.f32.xlu1 %v3110_v33  ;;  %3102 = vadd.xlane.f32.xlu0 %v3101_v51  ;;  %v5880_v33 = vld [vmem:[#allocation2] ss:$0 sm:$0xff] }
 0x4c0   :  { %v3001_v42 = vmax.f32 %v2935_v57, 0.0  ;;  %v2946_v23 = vadd.f32 %v4296_v38, %v5777_v5  ;;  %v3043_v26 = vmul.f32 %v5783_v22, %v3003_v59  ;;  %v3104_v34 = vsel %vm1750_vm3, %v3038_v37, 0.0  ;;  %v1756_v60 = vpop.xlane.xlu0 %1755 }
 0x4c1   :  { %v2937_v45 = vpop.f32.mrf.mxu1  ;;  %v1855_v38 = vadd.f32 %v5880_v33, %v1759_v11 }
 0x4c2   :  { %v3004_v41 = vmax.f32 %v2946_v23, 0.0  ;;  %v2938_v50 = vadd.f32 %v5777_v5, %v2937_v45  ;;  %v3119_v58 = vsel %vm1750_vm3, %v3043_v26, 0.0  ;;  %v3041_v27 = vmul.f32 %v5783_v22, %v3001_v42  ;;  %v1762_v59 = vpop.xlane.xlu1 %1761 }
 0x4c3   :  { %v4299_v3 = vpop.f32.mrf.mxu1  ;;  %3105 = vadd.xlane.f32.xlu1 %v3104_v34  ;;  %3120 = vadd.xlane.f32.xlu0 %v3119_v58  ;;  %v3706_v23 = vmul.f32 -1.442695, %v1855_v38 }
 0x4c4   :  { %v3002_v7 = vmax.f32 %v2938_v50, 0.0  ;;  %v2959_v24 = vadd.f32 %v4299_v3, %v5777_v5  ;;  %v3044_v19 = vmul.f32 %v5783_v22, %v3004_v41  ;;  %v3113_v29 = vsel %vm1750_vm3, %v3041_v27, 0.0  ;;  %v1771_v57 = vpop.xlane.xlu0 %1770 }
 0x4c5   :  { %v2950_v52 = vpop.f32.mrf.mxu1  ;;  %v1856_v41 = vadd.f32 %v5880_v33, %v1762_v59  ;;  %4379 = vpow2.f32 %v3706_v23  ;;  %v1854_v50 = vadd.f32 %v5880_v33, %v1756_v60 }
 0x4c6   :  { %v3007_v40 = vmax.f32 %v2959_v24, 0.0  ;;  %v2951_v30 = vadd.f32 %v5777_v5, %v2950_v52  ;;  %v3122_v31 = vsel %vm1750_vm3, %v3044_v19, 0.0  ;;  %v3042_v61 = vmul.f32 %v5783_v22, %v3002_v7  ;;  %v1774_v37 = vpop.xlane.xlu1 %1773 }
 0x4c7   :  { %v4300_v6 = vpop.f32.mrf.mxu1  ;;  %3123 = vadd.xlane.f32.xlu1 %v3122_v31  ;;  %3114 = vadd.xlane.f32.xlu0 %v3113_v29  ;;  %v3707_v3 = vmul.f32 -1.442695, %v1856_v41  ;;  %v3705_v7 = vmul.f32 -1.442695, %v1854_v50  ;;  %v1859_v29 = vadd.f32 %v5880_v33, %v1771_v57  ;;  %v1860_v31 = vadd.f32 %v5880_v33, %v1774_v37 }
 0x4c8   :  { %v3005_v54 = vmax.f32 %v2951_v30, 0.0  ;;  %v2962_v39 = vadd.f32 %v4300_v6, %v5777_v5  ;;  %v3047_v62 = vmul.f32 %v5783_v22, %v3007_v40  ;;  %v3116_v44 = vsel %vm1750_vm3, %v3042_v61, 0.0  ;;  %v1765_v42 = vpop.xlane.xlu0 %1764 }
 0x4c9   :  { %v2953_v35 = vpop.f32.mrf.mxu1  ;;  %v1857_v61 = vadd.f32 %v5880_v33, %v1765_v42  ;;  %v3710_v6 = vmul.f32 -1.442695, %v1859_v29 }
 0x4ca   :  { %v3008_v56 = vmax.f32 %v2962_v39, 0.0  ;;  %v2954_v14 = vadd.f32 %v5777_v5, %v2953_v35  ;;  %v3131_v12 = vsel %vm1750_vm3, %v3047_v62, 0.0  ;;  %v3045_v4 = vmul.f32 %v5783_v22, %v3005_v54  ;;  %v1768_v26 = vpop.xlane.xlu1 %1767 }
 0x4cb   :  { %v4303_v13 = vpop.f32.mrf.mxu1  ;;  %3117 = vadd.xlane.f32.xlu1 %v3116_v44  ;;  %3132 = vadd.xlane.f32.xlu0 %v3131_v12  ;;  %v1858_v62 = vadd.f32 %v5880_v33, %v1768_v26  ;;  %v3708_v12 = vmul.f32 -1.442695, %v1857_v61 }
 0x4cc   :  { %v3006_v36 = vmax.f32 %v2954_v14, 0.0  ;;  %v2975_v47 = vadd.f32 %v4303_v13, %v5777_v5  ;;  %v3048_v43 = vmul.f32 %v5783_v22, %v3008_v56  ;;  %v3125_v8 = vsel %vm1750_vm3, %v3045_v4, 0.0  ;;  %v1783_v45 = vpop.xlane.xlu0 %1782 }
 0x4cd   :  { %v2966_v63 = vpop.f32.mrf.mxu1  ;;  %v3711_v56 = vmul.f32 -1.442695, %v1860_v31  ;;  %v1863_v14 = vadd.f32 %v5880_v33, %v1783_v45 }
 0x4ce   :  { %v2967_v55 = vadd.f32 %v5777_v5, %v2966_v63  ;;  %v3134_v2 = vsel %vm1750_vm3, %v3048_v43, 0.0  ;;  %v3046_v16 = vmul.f32 %v5783_v22, %v3006_v36  ;;  %v3011_v1 = vmax.f32 %v2975_v47, 0.0  ;;  %v1786_v58 = vpop.xlane.xlu1 %1785 }
 0x4cf   :  { %v4304_v17 = vpop.f32.mrf.mxu1  ;;  %3135 = vadd.xlane.f32.xlu1 %v3134_v2  ;;  %3126 = vadd.xlane.f32.xlu0 %v3125_v8  ;;  %v1864_v4 = vadd.f32 %v5880_v33, %v1786_v58  ;;  %v3709_v47 = vmul.f32 -1.442695, %v1858_v62 }
 0x4d0   :  { %v3009_v9 = vmax.f32 %v2967_v55, 0.0  ;;  %v2978_v28 = vadd.f32 %v4304_v17, %v5777_v5  ;;  %v3128_v18 = vsel %vm1750_vm3, %v3046_v16, 0.0  ;;  %v3051_v10 = vmul.f32 %v5783_v22, %v3011_v1  ;;  %v1777_v27 = vpop.xlane.xlu0 %1776 }
 0x4d1   :  { %v2969_v0 = vpop.f32.mrf.mxu1  ;;  %v3714_v55 = vmul.f32 -1.442695, %v1863_v14  ;;  %v1861_v2 = vadd.f32 %v5880_v33, %v1777_v27  ;;  %v3715_v8 = vmul.f32 -1.442695, %v1864_v4 }
 0x4d2   :  { %v3012_v15 = vmax.f32 %v2978_v28, 0.0  ;;  %v2970_v48 = vadd.f32 %v5777_v5, %v2969_v0  ;;  %v3049_v32 = vmul.f32 %v5783_v22, %v3009_v9  ;;  %v3143_v5 = vsel %vm1750_vm3, %v3051_v10, 0.0  ;;  %v1780_v24 = vpop.xlane.xlu1 %1779  ;;  %v4380_v30 = vpop.eup %4379 }
 0x4d3   :  { %3129 = vadd.xlane.f32.xlu1 %v3128_v18  ;;  %v1983_v39 = vadd.f32 1.0, %v4380_v30  ;;  %v1862_v16 = vadd.f32 %v5880_v33, %v1780_v24 }
 0x4d4   :  { %v3010_v20 = vmax.f32 %v2970_v48, 0.0  ;;  %v3137_v21 = vsel %vm1750_vm3, %v3049_v32, 0.0  ;;  %v3052_v46 = vmul.f32 %v5783_v22, %v3012_v15  ;;  %v1795_v19 = vpop.xlane.xlu0 %1794  ;;  %v3712_v15 = vmul.f32 -1.442695, %v1861_v2 }
 0x4d5   :  { %3138 = vadd.xlane.f32.xlu0 %v3137_v21  ;;  %v1867_v9 = vadd.f32 %v5880_v33, %v1795_v19  ;;  %v3713_v18 = vmul.f32 -1.442695, %v1862_v16 }
 0x4d6   :  { %v3050_v49 = vmul.f32 %v5783_v22, %v3010_v20  ;;  %v3146_v51 = vsel %vm1750_vm3, %v3052_v46, 0.0  ;;  %v1853_v22 = vadd.f32 %v5880_v33, %v1753_v25  ;;  %v1798_v52 = vpop.xlane.xlu1 %1797 }
 0x4d7   :  { %v1868_v0 = vadd.f32 %v5880_v33, %v1798_v52  ;;  %v3718_v21 = vmul.f32 -1.442695, %v1867_v9 }
 0x4d8   :  { %v3140_v53 = vsel %vm1750_vm3, %v3050_v49, 0.0  ;;  %v3704_v34 = vmul.f32 -1.442695, %v1853_v22  ;;  %v1789_v40 = vpop.xlane.xlu0 %1788 }
 0x4d9   :  { %3141 = vadd.xlane.f32.xlu1 %v3140_v53  ;;  %3144 = vadd.xlane.f32.xlu0 %v3143_v5  ;;  %v1865_v48 = vadd.f32 %v5880_v33, %v1789_v40  ;;  %v3719_v46 = vmul.f32 -1.442695, %v1868_v0 }
 0x4da   :  { %4381 = vpow2.f32 %v3704_v34  ;;  %v1792_v35 = vpop.xlane.xlu1 %1791 }
 0x4db   :  { %4383 = vpow2.f32 %v3707_v3  ;;  %v1866_v32 = vadd.f32 %v5880_v33, %v1792_v35  ;;  %v3716_v11 = vmul.f32 -1.442695, %v1865_v48 }
 0x4dc   :  { %4385 = vpow2.f32 %v3705_v7  ;;  %v1807_v44 = vpop.xlane.xlu0 %1806 }
 0x4dd   :  { %3147 = vadd.xlane.f32.xlu1 %v3146_v51  ;;  %4387 = vpow2.f32 %v3710_v6  ;;  %v1871_v10 = vadd.f32 %v5880_v33, %v1807_v44  ;;  %v3717_v5 = vmul.f32 -1.442695, %v1866_v32 }
 0x4de   :  { %4389 = vrcp.f32 %v1983_v39  ;;  %v1810_v43 = vpop.xlane.xlu1 %1809 }
 0x4df   :  { %4391 = vpow2.f32 %v3711_v56  ;;  %v1872_v49 = vadd.f32 %v5880_v33, %v1810_v43  ;;  %v3722_v59 = vmul.f32 -1.442695, %v1871_v10 }
 0x4e0   :  { %4393 = vpow2.f32 %v3708_v12  ;;  %v1801_v17 = vpop.xlane.xlu0 %1800 }
 0x4e1   :  { %v1869_v53 = vadd.f32 %v5880_v33, %v1801_v17  ;;  %v3723_v37 = vmul.f32 -1.442695, %v1872_v49 }
 0x4e2   :  { %v1804_v25 = vpop.xlane.xlu1 %1803 }
 0x4e3   :  { %v1870_v60 = vadd.f32 %v5880_v33, %v1804_v25  ;;  %v3720_v23 = vmul.f32 -1.442695, %v1869_v53 }
 0x4e4   :  { %v1819_v20 = vpop.xlane.xlu0 %1818 }
 0x4e5   :  { %v1875_v38 = vadd.f32 %v5880_v33, %v1819_v20  ;;  %v3721_v45 = vmul.f32 -1.442695, %v1870_v60 }
 0x4e6   :  { %v1822_v51 = vpop.xlane.xlu1 %1821 }
 0x4e7   :  { %v4382_v54 = vpop.eup %4381  ;;  %v1876_v50 = vadd.f32 %v5880_v33, %v1822_v51  ;;  %v3726_v27 = vmul.f32 -1.442695, %v1875_v38  ;;  %v5926_v51 = vld [vmem:[#allocation3] ss:$0 sm:$0xff] }
 0x4e8   :  { %v1981_v13 = vadd.f32 1.0, %v4382_v54  ;;  %v4384_v36 = vpop.eup %4383  ;;  %v1813_v42 = vpop.xlane.xlu0 %1812 }
 0x4e9   :  { %v4386_v63 = vpop.eup %4385  ;;  %v1984_v1 = vadd.f32 1.0, %v4384_v36  ;;  %v3727_v30 = vmul.f32 -1.442695, %v1876_v50  ;;  %v1873_v31 = vadd.f32 %v5880_v33, %v1813_v42 }
 0x4ea   :  { %4395 = vrcp.f32 %v1981_v13  ;;  %v1982_v28 = vadd.f32 1.0, %v4386_v63  ;;  %v4388_v57 = vpop.eup %4387  ;;  %v1816_v3 = vpop.xlane.xlu1 %1815 }
 0x4eb   :  { %4397 = vpow2.f32 %v3709_v47  ;;  %v5903_v22 = vpop.eup %4389  ;;  %v1987_v41 = vadd.f32 1.0, %v4388_v57  ;;  %v1874_v54 = vadd.f32 %v5880_v33, %v1816_v3  ;;  %v3724_v4 = vmul.f32 -1.442695, %v1873_v31 }
 0x4ec   :  { %4399 = vpow2.f32 %v3714_v55  ;;  %v4392_v26 = vpop.eup %4391  ;;  %v1831_v7 = vpop.xlane.xlu0 %1830 }
 0x4ed   :  { %4401 = vpow2.f32 %v3715_v8  ;;  %v4394_v34 = vpop.eup %4393  ;;  %v1988_v19 = vadd.f32 1.0, %v4392_v26  ;;  %v3725_v36 = vmul.f32 -1.442695, %v1874_v54  ;;  %v1879_v20 = vadd.f32 %v5880_v33, %v1831_v7 }
 0x4ee   :  { %4403 = vrcp.f32 %v1984_v1  ;;  %v1985_v29 = vadd.f32 1.0, %v4394_v34  ;;  %v1834_v39 = vpop.xlane.xlu1 %1833 }
 0x4ef   :  { %4405 = vrcp.f32 %v1982_v28  ;;  %v1880_v60 = vadd.f32 %v5880_v33, %v1834_v39  ;;  %v3730_v57 = vmul.f32 -1.442695, %v1879_v20 }
 0x4f0   :  { %4407 = vpow2.f32 %v3712_v15  ;;  %v1825_v14 = vpop.xlane.xlu0 %1824 }
 0x4f1   :  { %4409 = vpow2.f32 %v3713_v18  ;;  %v1877_v42 = vadd.f32 %v5880_v33, %v1825_v14  ;;  %v3731_v50 = vmul.f32 -1.442695, %v1880_v60 }
 0x4f2   :  { %4411 = vpow2.f32 %v3718_v21  ;;  %v1828_v2 = vpop.xlane.xlu1 %1827 }
 0x4f3   :  { %4413 = vpow2.f32 %v3719_v46  ;;  %v1878_v54 = vadd.f32 %v5880_v33, %v1828_v2 }
 0x4f4   :  { %4415 = vpow2.f32 %v3716_v11  ;;  %v5914_v8 = vpop.xlane.xlu0 %1842 }
 0x4f5   :  { %4417 = vpow2.f32 %v3717_v5  ;;  %v3729_v2 = vmul.f32 -1.442695, %v1878_v54 }
 0x4f6   :  { %4419 = vpow2.f32 %v3722_v59  ;;  %v5916_v18 = vpop.xlane.xlu1 %1845 }
 0x4f7   :  { %v5906_v58 = vpop.eup %4395  ;;  %4421 = vpow2.f32 %v3723_v37 }
 0x4f8   :  { %v4398_v24 = vpop.eup %4397  ;;  %4423 = vpow2.f32 %v3720_v23  ;;  %v5921_v46 = vpop.xlane.xlu0 %1836 }
 0x4f9   :  { %v4400_v52 = vpop.eup %4399  ;;  %4425 = vpow2.f32 %v3721_v45  ;;  %v1986_v6 = vadd.f32 1.0, %v4398_v24 }
 0x4fa   :  { %v4402_v40 = vpop.eup %4401  ;;  %4427 = vrcp.f32 %v1987_v41  ;;  %v1991_v35 = vadd.f32 1.0, %v4400_v52  ;;  %v5931_v23 = vpop.xlane.xlu1 %1839 }
 0x4fb   :  { %v5909_v61 = vpop.eup %4403  ;;  %4429 = vpow2.f32 %v3726_v27  ;;  %v1992_v56 = vadd.f32 1.0, %v4402_v40 }
 0x4fc   :  { %v5912_v62 = vpop.eup %4405  ;;  %4431 = vrcp.f32 %v1988_v19  ;;  %v3728_v19 = vmul.f32 -1.442695, %v1877_v42 }
 0x4fd   :  { %v4408_v44 = vpop.eup %4407  ;;  %4433 = vrcp.f32 %v1985_v29 }
 0x4fe   :  { %v4410_v12 = vpop.eup %4409  ;;  %4435 = vpow2.f32 %v3727_v30  ;;  %v1989_v43 = vadd.f32 1.0, %v4408_v44 }
 0x4ff   :  { %v4412_v13 = vpop.eup %4411  ;;  %4437 = vrcp.f32 %v1986_v6  ;;  %v1990_v55 = vadd.f32 1.0, %v4410_v12 }
 0x500   :  { %v4414_v47 = vpop.eup %4413  ;;  %4439 = vrcp.f32 %v1991_v35  ;;  %v1995_v17 = vadd.f32 1.0, %v4412_v13 }
 0x501   :  { %v4416_v63 = vpop.eup %4415  ;;  %4441 = vrcp.f32 %v1992_v56  ;;  %v1996_v9 = vadd.f32 1.0, %v4414_v47 }
 0x502   :  { %v4418_v16 = vpop.eup %4417  ;;  %4443 = vpow2.f32 %v3724_v4  ;;  %v1993_v0 = vadd.f32 1.0, %v4416_v63  ;;  %v1883_v4 = vadd.f32 %v5880_v33, %v5914_v8 }
 0x503   :  { %v4420_v1 = vpop.eup %4419  ;;  %4445 = vpow2.f32 %v3725_v36  ;;  %v1994_v48 = vadd.f32 1.0, %v4418_v16 }
 0x504   :  { %v4422_v28 = vpop.eup %4421  ;;  %4447 = vrcp.f32 %v1989_v43  ;;  %v1999_v25 = vadd.f32 1.0, %v4420_v1 }
 0x505   :  { %v4424_v15 = vpop.eup %4423  ;;  %4449 = vrcp.f32 %v1990_v55  ;;  %v2000_v10 = vadd.f32 1.0, %v4422_v28  ;;  %v3734_v28 = vmul.f32 -1.442695, %v1883_v4 }
 0x506   :  { %v4426_v32 = vpop.eup %4425  ;;  %4451 = vrcp.f32 %v1995_v17  ;;  %v1997_v11 = vadd.f32 1.0, %v4424_v15  ;;  %v1884_v17 = vadd.f32 %v5880_v33, %v5916_v18 }
 0x507   :  { %v5919_v21 = vpop.eup %4427  ;;  %4453 = vrcp.f32 %v1996_v9  ;;  %v1998_v5 = vadd.f32 1.0, %v4426_v32 }
 0x508   :  { %v4430_v49 = vpop.eup %4429  ;;  %4455 = vrcp.f32 %v1993_v0  ;;  %v1881_v0 = vadd.f32 %v5880_v33, %v5921_v46 }
 0x509   :  { %v5923_v53 = vpop.eup %4431  ;;  %4457 = vrcp.f32 %v1994_v48  ;;  %v2003_v38 = vadd.f32 1.0, %v4430_v49  ;;  %v3735_v49 = vmul.f32 -1.442695, %v1884_v17 }
 0x50a   :  { %v5928_v59 = vpop.eup %4433  ;;  %4459 = vrcp.f32 %v1999_v25  ;;  %v3732_v46 = vmul.f32 -1.442695, %v1881_v0 }
 0x50b   :  { %v4436_v37 = vpop.eup %4435  ;;  %4461 = vrcp.f32 %v2000_v10 }
 0x50c   :  { %v5933_v45 = vpop.eup %4437  ;;  %4463 = vrcp.f32 %v1997_v11  ;;  %v2004_v3 = vadd.f32 1.0, %v4436_v37 }
 0x50d   :  { %v5936_v41 = vpop.eup %4439  ;;  %4465 = vrcp.f32 %v1998_v5 }
 0x50e   :  { %v5938_v27 = vpop.eup %4441  ;;  %4467 = vpow2.f32 %v3730_v57  ;;  %v1882_v57 = vadd.f32 %v5880_v33, %v5931_v23 }
 0x50f   :  { %v4444_v24 = vpop.eup %4443  ;;  %4469 = vrcp.f32 %v2003_v38 }
 0x510   :  { %v4446_v40 = vpop.eup %4445  ;;  %v2001_v35 = vadd.f32 1.0, %v4444_v24  ;;  %v3733_v33 = vmul.f32 -1.442695, %v1882_v57 }
 0x511   :  { %v5942_v6 = vpop.eup %4447  ;;  %v2002_v12 = vadd.f32 1.0, %v4446_v40 }
 0x512   :  { %v5945_v39 = vpop.eup %4449 }
 0x513   :  { %v5947_v14 = vpop.eup %4451 }
 0x514   :  { %v5951_v47 = vpop.eup %4453 }
 0x515   :  { %v5955_v55 = vpop.eup %4455 }
 0x516   :  { %v5957_v16 = vpop.eup %4457 }
 0x517   :  { %v5961_v9 = vpop.eup %4459 }
 0x518   :  { %v5965_v32 = vpop.eup %4461 }
 0x519   :  { %v5969_v10 = vpop.eup %4463 }
 0x51a   :  { %v5971_v18 = vpop.eup %4465 }
 0x51b   :  { %v5973_v60 = vpop.eup %4467 }
 0x51c   :  { %v5977_v42 = vpop.eup %4469 }
 0x524   :  { %v3061_v26 = vpop.xlane.xlu0 %3060 }
 0x525   :  { %v3157_v34 = vadd.f32 %v5926_v51, %v3061_v26 }
 0x527   :  { %v3787_v7 = vmul.f32 -1.442695, %v3157_v34 }
 0x528   :  { %v3064_v52 = vpop.xlane.xlu1 %3063  ;;  %v3055_v29 = vpop.xlane.xlu0 %3054 }
 0x529   :  { %4471 = vpow2.f32 %v3787_v7  ;;  %v3158_v30 = vadd.f32 %v5926_v51, %v3064_v52  ;;  %v3155_v31 = vadd.f32 %v5926_v51, %v3055_v29 }
 0x52a   :  { %4473 = vpow2.f32 %v3731_v50 }
 0x52b   :  { %4475 = vrcp.f32 %v2004_v3  ;;  %v3788_v44 = vmul.f32 -1.442695, %v3158_v30  ;;  %v3785_v56 = vmul.f32 -1.442695, %v3155_v31 }
 0x52c   :  { %4477 = vpow2.f32 %v3728_v19  ;;  %v3058_v13 = vpop.xlane.xlu1 %3057  ;;  %v3073_v36 = vpop.xlane.xlu0 %3072 }
 0x52d   :  { %4479 = vpow2.f32 %v3788_v44  ;;  %v3156_v43 = vadd.f32 %v5926_v51, %v3058_v13  ;;  %v3161_v63 = vadd.f32 %v5926_v51, %v3073_v36 }
 0x52e   :  { %4481 = vpow2.f32 %v3785_v56 }
 0x52f   :  { %4483 = vrcp.f32 %v2001_v35  ;;  %v3786_v8 = vmul.f32 -1.442695, %v3156_v43  ;;  %v3791_v1 = vmul.f32 -1.442695, %v3161_v63 }
 0x530   :  { %4485 = vrcp.f32 %v2002_v12  ;;  %v3076_v15 = vpop.xlane.xlu1 %3075  ;;  %v3067_v48 = vpop.xlane.xlu0 %3066 }
 0x531   :  { %4487 = vpow2.f32 %v3786_v8  ;;  %v3162_v25 = vadd.f32 %v5926_v51, %v3076_v15  ;;  %v3159_v20 = vadd.f32 %v5926_v51, %v3067_v48 }
 0x532   :  { %4489 = vpow2.f32 %v3791_v1 }
 0x533   :  { %4491 = vpow2.f32 %v3729_v2  ;;  %v3792_v11 = vmul.f32 -1.442695, %v3162_v25  ;;  %v3789_v5 = vmul.f32 -1.442695, %v3159_v20 }
 0x534   :  { %4493 = vpow2.f32 %v3734_v28  ;;  %v3070_v37 = vpop.xlane.xlu1 %3069  ;;  %v3085_v38 = vpop.xlane.xlu0 %3084 }
 0x535   :  { %4495 = vpow2.f32 %v3792_v11  ;;  %v3160_v26 = vadd.f32 %v5926_v51, %v3070_v37  ;;  %v3165_v34 = vadd.f32 %v5926_v51, %v3085_v38 }
 0x536   :  { %v4472_v50 = vpop.eup %4471  ;;  %4497 = vpow2.f32 %v3789_v5 }
 0x537   :  { %v5981_v3 = vpop.eup %4473  ;;  %4499 = vpow2.f32 %v3735_v49  ;;  %v3285_v7 = vadd.f32 1.0, %v4472_v50  ;;  %v3790_v24 = vmul.f32 -1.442695, %v3160_v26  ;;  %v3795_v19 = vmul.f32 -1.442695, %v3165_v34 }
 0x538   :  { %v5983_v52 = vpop.eup %4475  ;;  %4501 = vpow2.f32 %v3732_v46  ;;  %v3088_v23 = vpop.xlane.xlu1 %3087 }
 0x539   :  { %v3079_v29 = vpop.xlane.xlu0 %3078  ;;  %v5985_v40 = vpop.eup %4477  ;;  %4503 = vrcp.f32 %v3285_v7  ;;  %v3166_v30 = vadd.f32 %v5926_v51, %v3088_v23 }
 0x53a   :  { %v3163_v31 = vadd.f32 %v5926_v51, %v3079_v29  ;;  %v4480_v54 = vpop.eup %4479  ;;  %4505 = vpow2.f32 %v3790_v24 }
 0x53b   :  { %v4482_v35 = vpop.eup %4481  ;;  %v3286_v44 = vadd.f32 1.0, %v4480_v54  ;;  %4507 = vpow2.f32 %v3795_v19  ;;  %v3796_v56 = vmul.f32 -1.442695, %v3166_v30 }
 0x53c   :  { %v5989_v12 = vpop.eup %4483  ;;  %4509 = vpow2.f32 %v3733_v33  ;;  %v3283_v4 = vadd.f32 1.0, %v4482_v35  ;;  %v3793_v13 = vmul.f32 -1.442695, %v3163_v31  ;;  %v3082_v36 = vpop.xlane.xlu1 %3081 }
 0x53d   :  { %v3097_v43 = vpop.xlane.xlu0 %3096  ;;  %v5991_v63 = vpop.eup %4485  ;;  %4511 = vrcp.f32 %v3286_v44  ;;  %v3164_v2 = vadd.f32 %v5926_v51, %v3082_v36 }
 0x53e   :  { %v3169_v17 = vadd.f32 %v5926_v51, %v3097_v43  ;;  %v4488_v8 = vpop.eup %4487  ;;  %4513 = vrcp.f32 %v3283_v4 }
 0x53f   :  { %v4490_v1 = vpop.eup %4489  ;;  %v3284_v28 = vadd.f32 1.0, %v4488_v8  ;;  %4515 = vpow2.f32 %v3796_v56  ;;  %v3794_v0 = vmul.f32 -1.442695, %v3164_v2 }
 0x540   :  { %v5995_v15 = vpop.eup %4491  ;;  %v3289_v48 = vadd.f32 1.0, %v4490_v1  ;;  %4517 = vpow2.f32 %v3793_v13  ;;  %v3799_v25 = vmul.f32 -1.442695, %v3169_v17  ;;  %v3100_v20 = vpop.xlane.xlu1 %3099 }
 0x541   :  { %v3091_v49 = vpop.xlane.xlu0 %3090  ;;  %v5997_v11 = vpop.eup %4493  ;;  %4519 = vrcp.f32 %v3284_v28  ;;  %v3170_v5 = vadd.f32 %v5926_v51, %v3100_v20 }
 0x542   :  { %v3167_v46 = vadd.f32 %v5926_v51, %v3091_v49  ;;  %v4496_v57 = vpop.eup %4495  ;;  %4521 = vrcp.f32 %v3289_v48 }
 0x543   :  { %v4498_v37 = vpop.eup %4497  ;;  %v3290_v38 = vadd.f32 1.0, %v4496_v57  ;;  %4523 = vpow2.f32 %v3794_v0  ;;  %v3800_v26 = vmul.f32 -1.442695, %v3170_v5 }
 0x544   :  { %v6001_v34 = vpop.eup %4499  ;;  %v3287_v50 = vadd.f32 1.0, %v4498_v37  ;;  %4525 = vpow2.f32 %v3799_v25  ;;  %v3797_v7 = vmul.f32 -1.442695, %v3167_v46  ;;  %v3094_v24 = vpop.xlane.xlu1 %3093 }
 0x545   :  { %v3109_v19 = vpop.xlane.xlu0 %3108  ;;  %v6003_v33 = vpop.eup %4501  ;;  %4527 = vrcp.f32 %v3290_v38  ;;  %v3168_v23 = vadd.f32 %v5926_v51, %v3094_v24 }
 0x546   :  { %v3173_v29 = vadd.f32 %v5926_v51, %v3109_v19  ;;  %v4504_v30 = vpop.eup %4503  ;;  %4529 = vrcp.f32 %v3287_v50 }
 0x547   :  { %v4506_v31 = vpop.eup %4505  ;;  %4531 = vpow2.f32 %v3800_v26  ;;  %v3798_v54 = vmul.f32 -1.442695, %v3168_v23  ;;  %v3381_v35 = vmul.f32 %v4504_v30, %v5903_v22 }
 0x548   :  { %v4508_v44 = vpop.eup %4507  ;;  %v3288_v56 = vadd.f32 1.0, %v4506_v31  ;;  %4533 = vpow2.f32 %v3797_v7  ;;  %v3803_v4 = vmul.f32 -1.442695, %v3173_v29  ;;  %v3112_v13 = vpop.xlane.xlu1 %3111 }
 0x549   :  { %v3103_v36 = vpop.xlane.xlu0 %3102  ;;  %v6008_v43 = vpop.eup %4509  ;;  %v3293_v2 = vadd.f32 1.0, %v4508_v44  ;;  %4535 = vpow2.f32 %v3798_v54  ;;  %v3174_v17 = vadd.f32 %v5926_v51, %v3112_v13  ;;  %3447 = vrot.lane.b32.xlu1 %v3381_v35, %s4636_s16 }
 0x54a   :  { %v3171_v8 = vadd.f32 %v5926_v51, %v3103_v36  ;;  %v4512_v1 = vpop.eup %4511  ;;  %4537 = vrcp.f32 %v3288_v56 }
 0x54b   :  { %v4514_v28 = vpop.eup %4513  ;;  %4539 = vrcp.f32 %v3293_v2  ;;  %v3804_v0 = vmul.f32 -1.442695, %v3174_v17  ;;  %v3382_v25 = vmul.f32 %v4512_v1, %v5909_v61 }
 0x54c   :  { %v3801_v48 = vmul.f32 -1.442695, %v3171_v8  ;;  %v4516_v20 = vpop.eup %4515  ;;  %4541 = vpow2.f32 %v3803_v4  ;;  %v3106_v49 = vpop.xlane.xlu1 %3105  ;;  %v3379_v46 = vmul.f32 %v4514_v28, %v5906_v58 }
 0x54d   :  { %v3121_v5 = vpop.xlane.xlu0 %3120  ;;  %v4518_v57 = vpop.eup %4517  ;;  %v3294_v37 = vadd.f32 1.0, %v4516_v20  ;;  %4543 = vpow2.f32 %v3804_v0  ;;  %v3172_v38 = vadd.f32 %v5926_v51, %v3106_v49  ;;  %3449 = vrot.lane.b32.xlu1 %v3382_v25, %s4636_s16 }
 0x54e   :  { %v3177_v26 = vadd.f32 %v5926_v51, %v3121_v5  ;;  %v4520_v50 = vpop.eup %4519  ;;  %v3291_v7 = vadd.f32 1.0, %v4518_v57  ;;  %4545 = vpow2.f32 %v3801_v48  ;;  %3443 = vrot.lane.b32.xlu0 %v3379_v46, %s4636_s16 }
 0x54f   :  { %v4522_v24 = vpop.eup %4521  ;;  %4547 = vrcp.f32 %v3294_v37  ;;  %v3802_v19 = vmul.f32 -1.442695, %v3172_v38  ;;  %v3380_v29 = vmul.f32 %v4520_v50, %v5912_v62 }
 0x550   :  { %v3807_v23 = vmul.f32 -1.442695, %v3177_v26  ;;  %v4524_v30 = vpop.eup %4523  ;;  %4549 = vrcp.f32 %v3291_v7  ;;  %v3124_v31 = vpop.xlane.xlu1 %3123  ;;  %v3385_v35 = vmul.f32 %v4522_v24, %v5919_v21 }
 0x551   :  { %v3115_v54 = vpop.xlane.xlu0 %3114  ;;  %v4526_v44 = vpop.eup %4525  ;;  %v3292_v56 = vadd.f32 1.0, %v4524_v30  ;;  %4551 = vpow2.f32 %v3802_v19  ;;  %v3178_v4 = vadd.f32 %v5926_v51, %v3124_v31  ;;  %3445 = vrot.lane.b32.xlu1 %v3380_v29, %s4636_s16 }
 0x552   :  { %v3175_v13 = vadd.f32 %v5926_v51, %v3115_v54  ;;  %v4528_v36 = vpop.eup %4527  ;;  %v3297_v2 = vadd.f32 1.0, %v4526_v44  ;;  %4553 = vpow2.f32 %v3807_v23  ;;  %3455 = vrot.lane.b32.xlu0 %v3385_v35, %s4636_s16 }
 0x553   :  { %v4530_v17 = vpop.eup %4529  ;;  %4555 = vrcp.f32 %v3292_v56  ;;  %v3808_v8 = vmul.f32 -1.442695, %v3178_v4  ;;  %v3386_v28 = vmul.f32 %v4528_v36, %v5923_v53 }
 0x554   :  { %v3805_v1 = vmul.f32 -1.442695, %v3175_v13  ;;  %v4532_v0 = vpop.eup %4531  ;;  %4557 = vrcp.f32 %v3297_v2  ;;  %v3118_v48 = vpop.xlane.xlu1 %3117  ;;  %v3383_v20 = vmul.f32 %v4530_v17, %v5928_v59 }
 0x555   :  { %v3133_v25 = vpop.xlane.xlu0 %3132  ;;  %v4534_v49 = vpop.eup %4533  ;;  %v3298_v5 = vadd.f32 1.0, %v4532_v0  ;;  %4559 = vpow2.f32 %v3808_v8  ;;  %v3176_v46 = vadd.f32 %v5926_v51, %v3118_v48  ;;  %3457 = vrot.lane.b32.xlu1 %v3386_v28, %s4636_s16 }
 0x556   :  { %v3181_v57 = vadd.f32 %v5926_v51, %v3133_v25  ;;  %v4536_v37 = vpop.eup %4535  ;;  %v3295_v38 = vadd.f32 1.0, %v4534_v49  ;;  %4561 = vpow2.f32 %v3805_v1  ;;  %3451 = vrot.lane.b32.xlu0 %v3383_v20, %s4636_s16 }
 0x557   :  { %v4538_v26 = vpop.eup %4537  ;;  %4563 = vrcp.f32 %v3298_v5  ;;  %v3296_v50 = vadd.f32 1.0, %v4536_v37  ;;  %v3806_v7 = vmul.f32 -1.442695, %v3176_v46 }
 0x558   :  { %v3811_v24 = vmul.f32 -1.442695, %v3181_v57  ;;  %v4540_v19 = vpop.eup %4539  ;;  %4565 = vrcp.f32 %v3295_v38  ;;  %v3136_v23 = vpop.xlane.xlu1 %3135  ;;  %v3384_v30 = vmul.f32 %v4538_v26, %v5933_v45 }
 0x559   :  { %v3127_v29 = vpop.xlane.xlu0 %3126  ;;  %v4542_v31 = vpop.eup %4541  ;;  %4567 = vrcp.f32 %v3296_v50  ;;  %v3182_v54 = vadd.f32 %v5926_v51, %v3136_v23  ;;  %v3389_v44 = vmul.f32 %v4540_v19, %v5936_v41 }
 0x55a   :  { %v3179_v35 = vadd.f32 %v5926_v51, %v3127_v29  ;;  %v4544_v56 = vpop.eup %4543  ;;  %v3301_v4 = vadd.f32 1.0, %v4542_v31  ;;  %4569 = vpow2.f32 %v3806_v7  ;;  %3453 = vrot.lane.b32.xlu1 %v3384_v30, %s4636_s16 }
 0x55b   :  { %v4546_v13 = vpop.eup %4545  ;;  %v3302_v36 = vadd.f32 1.0, %v4544_v56  ;;  %4571 = vpow2.f32 %v3811_v24  ;;  %v3812_v2 = vmul.f32 -1.442695, %v3182_v54  ;;  %3463 = vrot.lane.b32.xlu0 %v3389_v44, %s4636_s16 }
 0x55c   :  { %v4548_v17 = vpop.eup %4547  ;;  %4573 = vrcp.f32 %v3301_v4  ;;  %v3299_v8 = vadd.f32 1.0, %v4546_v13  ;;  %v3809_v1 = vmul.f32 -1.442695, %v3179_v35  ;;  %v3130_v28 = vpop.xlane.xlu1 %3129  ;;  %v2007_v13 = vadd.f32 1.0, %v5973_v60 }
 0x55d   :  { %v4550_v0 = vpop.eup %4549  ;;  %4575 = vrcp.f32 %v3302_v36  ;;  %v3180_v48 = vadd.f32 %v5926_v51, %v3130_v28  ;;  %v3390_v25 = vmul.f32 %v4548_v17, %v5938_v27 }
 0x55e   :  { %v4552_v20 = vpop.eup %4551  ;;  %4577 = vrcp.f32 %v3299_v8  ;;  %v3387_v49 = vmul.f32 %v4550_v0, %v5942_v6  ;;  %v3139_v5 = vpop.xlane.xlu0 %3138 }
 0x55f   :  { %v4554_v46 = vpop.eup %4553  ;;  %v3300_v57 = vadd.f32 1.0, %v4552_v20  ;;  %4579 = vpow2.f32 %v3812_v2  ;;  %v3810_v37 = vmul.f32 -1.442695, %v3180_v48  ;;  %3465 = vrot.lane.b32.xlu1 %v3390_v25, %s4636_s16  ;;  %v3183_v38 = vadd.f32 %v5926_v51, %v3139_v5 }
 0x560   :  { %v4556_v26 = vpop.eup %4555  ;;  %v3305_v50 = vadd.f32 1.0, %v4554_v46  ;;  %4581 = vpow2.f32 %v3809_v1  ;;  %3459 = vrot.lane.b32.xlu0 %v3387_v49, %s4636_s16 }
 0x561   :  { %v4558_v7 = vpop.eup %4557  ;;  %4583 = vrcp.f32 %v3300_v57  ;;  %v3813_v24 = vmul.f32 -1.442695, %v3183_v38  ;;  %v3388_v19 = vmul.f32 %v4556_v26, %v5945_v39  ;;  %v2008_v57 = vadd.f32 1.0, %v5981_v3 }
 0x562   :  { %v4560_v23 = vpop.eup %4559  ;;  %4585 = vrcp.f32 %v3305_v50  ;;  %v3393_v29 = vmul.f32 %v4558_v7, %v5947_v14  ;;  %v3142_v30 = vpop.xlane.xlu1 %3141  ;;  %v2005_v50 = vadd.f32 1.0, %v5985_v40 }
 0x563   :  { %v3145_v31 = vpop.xlane.xlu0 %3144  ;;  %v4562_v54 = vpop.eup %4561  ;;  %v3306_v35 = vadd.f32 1.0, %v4560_v23  ;;  %4587 = vpow2.f32 %v3810_v37  ;;  %3461 = vrot.lane.b32.xlu1 %v3388_v19, %s4636_s16  ;;  %v3184_v44 = vadd.f32 %v5926_v51, %v3142_v30 }
 0x564   :  { %v3185_v56 = vadd.f32 %v5926_v51, %v3145_v31  ;;  %v4564_v4 = vpop.eup %4563  ;;  %v3303_v36 = vadd.f32 1.0, %v4562_v54  ;;  %4589 = vpow2.f32 %v3813_v24  ;;  %3471 = vrot.lane.b32.xlu0 %v3393_v29, %s4636_s16  ;;  %v2006_v29 = vadd.f32 1.0, %v5995_v15 }
 0x565   :  { %v4566_v2 = vpop.eup %4565  ;;  %4591 = vrcp.f32 %v3306_v35  ;;  %v3814_v17 = vmul.f32 -1.442695, %v3184_v44  ;;  %v3394_v1 = vmul.f32 %v4564_v4, %v5951_v47  ;;  %v2009_v31 = vadd.f32 1.0, %v6003_v33 }
 0x566   :  { %v3815_v8 = vmul.f32 -1.442695, %v3185_v56  ;;  %v4568_v28 = vpop.eup %4567  ;;  %4593 = vrcp.f32 %v3303_v36  ;;  %v3391_v0 = vmul.f32 %v4566_v2, %v5955_v55  ;;  %v3148_v48 = vpop.xlane.xlu1 %3147  ;;  %v2011_v15 = vadd.f32 1.0, %v5997_v11 }
 0x567   :  { %v4570_v25 = vpop.eup %4569  ;;  %4595 = vpow2.f32 %v3814_v17  ;;  %3473 = vrot.lane.b32.xlu1 %v3394_v1, %s4636_s16  ;;  %v3186_v60 = vadd.f32 %v5926_v51, %v3148_v48  ;;  %v3392_v20 = vmul.f32 %v4568_v28, %v5957_v16  ;;  %v2010_v33 = vadd.f32 1.0, %v6008_v43 }
 0x568   :  { %v4572_v49 = vpop.eup %4571  ;;  %v3304_v5 = vadd.f32 1.0, %v4570_v25  ;;  %4597 = vpow2.f32 %v3815_v8  ;;  %3467 = vrot.lane.b32.xlu0 %v3391_v0, %s4636_s16 }
 0x569   :  { %v4574_v46 = vpop.eup %4573  ;;  %4599 = vrcp.f32 %v2007_v13  ;;  %v3309_v37 = vadd.f32 1.0, %v4572_v49  ;;  %v3816_v38 = vmul.f32 -1.442695, %v3186_v60 }
 0x56a   :  { %v4576_v26 = vpop.eup %4575  ;;  %4601 = vrcp.f32 %v3304_v5  ;;  %v3397_v7 = vmul.f32 %v4574_v46, %v5961_v9 }
 0x56b   :  { %v4578_v51 = vpop.eup %4577  ;;  %4603 = vrcp.f32 %v3309_v37  ;;  %3469 = vrot.lane.b32.xlu1 %v3392_v20, %s4636_s16  ;;  %v3398_v24 = vmul.f32 %v4576_v26, %v5965_v32  ;;  %v2012_v20 = vadd.f32 1.0, %v6001_v34 }
 0x56c   :  { %v4580_v19 = vpop.eup %4579  ;;  %4605 = vpow2.f32 %v3816_v38  ;;  %3479 = vrot.lane.b32.xlu0 %v3397_v7, %s4636_s16  ;;  %v3395_v3 = vmul.f32 %v4578_v51, %v5969_v10 }
 0x56d   :  { %v4582_v23 = vpop.eup %4581  ;;  %4607 = vrcp.f32 %v2008_v57  ;;  %v3310_v40 = vadd.f32 1.0, %v4580_v19 }
 0x56e   :  { %v4584_v30 = vpop.eup %4583  ;;  %4609 = vrcp.f32 %v2005_v50  ;;  %v3307_v54 = vadd.f32 1.0, %v4582_v23 }
 0x56f   :  { %v4586_v35 = vpop.eup %4585  ;;  %4611 = vrcp.f32 %v3310_v40  ;;  %3481 = vrot.lane.b32.xlu1 %v3398_v24, %s4636_s16  ;;  %v3396_v44 = vmul.f32 %v4584_v30, %v5971_v18 }
 0x570   :  { %v4588_v56 = vpop.eup %4587  ;;  %4613 = vrcp.f32 %v3307_v54  ;;  %3475 = vrot.lane.b32.xlu0 %v3395_v3, %s4636_s16  ;;  %v3401_v4 = vmul.f32 %v4586_v35, %v5977_v42 }
 0x571   :  { %v4590_v13 = vpop.eup %4589  ;;  %4615 = vrcp.f32 %v2006_v29  ;;  %v3308_v36 = vadd.f32 1.0, %v4588_v56 }
 0x572   :  { %v4592_v2 = vpop.eup %4591  ;;  %4617 = vrcp.f32 %v2009_v31  ;;  %v3311_v17 = vadd.f32 1.0, %v4590_v13 }
 0x573   :  { %v4594_v8 = vpop.eup %4593  ;;  %4619 = vrcp.f32 %v3308_v36  ;;  %3477 = vrot.lane.b32.xlu1 %v3396_v44, %s4636_s16  ;;  %v3402_v1 = vmul.f32 %v4592_v2, %v5983_v52 }
 0x574   :  { %v4596_v28 = vpop.eup %4595  ;;  %4621 = vrcp.f32 %v3311_v17  ;;  %3487 = vrot.lane.b32.xlu0 %v3401_v4, %s4636_s16  ;;  %v3399_v0 = vmul.f32 %v4594_v8, %v5989_v12 }
 0x575   :  { %v4598_v48 = vpop.eup %4597  ;;  %4623 = vrcp.f32 %v2011_v15  ;;  %v3312_v11 = vadd.f32 1.0, %v4596_v28 }
 0x576   :  { %v6075_v25 = vpop.eup %4599  ;;  %4625 = vrcp.f32 %v2010_v33  ;;  %v3313_v43 = vadd.f32 1.0, %v4598_v48 }
 0x577   :  { %v4602_v60 = vpop.eup %4601  ;;  %4627 = vrcp.f32 %v3312_v11  ;;  %3489 = vrot.lane.b32.xlu1 %v3402_v1, %s4636_s16 }
 0x578   :  { %v4604_v49 = vpop.eup %4603  ;;  %4629 = vrcp.f32 %v3313_v43  ;;  %3483 = vrot.lane.b32.xlu0 %v3399_v0, %s4636_s16  ;;  %v3400_v5 = vmul.f32 %v4602_v60, %v5991_v63 }
 0x579   :  { %v4606_v46 = vpop.eup %4605  ;;  %v3405_v57 = vmul.f32 %v4604_v49, %v6075_v25  ;;  %4631 = vrcp.f32 %v2012_v20 }
 0x57a   :  { %v6082_v37 = vpop.eup %4607  ;;  %v3314_v38 = vadd.f32 1.0, %v4606_v46 }
 0x57b   :  { %v6084_v26 = vpop.eup %4609  ;;  %3485 = vrot.lane.b32.xlu1 %v3400_v5, %s4636_s16 }
 0x57c   :  { %v4612_v34 = vpop.eup %4611  ;;  %4633 = vrcp.f32 %v3314_v38  ;;  %3495 = vrot.lane.b32.xlu0 %v3405_v57, %s4636_s16 }
 0x57d   :  { %v4614_v50 = vpop.eup %4613  ;;  %v3406_v7 = vmul.f32 %v4612_v34, %v6082_v37 }
 0x57e   :  { %v6089_v51 = vpop.eup %4615  ;;  %v3403_v24 = vmul.f32 %v4614_v50, %v6084_v26 }
 0x57f   :  { %v6092_v19 = vpop.eup %4617  ;;  %3497 = vrot.lane.b32.xlu1 %v3406_v7, %s4636_s16 }
 0x580   :  { %v4620_v3 = vpop.eup %4619  ;;  %3491 = vrot.lane.b32.xlu0 %v3403_v24, %s4636_s16 }
 0x581   :  { %v4622_v23 = vpop.eup %4621  ;;  %v3404_v29 = vmul.f32 %v4620_v3, %v6089_v51 }
 0x582   :  { %v6097_v40 = vpop.eup %4623  ;;  %v3407_v30 = vmul.f32 %v4622_v23, %v6092_v19 }
 0x583   :  { %v6100_v31 = vpop.eup %4625  ;;  %3493 = vrot.lane.b32.xlu1 %v3404_v29, %s4636_s16 }
 0x584   :  { %v4628_v54 = vpop.eup %4627  ;;  %3499 = vrot.lane.b32.xlu0 %v3407_v30, %s4636_s16 }
 0x585   :  { %v4630_v35 = vpop.eup %4629  ;;  %v3408_v44 = vmul.f32 %v4628_v54, %v6100_v31 }
 0x586   :  { %v3409_v56 = vmul.f32 %v4630_v35, %v6097_v40  ;;  %v6107_v4 = vpop.eup %4631 }
 0x587   :  { %3501 = vrot.lane.b32.xlu1 %v3408_v44, %s4636_s16 }
 0x588   :  { %3503 = vrot.lane.b32.xlu0 %v3409_v56, %s4636_s16 }
 0x589   :  { %v4634_v13 = vpop.eup %4633 }
 0x58a   :  { %v3410_v15 = vmul.f32 %v4634_v13, %v6107_v4 }
 0x58c   :  { %3505 = vrot.lane.b32.xlu1 %v3410_v15, %s4636_s16 }
 0x5bb   :  { %v3448_v36 = vpop.permute.xlu1 %3447 }
 0x5bc   :  { %v3542_v2 = vsel %vm3539_vm4, %v5903_v22, %v3448_v36 }
 0x5bd   :  { %3575 = vst.msk [vmem:[%s6323_s19 + $0x10] sm:$0xff] %vm3572_vm5, %v3542_v2 }
 0x5bf   :  { %v3450_v33 = vpop.permute.xlu1 %3449 }
 0x5c0   :  { %v3543_v17 = vsel %vm3539_vm4, %v5909_v61, %v3450_v33  ;;  %v3444_v8 = vpop.permute.xlu0 %3443 }
 0x5c1   :  { %3576 = vst.msk [vmem:[%s6323_s19 + $0x18] sm:$0xff] %vm3572_vm5, %v3543_v17  ;;  %v3540_v1 = vsel %vm3539_vm4, %v5906_v58, %v3444_v8 }
 0x5c2   :  { %3573 = vst.msk [vmem:[%s6323_s19] sm:$0xff] %vm3572_vm5, %v3540_v1 }
 0x5c3   :  { %v3446_v22 = vpop.permute.xlu1 %3445 }
 0x5c4   :  { %v3541_v28 = vsel %vm3539_vm4, %v5912_v62, %v3446_v22  ;;  %v3456_v0 = vpop.permute.xlu0 %3455 }
 0x5c5   :  { %3574 = vst.msk [vmem:[%s6323_s19 + $0x8] sm:$0xff] %vm3572_vm5, %v3541_v28  ;;  %v3546_v61 = vsel %vm3539_vm4, %v5919_v21, %v3456_v0 }
 0x5c6   :  { %3579 = vst.msk [vmem:[%s6323_s19 + $0x30] sm:$0xff] %vm3572_vm5, %v3546_v61 }
 0x5c7   :  { %v3458_v58 = vpop.permute.xlu1 %3457 }
 0x5c8   :  { %v3547_v48 = vsel %vm3539_vm4, %v5923_v53, %v3458_v58  ;;  %v3452_v11 = vpop.permute.xlu0 %3451 }
 0x5c9   :  { %3580 = vst.msk [vmem:[%s6323_s19 + $0x38] sm:$0xff] %vm3572_vm5, %v3547_v48  ;;  %v3544_v62 = vsel %vm3539_vm4, %v5928_v59, %v3452_v11 }
 0x5ca   :  { %3577 = vst.msk [vmem:[%s6323_s19 + $0x20] sm:$0xff] %vm3572_vm5, %v3544_v62 }
 0x5cc   :  { %v3454_v21 = vpop.permute.xlu1 %3453 }
 0x5cd   :  { %v3545_v43 = vsel %vm3539_vm4, %v5933_v45, %v3454_v21  ;;  %v3464_v60 = vpop.permute.xlu0 %3463 }
 0x5ce   :  { %3578 = vst.msk [vmem:[%s6323_s19 + $0x28] sm:$0xff] %vm3572_vm5, %v3545_v43  ;;  %v3550_v53 = vsel %vm3539_vm4, %v5936_v41, %v3464_v60 }
 0x5cf   :  { %3583 = vst.msk [vmem:[%s6323_s19 + $0x50] sm:$0xff] %vm3572_vm5, %v3550_v53 }
 0x5d1   :  { %v3466_v59 = vpop.permute.xlu1 %3465 }
 0x5d2   :  { %v3551_v20 = vsel %vm3539_vm4, %v5938_v27, %v3466_v59  ;;  %v3460_v49 = vpop.permute.xlu0 %3459 }
 0x5d3   :  { %3584 = vst.msk [vmem:[%s6323_s19 + $0x58] sm:$0xff] %vm3572_vm5, %v3551_v20  ;;  %v3548_v45 = vsel %vm3539_vm4, %v5942_v6, %v3460_v49 }
 0x5d4   :  { %3581 = vst.msk [vmem:[%s6323_s19 + $0x40] sm:$0xff] %vm3572_vm5, %v3548_v45 }
 0x5d5   :  { %v3462_v41 = vpop.permute.xlu1 %3461 }
 0x5d6   :  { %v3549_v5 = vsel %vm3539_vm4, %v5945_v39, %v3462_v41  ;;  %v3472_v46 = vpop.permute.xlu0 %3471 }
 0x5d7   :  { %3582 = vst.msk [vmem:[%s6323_s19 + $0x48] sm:$0xff] %vm3572_vm5, %v3549_v5  ;;  %v3554_v27 = vsel %vm3539_vm4, %v5947_v14, %v3472_v46 }
 0x5d8   :  { %3587 = vst.msk [vmem:[%s6323_s19 + $0x70] sm:$0xff] %vm3572_vm5, %v3554_v27 }
 0x5d9   :  { %v3474_v6 = vpop.permute.xlu1 %3473 }
 0x5da   :  { %v3555_v57 = vsel %vm3539_vm4, %v5951_v47, %v3474_v6  ;;  %v3468_v38 = vpop.permute.xlu0 %3467 }
 0x5db   :  { %3588 = vst.msk [vmem:[%s6323_s19 + $0x78] sm:$0xff] %vm3572_vm5, %v3555_v57  ;;  %v3552_v39 = vsel %vm3539_vm4, %v5955_v55, %v3468_v38 }
 0x5dc   :  { %3585 = vst.msk [vmem:[%s6323_s19 + $0x60] sm:$0xff] %vm3572_vm5, %v3552_v39 }
 0x5dd   :  { %v3470_v14 = vpop.permute.xlu1 %3469 }
 0x5de   :  { %v3553_v34 = vsel %vm3539_vm4, %v5957_v16, %v3470_v14  ;;  %v3480_v50 = vpop.permute.xlu0 %3479 }
 0x5df   :  { %3586 = vst.msk [vmem:[%s6323_s19 + $0x68] sm:$0xff] %vm3572_vm5, %v3553_v34  ;;  %v3558_v47 = vsel %vm3539_vm4, %v5961_v9, %v3480_v50 }
 0x5e0   :  { %3591 = vst.msk [vmem:[%s6323_s19 + $0x90] sm:$0xff] %vm3572_vm5, %v3558_v47 }
 0x5e1   :  { %v3482_v55 = vpop.permute.xlu1 %3481 }
 0x5e2   :  { %v3559_v7 = vsel %vm3539_vm4, %v5965_v32, %v3482_v55  ;;  %v3476_v24 = vpop.permute.xlu0 %3475 }
 0x5e3   :  { %3592 = vst.msk [vmem:[%s6323_s19 + $0x98] sm:$0xff] %vm3572_vm5, %v3559_v7  ;;  %v3556_v16 = vsel %vm3539_vm4, %v5969_v10, %v3476_v24 }
 0x5e4   :  { %3589 = vst.msk [vmem:[%s6323_s19 + $0x80] sm:$0xff] %vm3572_vm5, %v3556_v16 }
 0x5e5   :  { %v3478_v9 = vpop.permute.xlu1 %3477 }
 0x5e6   :  { %v3557_v3 = vsel %vm3539_vm4, %v5971_v18, %v3478_v9  ;;  %v3488_v23 = vpop.permute.xlu0 %3487 }
 0x5e7   :  { %3590 = vst.msk [vmem:[%s6323_s19 + $0x88] sm:$0xff] %vm3572_vm5, %v3557_v3  ;;  %v3562_v32 = vsel %vm3539_vm4, %v5977_v42, %v3488_v23 }
 0x5e8   :  { %3595 = vst.msk [vmem:[%s6323_s19 + $0xb0] sm:$0xff] %vm3572_vm5, %v3562_v32 }
 0x5e9   :  { %v3490_v10 = vpop.permute.xlu1 %3489 }
 0x5ea   :  { %v3563_v29 = vsel %vm3539_vm4, %v5983_v52, %v3490_v10  ;;  %v3484_v30 = vpop.permute.xlu0 %3483 }
 0x5eb   :  { %3596 = vst.msk [vmem:[%s6323_s19 + $0xb8] sm:$0xff] %vm3572_vm5, %v3563_v29  ;;  %v3560_v18 = vsel %vm3539_vm4, %v5989_v12, %v3484_v30 }
 0x5ec   :  { %3593 = vst.msk [vmem:[%s6323_s19 + $0xa0] sm:$0xff] %vm3572_vm5, %v3560_v18 }
 0x5ed   :  { %v3486_v42 = vpop.permute.xlu1 %3485 }
 0x5ee   :  { %v3561_v54 = vsel %vm3539_vm4, %v5991_v63, %v3486_v42  ;;  %v3496_v35 = vpop.permute.xlu0 %3495 }
 0x5ef   :  { %3594 = vst.msk [vmem:[%s6323_s19 + $0xa8] sm:$0xff] %vm3572_vm5, %v3561_v54  ;;  %v3566_v52 = vsel %vm3539_vm4, %v6075_v25, %v3496_v35 }
 0x5f0   :  { %3599 = vst.msk [vmem:[%s6323_s19 + $0xd0] sm:$0xff] %vm3572_vm5, %v3566_v52 }
 0x5f1   :  { %v3498_v12 = vpop.permute.xlu1 %3497 }
 0x5f2   :  { %v3567_v44 = vsel %vm3539_vm4, %v6082_v37, %v3498_v12  ;;  %v3492_v56 = vpop.permute.xlu0 %3491 }
 0x5f3   :  { %3600 = vst.msk [vmem:[%s6323_s19 + $0xd8] sm:$0xff] %vm3572_vm5, %v3567_v44  ;;  %v3564_v63 = vsel %vm3539_vm4, %v6084_v26, %v3492_v56 }
 0x5f4   :  { %3597 = vst.msk [vmem:[%s6323_s19 + $0xc0] sm:$0xff] %vm3572_vm5, %v3564_v63 }
 0x5f5   :  { %v3494_v25 = vpop.permute.xlu1 %3493 }
 0x5f6   :  { %v3565_v13 = vsel %vm3539_vm4, %v6089_v51, %v3494_v25  ;;  %v3500_v15 = vpop.permute.xlu0 %3499 }
 0x5f7   :  { %3598 = vst.msk [vmem:[%s6323_s19 + $0xc8] sm:$0xff] %vm3572_vm5, %v3565_v13  ;;  %v3568_v37 = vsel %vm3539_vm4, %v6092_v19, %v3500_v15 }
 0x5f8   :  { %3601 = vst.msk [vmem:[%s6323_s19 + $0xe0] sm:$0xff] %vm3572_vm5, %v3568_v37 }
 0x5f9   :  { %v3502_v26 = vpop.permute.xlu1 %3501 }
 0x5fa   :  { %v3569_v36 = vsel %vm3539_vm4, %v6100_v31, %v3502_v26  ;;  %v3504_v2 = vpop.permute.xlu0 %3503 }
 0x5fb   :  { %3602 = vst.msk [vmem:[%s6323_s19 + $0xe8] sm:$0xff] %vm3572_vm5, %v3569_v36  ;;  %v3570_v51 = vsel %vm3539_vm4, %v6097_v40, %v3504_v2 }
 0x5fc   :  { %3603 = vst.msk [vmem:[%s6323_s19 + $0xf0] sm:$0xff] %vm3572_vm5, %v3570_v51 }
 0x5fe   :  { %v3506_v19 = vpop.permute.xlu1 %3505 }
 0x5ff   :  { %v3571_v33 = vsel %vm3539_vm4, %v6107_v4, %v3506_v19 }
 0x600   :  { %3604 = vst.msk [vmem:[%s6323_s19 + $0xf8] sm:$0xff] %vm3572_vm5, %v3571_v33 }

</bundles_post_ra>
